<compile_context>
chip_gen: v6e
topology: v6e:2x2x1
jax: 0.10.0
libtpu: 0.0.40
codegen_flags: <defaults>
</compile_context>

<pallas_src>
import functools

import jax
import jax.numpy as jnp
from jax.experimental import pallas as pl
from jax.experimental.pallas import tpu as pltpu

BN_EPS = 1e-5
LANE = 128
MXU_DTYPE = jnp.bfloat16          # MXU input dtype (accumulation stays f32)
VMEM_LIMIT = 32 * 1024 * 1024     # explicit scoped-VMEM budget (v7x-safe)


def _round_up(x, m):
    return (x + m - 1) // m * m


# ----------------------------------------------------------------------------
# In-kernel helpers (pure jnp on values, traced inside the Pallas body)
# ----------------------------------------------------------------------------
def _pad1_hw(x):
    """Zero-pad (H, W, C) -> (H+2, W+2, C) in registers (no HBM round trip)."""
    h, w, c = x.shape
    zc = jnp.zeros((h, 1, c), x.dtype)
    x = jnp.concatenate([zc, x, zc], axis=1)
    zr = jnp.zeros((1, w + 2, c), x.dtype)
    return jnp.concatenate([zr, x, zr], axis=0)


def _conv3x3_acc(xpad, w_ref):
    """3x3 conv of one padded image.

    xpad:  (H+2, W+2, Cin)           (bf16 value)
    w_ref: (3, 3*Cin, Cout) ref      (taps flattened as kx*Cin + cin)
    Returns (H*W, Cout) f32.  Three MXU pushes with K = 3*Cin: the 3 horizontal
    taps are folded into the contraction by concatenating shifted W-windows on
    the channel (lane) axis; the 3 vertical taps are contiguous row slabs.
    """
    hp, wp, _ = xpad.shape
    h, w = hp - 2, wp - 2
    acc = None
    for dy in range(3):                                     # static unroll
        slab = xpad[dy:dy + h]                              # contiguous rows
        taps = jnp.concatenate(
            [slab[:, dx:dx + w, :] for dx in range(3)], axis=-1
        ).reshape(h * w, -1)                                # (H*W, 3*Cin)
        part = jnp.dot(taps, w_ref[dy], preferred_element_type=jnp.float32)
        acc = part if acc is None else acc + part
    return acc


def _tile_stats(acc):
    """Per-channel [sum; sum-of-squares] of this tile, f32."""
    return jnp.concatenate(
        [jnp.sum(acc, axis=0, keepdims=True),
         jnp.sum(acc * acc, axis=0, keepdims=True)], axis=0)


# ----------------------------------------------------------------------------
# Pallas kernels
# ----------------------------------------------------------------------------
def _conv1_stats_kernel(x2_ref, x1_ref, w2g_ref, w1g_ref, b_ref, y_ref, s_ref):
    # Fused skip concat: cat([x2, x1], C) @ W == x2 @ W[:C2] + x1 @ W[C2:]
    acc = (_conv3x3_acc(_pad1_hw(x2_ref[0]), w2g_ref)
           + _conv3x3_acc(_pad1_hw(x1_ref[0]), w1g_ref)
           + b_ref[...])
    y_ref[0] = acc                       # pre-BN conv output (f32, lane-dense)
    s_ref[0] = _tile_stats(acc)          # per-tile BN statistics


def _bnrelu_conv2_stats_kernel(h, w, y1_ref, a1_ref, c1_ref, w_ref, b_ref,
                               y2_ref, s_ref):
    cmid = y1_ref.shape[-1]
    z = jnp.maximum(y1_ref[0] * a1_ref[...] + c1_ref[...], 0.0)  # BN1 + ReLU
    z = z.reshape(h, w, cmid).astype(w_ref.dtype)                # -> bf16
    acc = _conv3x3_acc(_pad1_hw(z), w_ref) + b_ref[...]
    y2_ref[0] = acc
    s_ref[0] = _tile_stats(acc)


def _bnrelu_kernel(y_ref, a_ref, c_ref, o_ref):
    o_ref[0] = jnp.maximum(y_ref[0] * a_ref[...] + c_ref[...], 0.0)


# ----------------------------------------------------------------------------
# Glue: bilinear x2 upsample (align_corners=True), like nn.Upsample
# ----------------------------------------------------------------------------
def _interp_matrix(n_in, n_out):
    if n_in == 1:
        return jnp.ones((n_out, 1), jnp.float32)
    src = jnp.arange(n_out, dtype=jnp.float32) * (n_in - 1) / (n_out - 1)
    lo = jnp.clip(jnp.floor(src).astype(jnp.int32), 0, n_in - 2)
    frac = src - lo.astype(jnp.float32)
    rows = jnp.arange(n_out)
    m = jnp.zeros((n_out, n_in), jnp.float32)
    m = m.at[rows, lo].add(1.0 - frac)
    m = m.at[rows, lo + 1].add(frac)
    return m


def bilinear_upsample_x2(x_nhwc):
    N, H, W, C = x_nhwc.shape
    uh = _interp_matrix(H, 2 * H)
    uw = _interp_matrix(W, 2 * W)
    x = jnp.einsum("oh,nhwc->nowc", uh, x_nhwc)
    x = jnp.einsum("pw,nowc->nopc", uw, x)
    return x


def _bn_affine(stats, gamma, beta, count):
    """Reduce per-tile stats -> folded BN scale/shift (shape (1, Cp), f32)."""
    total = jnp.sum(stats, axis=0)                        # (2, Cp)
    mean = total[0] / count
    var = jnp.maximum(total[1] / count - mean * mean, 0.0)
    scale = gamma * jax.lax.rsqrt(var + BN_EPS)
    shift = beta - mean * scale
    return scale[None, :].astype(jnp.float32), shift[None, :].astype(jnp.float32)


# ----------------------------------------------------------------------------
# Up module: parameters + forward
# ----------------------------------------------------------------------------
def init_up_params(key, in_channels, out_channels):
    """Up(in_channels, out_channels, bilinear=True).  mid = in_channels // 2."""
    mid = in_channels // 2
    cmid_p = _round_up(mid, LANE)
    cout_p = _round_up(out_channels, LANE)
    ks = jax.random.split(key, 8)
    w1_oihw = 0.1 * jax.random.normal(ks[0], (mid, in_channels, 3, 3), jnp.float32)
    b1 = 0.1 * jax.random.normal(ks[1], (mid,), jnp.float32)
    w2_oihw = 0.1 * jax.random.normal(ks[2], (out_channels, mid, 3, 3), jnp.float32)
    b2 = 0.1 * jax.random.normal(ks[3], (out_channels,), jnp.float32)
    g1 = 1.0 + 0.1 * jax.random.normal(ks[4], (mid,), jnp.float32)
    be1 = 0.1 * jax.random.normal(ks[5], (mid,), jnp.float32)
    g2 = 1.0 + 0.1 * jax.random.normal(ks[6], (out_channels,), jnp.float32)
    be2 = 0.1 * jax.random.normal(ks[7], (out_channels,), jnp.float32)

    # OIHW -> HWIO, zero-pad output channels up to a lane multiple.
    w1_hwio = jnp.transpose(w1_oihw, (2, 3, 1, 0))                # (3,3,Cin,mid)
    w1_p = jnp.zeros((3, 3, in_channels, cmid_p), jnp.float32)
    w1_p = w1_p.at[..., :mid].set(w1_hwio)
    w2_hwio = jnp.transpose(w2_oihw, (2, 3, 1, 0))                # (3,3,mid,out)
    w2_p = jnp.zeros((3, 3, cmid_p, cout_p), jnp.float32)
    w2_p = w2_p.at[:, :, :mid, :out_channels].set(w2_hwio)

    def padc(v, n, fill=0.0):
        return jnp.full((n,), fill, jnp.float32).at[:v.shape[0]].set(v)

    return {
        "w1": w1_p.astype(MXU_DTYPE),                             # (3,3,Cin,cmid_p)
        "b1": padc(b1, cmid_p)[None, :],                          # (1,cmid_p)
        "g1": padc(g1, cmid_p, 1.0), "beta1": padc(be1, cmid_p),
        "w2": w2_p.reshape(3, 3 * cmid_p, cout_p).astype(MXU_DTYPE),
        "b2": padc(b2, cout_p)[None, :],
        "g2": padc(g2, cout_p, 1.0), "beta2": padc(be2, cout_p),
    }


@functools.partial(jax.jit, static_argnums=(3,))
def up_forward(params, x1_nchw, x2_nchw, out_channels):
    x1 = jnp.transpose(x1_nchw, (0, 2, 3, 1)).astype(jnp.float32)
    x2 = jnp.transpose(x2_nchw, (0, 2, 3, 1)).astype(jnp.float32)

    # 1) bilinear x2 upsample, align_corners=True                   (glue)
    x1 = bilinear_upsample_x2(x1)

    # 2) F.pad alignment of x1 to x2's spatial size (zero in demo)  (glue)
    diff_y = x2.shape[1] - x1.shape[1]
    diff_x = x2.shape[2] - x1.shape[2]
    if diff_y or diff_x:
        # TODO(synk): fold this alignment pad into conv1's index_map.
        x1 = jnp.pad(x1, ((0, 0),
                          (diff_y // 2, diff_y - diff_y // 2),
                          (diff_x // 2, diff_x - diff_x // 2), (0, 0)))

    N, H, W, C2 = x2.shape
    C1 = x1.shape[-1]
    cmid_p = params["b1"].shape[-1]
    cout_p = params["b2"].shape[-1]
    count = N * H * W

    x2 = x2.astype(MXU_DTYPE)
    x1 = x1.astype(MXU_DTYPE)
    # Split conv1 weights along Cin (x2 channels first, matching torch.cat).
    w1_x2 = params["w1"][:, :, :C2, :].reshape(3, 3 * C2, cmid_p)
    w1_x1 = params["w1"][:, :, C2:, :].reshape(3, 3 * C1, cmid_p)

    cp = pltpu.CompilerParams(dimension_semantics=("parallel",),
                              vmem_limit_bytes=VMEM_LIMIT)
    grid = (N,)

    # ---- pass 1: conv1 (+ fused concat, in-register pad) + per-tile BN stats
    y1, s1 = pl.pallas_call(
        _conv1_stats_kernel,
        out_shape=(jax.ShapeDtypeStruct((N, H * W, cmid_p), jnp.float32),
                   jax.ShapeDtypeStruct((N, 2, cmid_p), jnp.float32)),
        grid=grid,
        in_specs=[
            pl.BlockSpec((1, H, W, C2), lambda i: (i, 0, 0, 0)),
            pl.BlockSpec((1, H, W, C1), lambda i: (i, 0, 0, 0)),
            pl.BlockSpec((3, 3 * C2, cmid_p), lambda i: (0, 0, 0)),
            pl.BlockSpec((3, 3 * C1, cmid_p), lambda i: (0, 0, 0)),
            pl.BlockSpec((1, cmid_p), lambda i: (0, 0)),
        ],
        out_specs=(pl.BlockSpec((1, H * W, cmid_p), lambda i: (i, 0, 0)),
                   pl.BlockSpec((1, 2, cmid_p), lambda i: (i, 0, 0))),
        compiler_params=cp,
    )(x2, x1, w1_x2, w1_x1, params["b1"])

    a1, c1 = _bn_affine(s1, params["g1"], params["beta1"], count)   # tiny glue

    # ---- pass 2: BN1 + ReLU + conv2 + per-tile BN stats (fused, no HBM trip
    #              for the normalized activation)
    y2, s2 = pl.pallas_call(
        functools.partial(_bnrelu_conv2_stats_kernel, H, W),
        out_shape=(jax.ShapeDtypeStruct((N, H * W, cout_p), jnp.float32),
                   jax.ShapeDtypeStruct((N, 2, cout_p), jnp.float32)),
        grid=grid,
        in_specs=[
            pl.BlockSpec((1, H * W, cmid_p), lambda i: (i, 0, 0)),
            pl.BlockSpec((1, cmid_p), lambda i: (0, 0)),
            pl.BlockSpec((1, cmid_p), lambda i: (0, 0)),
            pl.BlockSpec((3, 3 * cmid_p, cout_p), lambda i: (0, 0, 0)),
            pl.BlockSpec((1, cout_p), lambda i: (0, 0)),
        ],
        out_specs=(pl.BlockSpec((1, H * W, cout_p), lambda i: (i, 0, 0)),
                   pl.BlockSpec((1, 2, cout_p), lambda i: (i, 0, 0))),
        compiler_params=cp,
    )(y1, a1, c1, params["w2"], params["b2"])

    a2, c2 = _bn_affine(s2, params["g2"], params["beta2"], count)   # tiny glue

    # ---- pass 3: BN2 + ReLU (lane-dense elementwise finalize)
    out = pl.pallas_call(
        _bnrelu_kernel,
        out_shape=jax.ShapeDtypeStruct((N, H * W, cout_p), jnp.float32),
        grid=grid,
        in_specs=[pl.BlockSpec((1, H * W, cout_p), lambda i: (i, 0, 0)),
                  pl.BlockSpec((1, cout_p), lambda i: (0, 0)),
                  pl.BlockSpec((1, cout_p), lambda i: (0, 0))],
        out_specs=pl.BlockSpec((1, H * W, cout_p), lambda i: (i, 0, 0)),
        compiler_params=cp,
    )(y2, a2, c2)

    out = out.reshape(N, H, W, cout_p)[..., :out_channels]          # drop pad
    return jnp.transpose(out, (0, 3, 1, 2))                         # NCHW


# ----------------------------------------------------------------------------
# Pure-JAX f32 reference (for sanity checking the kernels)
# ----------------------------------------------------------------------------
def _ref_conv_bn_relu_nchw(x, w_hwio, b, gamma, beta):
    w_oihw = jnp.transpose(w_hwio, (3, 2, 0, 1))
    y = jax.lax.conv_general_dilated(
        x, w_oihw, window_strides=(1, 1), padding=((1, 1), (1, 1)),
        dimension_numbers=("NCHW", "OIHW", "NCHW"))
    y = y + b[None, :, None, None]
    mean = jnp.mean(y, axis=(0, 2, 3), keepdims=True)
    var = jnp.mean((y - mean) ** 2, axis=(0, 2, 3), keepdims=True)
    y = (y - mean) / jnp.sqrt(var + BN_EPS)
    y = y * gamma[None, :, None, None] + beta[None, :, None, None]
    return jnp.maximum(y, 0.0)


def _ref_up_forward(params, x1_nchw, x2_nchw, out_channels):
    cmid_p = params["b1"].shape[-1]
    cout_p = params["b2"].shape[-1]
    w1 = params["w1"].astype(jnp.float32)                       # (3,3,Cin,cmid_p)
    w2 = params["w2"].astype(jnp.float32).reshape(3, 3, cmid_p, cout_p)

    x1 = jnp.transpose(x1_nchw, (0, 2, 3, 1))
    x1 = bilinear_upsample_x2(x1)
    x1 = jnp.transpose(x1, (0, 3, 1, 2))
    diff_y = x2_nchw.shape[2] - x1.shape[2]
    diff_x = x2_nchw.shape[3] - x1.shape[3]
    x1 = jnp.pad(x1, ((0, 0), (0, 0),
                      (diff_y // 2, diff_y - diff_y // 2),
                      (diff_x // 2, diff_x - diff_x // 2)))
    x = jnp.concatenate([x2_nchw, x1], axis=1)
    y = _ref_conv_bn_relu_nchw(x, w1, params["b1"][0],
                               params["g1"], params["beta1"])
    y = _ref_conv_bn_relu_nchw(y, w2, params["b2"][0],
                               params["g2"], params["beta2"])
    return y[:, :out_channels]


if __name__ == "__main__":
    in_channels, out_channels = 8, 4      # Up(8, 4, bilinear=True), mid = 4
    N, H1, W1 = 2, 8, 8                   # x1 spatial; x2 is 2x larger

    key = jax.random.PRNGKey(0)
    kx1, kx2, kp = jax.random.split(key, 3)
    # Standard UNet shapes: x1 and x2 each carry in_channels // 2 channels.
    x1 = jax.random.normal(kx1, (N, in_channels // 2, H1, W1), jnp.float32)
    x2 = jax.random.normal(kx2, (N, in_channels // 2, 2 * H1, 2 * W1), jnp.float32)

    params = init_up_params(kp, in_channels, out_channels)

    out = jax.block_until_ready(up_forward(params, x1, x2, out_channels))
    assert out.shape == (N, out_channels, 2 * H1, 2 * W1), out.shape

    ref = jax.block_until_ready(_ref_up_forward(params, x1, x2, out_channels))
    max_err = float(jnp.max(jnp.abs(out - ref)))
    # bf16 MXU inputs + bf16 intermediate (per v6e/v7x feedback); tolerance is
    # sized for that rounding — structural bugs would show errors of O(1).
    assert max_err < 1e-1, f"mismatch vs reference: {max_err}"

    print("KERNEL_OK")
</pallas_src>

<mosaic_0001>
module attributes {stable_mosaic.version = 11 : i64} {
  func.func private @main(%arg0: i32) attributes {dimension_semantics = [#tpu.dimension_semantics<core_parallel>], iteration_bounds = array<i64: 2>, tpu.core_type = #tpu.core_type<sc_scalar_subcore>, window_params = []} {
    return
  }
}

module attributes {stable_mosaic.version = 11 : i64} {
  func.func private @main(%arg0: i32) attributes {dimension_semantics = [#tpu.dimension_semantics<core_parallel>], iteration_bounds = array<i64: 2>, tpu.core_type = #tpu.core_type<sc_scalar_subcore>, window_params = []} {
    return
  }
}

module attributes {stable_mosaic.version = 11 : i64} {
  func.func @_conv1_stats_kernel(%arg0: i32, %arg1: memref<1x16x16x4xbf16, #tpu.memory_space<vmem>>, %arg2: memref<1x16x16x4xbf16, #tpu.memory_space<vmem>>, %arg3: memref<3x12x128xbf16, #tpu.memory_space<vmem>>, %arg4: memref<3x12x128xbf16, #tpu.memory_space<vmem>>, %arg5: memref<1x128xf32, #tpu.memory_space<vmem>>, %arg6: memref<1x256x128xf32, #tpu.memory_space<vmem>>, %arg7: memref<1x2x128xf32, #tpu.memory_space<vmem>>) attributes {dimension_semantics = [#tpu.dimension_semantics<parallel>], iteration_bounds = array<i64: 2>, scalar_prefetch = 0 : i64, scratch_operands = 0 : i64, tpu.core_type = #tpu.core_type<tc>, window_params = [{transform_indices = @transform_0, window_bounds = array<i64: 1, 16, 16, 4>}, {transform_indices = @transform_1, window_bounds = array<i64: 1, 16, 16, 4>}, {pipeline_mode = #tpu.pipeline_mode<synchronous>, transform_indices = @transform_2, window_bounds = array<i64: 3, 12, 128>}, {pipeline_mode = #tpu.pipeline_mode<synchronous>, transform_indices = @transform_3, window_bounds = array<i64: 3, 12, 128>}, {pipeline_mode = #tpu.pipeline_mode<synchronous>, transform_indices = @transform_4, window_bounds = array<i64: 1, 128>}, {transform_indices = @transform_5, window_bounds = array<i64: 1, 256, 128>}, {transform_indices = @transform_6, window_bounds = array<i64: 1, 2, 128>}]} {
    %c0 = arith.constant 0 : index
    %c0_0 = arith.constant 0 : index
    %c0_1 = arith.constant 0 : index
    %c0_2 = arith.constant 0 : index
    %0 = vector.load %arg1[%c0, %c0_0, %c0_1, %c0_2] : memref<1x16x16x4xbf16, #tpu.memory_space<vmem>>, vector<1x16x16x4xbf16>
    %1 = vector.shape_cast %0 : vector<1x16x16x4xbf16> to vector<16x16x4xbf16>
    %cst = arith.constant 0.000000e+00 : bf16
    %2 = vector.broadcast %cst : bf16 to vector<16x1x4xbf16>
    %3 = tpu.concatenate %2, %1, %2 in 1 : vector<16x1x4xbf16>, vector<16x16x4xbf16>, vector<16x1x4xbf16> -> vector<16x18x4xbf16>
    %cst_3 = arith.constant 0.000000e+00 : bf16
    %4 = vector.broadcast %cst_3 : bf16 to vector<1x18x4xbf16>
    %5 = tpu.concatenate %4, %3, %4 in 0 : vector<1x18x4xbf16>, vector<16x18x4xbf16>, vector<1x18x4xbf16> -> vector<18x18x4xbf16>
    %6 = vector.extract_strided_slice %5 {offsets = [0, 0, 0], sizes = [16, 18, 4], strides = [1, 1, 1]} : vector<18x18x4xbf16> to vector<16x18x4xbf16>
    %7 = vector.extract_strided_slice %6 {offsets = [0, 0, 0], sizes = [16, 16, 4], strides = [1, 1, 1]} : vector<16x18x4xbf16> to vector<16x16x4xbf16>
    %8 = vector.extract_strided_slice %6 {offsets = [0, 1, 0], sizes = [16, 16, 4], strides = [1, 1, 1]} : vector<16x18x4xbf16> to vector<16x16x4xbf16>
    %9 = vector.extract_strided_slice %6 {offsets = [0, 2, 0], sizes = [16, 16, 4], strides = [1, 1, 1]} : vector<16x18x4xbf16> to vector<16x16x4xbf16>
    %10 = tpu.concatenate %7, %8, %9 in 2 : vector<16x16x4xbf16>, vector<16x16x4xbf16>, vector<16x16x4xbf16> -> vector<16x16x12xbf16>
    %11 = vector.shape_cast %10 : vector<16x16x12xbf16> to vector<256x12xbf16>
    %c0_4 = arith.constant 0 : index
    %c0_5 = arith.constant 0 : index
    %c0_6 = arith.constant 0 : index
    %12 = vector.load %arg3[%c0_4, %c0_5, %c0_6] : memref<3x12x128xbf16, #tpu.memory_space<vmem>>, vector<1x12x128xbf16>
    %13 = vector.shape_cast %12 : vector<1x12x128xbf16> to vector<12x128xbf16>
    %cst_7 = arith.constant dense<0.000000e+00> : vector<256x128xf32>
    %14 = tpu.matmul %11, %13, %cst_7 {dimension_numbers = #tpu.dot_dimension_numbers<[1], [0], [0], [1], [0, 0, 1, 1], [], []>} : vector<256x12xbf16>, vector<12x128xbf16>, vector<256x128xf32> -> vector<256x128xf32>
    %15 = vector.extract_strided_slice %5 {offsets = [1, 0, 0], sizes = [16, 18, 4], strides = [1, 1, 1]} : vector<18x18x4xbf16> to vector<16x18x4xbf16>
    %16 = vector.extract_strided_slice %15 {offsets = [0, 0, 0], sizes = [16, 16, 4], strides = [1, 1, 1]} : vector<16x18x4xbf16> to vector<16x16x4xbf16>
    %17 = vector.extract_strided_slice %15 {offsets = [0, 1, 0], sizes = [16, 16, 4], strides = [1, 1, 1]} : vector<16x18x4xbf16> to vector<16x16x4xbf16>
    %18 = vector.extract_strided_slice %15 {offsets = [0, 2, 0], sizes = [16, 16, 4], strides = [1, 1, 1]} : vector<16x18x4xbf16> to vector<16x16x4xbf16>
    %19 = tpu.concatenate %16, %17, %18 in 2 : vector<16x16x4xbf16>, vector<16x16x4xbf16>, vector<16x16x4xbf16> -> vector<16x16x12xbf16>
    %20 = vector.shape_cast %19 : vector<16x16x12xbf16> to vector<256x12xbf16>
    %c1 = arith.constant 1 : index
    %c0_8 = arith.constant 0 : index
    %c0_9 = arith.constant 0 : index
    %21 = vector.load %arg3[%c1, %c0_8, %c0_9] : memref<3x12x128xbf16, #tpu.memory_space<vmem>>, vector<1x12x128xbf16>
    %22 = vector.shape_cast %21 : vector<1x12x128xbf16> to vector<12x128xbf16>
    %cst_10 = arith.constant dense<0.000000e+00> : vector<256x128xf32>
    %23 = tpu.matmul %20, %22, %cst_10 {dimension_numbers = #tpu.dot_dimension_numbers<[1], [0], [0], [1], [0, 0, 1, 1], [], []>} : vector<256x12xbf16>, vector<12x128xbf16>, vector<256x128xf32> -> vector<256x128xf32>
    %24 = arith.addf %14, %23 : vector<256x128xf32>
    %25 = vector.extract_strided_slice %5 {offsets = [2, 0, 0], sizes = [16, 18, 4], strides = [1, 1, 1]} : vector<18x18x4xbf16> to vector<16x18x4xbf16>
    %26 = vector.extract_strided_slice %25 {offsets = [0, 0, 0], sizes = [16, 16, 4], strides = [1, 1, 1]} : vector<16x18x4xbf16> to vector<16x16x4xbf16>
    %27 = vector.extract_strided_slice %25 {offsets = [0, 1, 0], sizes = [16, 16, 4], strides = [1, 1, 1]} : vector<16x18x4xbf16> to vector<16x16x4xbf16>
    %28 = vector.extract_strided_slice %25 {offsets = [0, 2, 0], sizes = [16, 16, 4], strides = [1, 1, 1]} : vector<16x18x4xbf16> to vector<16x16x4xbf16>
    %29 = tpu.concatenate %26, %27, %28 in 2 : vector<16x16x4xbf16>, vector<16x16x4xbf16>, vector<16x16x4xbf16> -> vector<16x16x12xbf16>
    %30 = vector.shape_cast %29 : vector<16x16x12xbf16> to vector<256x12xbf16>
    %c2 = arith.constant 2 : index
    %c0_11 = arith.constant 0 : index
    %c0_12 = arith.constant 0 : index
    %31 = vector.load %arg3[%c2, %c0_11, %c0_12] : memref<3x12x128xbf16, #tpu.memory_space<vmem>>, vector<1x12x128xbf16>
    %32 = vector.shape_cast %31 : vector<1x12x128xbf16> to vector<12x128xbf16>
    %cst_13 = arith.constant dense<0.000000e+00> : vector<256x128xf32>
    %33 = tpu.matmul %30, %32, %cst_13 {dimension_numbers = #tpu.dot_dimension_numbers<[1], [0], [0], [1], [0, 0, 1, 1], [], []>} : vector<256x12xbf16>, vector<12x128xbf16>, vector<256x128xf32> -> vector<256x128xf32>
    %34 = arith.addf %24, %33 : vector<256x128xf32>
    %c0_14 = arith.constant 0 : index
    %c0_15 = arith.constant 0 : index
    %c0_16 = arith.constant 0 : index
    %c0_17 = arith.constant 0 : index
    %35 = vector.load %arg2[%c0_14, %c0_15, %c0_16, %c0_17] : memref<1x16x16x4xbf16, #tpu.memory_space<vmem>>, vector<1x16x16x4xbf16>
    %36 = vector.shape_cast %35 : vector<1x16x16x4xbf16> to vector<16x16x4xbf16>
    %cst_18 = arith.constant 0.000000e+00 : bf16
    %37 = vector.broadcast %cst_18 : bf16 to vector<16x1x4xbf16>
    %38 = tpu.concatenate %37, %36, %37 in 1 : vector<16x1x4xbf16>, vector<16x16x4xbf16>, vector<16x1x4xbf16> -> vector<16x18x4xbf16>
    %cst_19 = arith.constant 0.000000e+00 : bf16
    %39 = vector.broadcast %cst_19 : bf16 to vector<1x18x4xbf16>
    %40 = tpu.concatenate %39, %38, %39 in 0 : vector<1x18x4xbf16>, vector<16x18x4xbf16>, vector<1x18x4xbf16> -> vector<18x18x4xbf16>
    %41 = vector.extract_strided_slice %40 {offsets = [0, 0, 0], sizes = [16, 18, 4], strides = [1, 1, 1]} : vector<18x18x4xbf16> to vector<16x18x4xbf16>
    %42 = vector.extract_strided_slice %41 {offsets = [0, 0, 0], sizes = [16, 16, 4], strides = [1, 1, 1]} : vector<16x18x4xbf16> to vector<16x16x4xbf16>
    %43 = vector.extract_strided_slice %41 {offsets = [0, 1, 0], sizes = [16, 16, 4], strides = [1, 1, 1]} : vector<16x18x4xbf16> to vector<16x16x4xbf16>
    %44 = vector.extract_strided_slice %41 {offsets = [0, 2, 0], sizes = [16, 16, 4], strides = [1, 1, 1]} : vector<16x18x4xbf16> to vector<16x16x4xbf16>
    %45 = tpu.concatenate %42, %43, %44 in 2 : vector<16x16x4xbf16>, vector<16x16x4xbf16>, vector<16x16x4xbf16> -> vector<16x16x12xbf16>
    %46 = vector.shape_cast %45 : vector<16x16x12xbf16> to vector<256x12xbf16>
    %c0_20 = arith.constant 0 : index
    %c0_21 = arith.constant 0 : index
    %c0_22 = arith.constant 0 : index
    %47 = vector.load %arg4[%c0_20, %c0_21, %c0_22] : memref<3x12x128xbf16, #tpu.memory_space<vmem>>, vector<1x12x128xbf16>
    %48 = vector.shape_cast %47 : vector<1x12x128xbf16> to vector<12x128xbf16>
    %cst_23 = arith.constant dense<0.000000e+00> : vector<256x128xf32>
    %49 = tpu.matmul %46, %48, %cst_23 {dimension_numbers = #tpu.dot_dimension_numbers<[1], [0], [0], [1], [0, 0, 1, 1], [], []>} : vector<256x12xbf16>, vector<12x128xbf16>, vector<256x128xf32> -> vector<256x128xf32>
    %50 = vector.extract_strided_slice %40 {offsets = [1, 0, 0], sizes = [16, 18, 4], strides = [1, 1, 1]} : vector<18x18x4xbf16> to vector<16x18x4xbf16>
    %51 = vector.extract_strided_slice %50 {offsets = [0, 0, 0], sizes = [16, 16, 4], strides = [1, 1, 1]} : vector<16x18x4xbf16> to vector<16x16x4xbf16>
    %52 = vector.extract_strided_slice %50 {offsets = [0, 1, 0], sizes = [16, 16, 4], strides = [1, 1, 1]} : vector<16x18x4xbf16> to vector<16x16x4xbf16>
    %53 = vector.extract_strided_slice %50 {offsets = [0, 2, 0], sizes = [16, 16, 4], strides = [1, 1, 1]} : vector<16x18x4xbf16> to vector<16x16x4xbf16>
    %54 = tpu.concatenate %51, %52, %53 in 2 : vector<16x16x4xbf16>, vector<16x16x4xbf16>, vector<16x16x4xbf16> -> vector<16x16x12xbf16>
    %55 = vector.shape_cast %54 : vector<16x16x12xbf16> to vector<256x12xbf16>
    %c1_24 = arith.constant 1 : index
    %c0_25 = arith.constant 0 : index
    %c0_26 = arith.constant 0 : index
    %56 = vector.load %arg4[%c1_24, %c0_25, %c0_26] : memref<3x12x128xbf16, #tpu.memory_space<vmem>>, vector<1x12x128xbf16>
    %57 = vector.shape_cast %56 : vector<1x12x128xbf16> to vector<12x128xbf16>
    %cst_27 = arith.constant dense<0.000000e+00> : vector<256x128xf32>
    %58 = tpu.matmul %55, %57, %cst_27 {dimension_numbers = #tpu.dot_dimension_numbers<[1], [0], [0], [1], [0, 0, 1, 1], [], []>} : vector<256x12xbf16>, vector<12x128xbf16>, vector<256x128xf32> -> vector<256x128xf32>
    %59 = arith.addf %49, %58 : vector<256x128xf32>
    %60 = vector.extract_strided_slice %40 {offsets = [2, 0, 0], sizes = [16, 18, 4], strides = [1, 1, 1]} : vector<18x18x4xbf16> to vector<16x18x4xbf16>
    %61 = vector.extract_strided_slice %60 {offsets = [0, 0, 0], sizes = [16, 16, 4], strides = [1, 1, 1]} : vector<16x18x4xbf16> to vector<16x16x4xbf16>
    %62 = vector.extract_strided_slice %60 {offsets = [0, 1, 0], sizes = [16, 16, 4], strides = [1, 1, 1]} : vector<16x18x4xbf16> to vector<16x16x4xbf16>
    %63 = vector.extract_strided_slice %60 {offsets = [0, 2, 0], sizes = [16, 16, 4], strides = [1, 1, 1]} : vector<16x18x4xbf16> to vector<16x16x4xbf16>
    %64 = tpu.concatenate %61, %62, %63 in 2 : vector<16x16x4xbf16>, vector<16x16x4xbf16>, vector<16x16x4xbf16> -> vector<16x16x12xbf16>
    %65 = vector.shape_cast %64 : vector<16x16x12xbf16> to vector<256x12xbf16>
    %c2_28 = arith.constant 2 : index
    %c0_29 = arith.constant 0 : index
    %c0_30 = arith.constant 0 : index
    %66 = vector.load %arg4[%c2_28, %c0_29, %c0_30] : memref<3x12x128xbf16, #tpu.memory_space<vmem>>, vector<1x12x128xbf16>
    %67 = vector.shape_cast %66 : vector<1x12x128xbf16> to vector<12x128xbf16>
    %cst_31 = arith.constant dense<0.000000e+00> : vector<256x128xf32>
    %68 = tpu.matmul %65, %67, %cst_31 {dimension_numbers = #tpu.dot_dimension_numbers<[1], [0], [0], [1], [0, 0, 1, 1], [], []>} : vector<256x12xbf16>, vector<12x128xbf16>, vector<256x128xf32> -> vector<256x128xf32>
    %69 = arith.addf %59, %68 : vector<256x128xf32>
    %70 = arith.addf %34, %69 : vector<256x128xf32>
    %c0_32 = arith.constant 0 : index
    %c0_33 = arith.constant 0 : index
    %71 = vector.load %arg5[%c0_32, %c0_33] : memref<1x128xf32, #tpu.memory_space<vmem>>, vector<1x128xf32>
    %72 = vector.broadcast %71 : vector<1x128xf32> to vector<256x128xf32>
    %73 = arith.addf %70, %72 : vector<256x128xf32>
    %c0_34 = arith.constant 0 : index
    %c0_35 = arith.constant 0 : index
    %c0_36 = arith.constant 0 : index
    %74 = vector.load %arg6[%c0_34, %c0_35, %c0_36] : memref<1x256x128xf32, #tpu.memory_space<vmem>>, vector<1x256x128xf32>
    %75 = vector.shape_cast %74 : vector<1x256x128xf32> to vector<256x128xf32>
    %76 = vector.shape_cast %73 : vector<256x128xf32> to vector<1x256x128xf32>
    tpu.vector_store %arg6[%c0_34, %c0_35, %c0_36], %76 {strides = array<i32>} : memref<1x256x128xf32, #tpu.memory_space<vmem>>, vector<1x256x128xf32>,
    %cst_37 = arith.constant dense<0.000000e+00> : vector<128xf32>
    %77 = vector.multi_reduction <add>, %73, %cst_37 [0] : vector<256x128xf32> to vector<128xf32>
    %78 = vector.shape_cast %77 : vector<128xf32> to vector<1x128xf32>
    %79 = arith.mulf %73, %73 : vector<256x128xf32>
    %cst_38 = arith.constant dense<0.000000e+00> : vector<128xf32>
    %80 = vector.multi_reduction <add>, %79, %cst_38 [0] : vector<256x128xf32> to vector<128xf32>
    %81 = vector.shape_cast %80 : vector<128xf32> to vector<1x128xf32>
    %82 = tpu.concatenate %78, %81 in 0 : vector<1x128xf32>, vector<1x128xf32> -> vector<2x128xf32>
    %c0_39 = arith.constant 0 : index
    %c0_40 = arith.constant 0 : index
    %c0_41 = arith.constant 0 : index
    %83 = vector.load %arg7[%c0_39, %c0_40, %c0_41] : memref<1x2x128xf32, #tpu.memory_space<vmem>>, vector<1x2x128xf32>
    %84 = vector.shape_cast %83 : vector<1x2x128xf32> to vector<2x128xf32>
    %85 = vector.shape_cast %82 : vector<2x128xf32> to vector<1x2x128xf32>
    tpu.vector_store %arg7[%c0_39, %c0_40, %c0_41], %85 {strides = array<i32>} : memref<1x2x128xf32, #tpu.memory_space<vmem>>, vector<1x2x128xf32>,
    return
  }
  func.func @transform_0(%arg0: i32) -> (i32, i32, i32, i32) {
    %c0_i32 = arith.constant 0 : i32
    %c0_i32_0 = arith.constant 0 : i32
    %c0_i32_1 = arith.constant 0 : i32
    %c0_i32_2 = arith.constant 0 : i32
    return %arg0, %c0_i32, %c0_i32_0, %c0_i32_1 : i32, i32, i32, i32
  }
  func.func @transform_1(%arg0: i32) -> (i32, i32, i32, i32) {
    %c0_i32 = arith.constant 0 : i32
    %c0_i32_0 = arith.constant 0 : i32
    %c0_i32_1 = arith.constant 0 : i32
    %c0_i32_2 = arith.constant 0 : i32
    return %arg0, %c0_i32, %c0_i32_0, %c0_i32_1 : i32, i32, i32, i32
  }
  func.func @transform_2(%arg0: i32) -> (i32, i32, i32) {
    %c0_i32 = arith.constant 0 : i32
    %c0_i32_0 = arith.constant 0 : i32
    %c0_i32_1 = arith.constant 0 : i32
    %c0_i32_2 = arith.constant 0 : i32
    return %c0_i32, %c0_i32_0, %c0_i32_1 : i32, i32, i32
  }
  func.func @transform_3(%arg0: i32) -> (i32, i32, i32) {
    %c0_i32 = arith.constant 0 : i32
    %c0_i32_0 = arith.constant 0 : i32
    %c0_i32_1 = arith.constant 0 : i32
    %c0_i32_2 = arith.constant 0 : i32
    return %c0_i32, %c0_i32_0, %c0_i32_1 : i32, i32, i32
  }
  func.func @transform_4(%arg0: i32) -> (i32, i32) {
    %c0_i32 = arith.constant 0 : i32
    %c0_i32_0 = arith.constant 0 : i32
    %c0_i32_1 = arith.constant 0 : i32
    return %c0_i32, %c0_i32_0 : i32, i32
  }
  func.func @transform_5(%arg0: i32) -> (i32, i32, i32) {
    %c0_i32 = arith.constant 0 : i32
    %c0_i32_0 = arith.constant 0 : i32
    %c0_i32_1 = arith.constant 0 : i32
    return %arg0, %c0_i32, %c0_i32_0 : i32, i32, i32
  }
  func.func @transform_6(%arg0: i32) -> (i32, i32, i32) {
    %c0_i32 = arith.constant 0 : i32
    %c0_i32_0 = arith.constant 0 : i32
    %c0_i32_1 = arith.constant 0 : i32
    return %arg0, %c0_i32, %c0_i32_0 : i32, i32, i32
  }
}

module attributes {stable_mosaic.version = 11 : i64} {
  func.func @_bnrelu_kernel(%arg0: i32, %arg1: memref<1x256x128xf32, #tpu.memory_space<vmem>>, %arg2: memref<1x128xf32, #tpu.memory_space<vmem>>, %arg3: memref<1x128xf32, #tpu.memory_space<vmem>>, %arg4: memref<1x256x128xf32, #tpu.memory_space<vmem>>) attributes {dimension_semantics = [#tpu.dimension_semantics<parallel>], iteration_bounds = array<i64: 2>, scalar_prefetch = 0 : i64, scratch_operands = 0 : i64, tpu.core_type = #tpu.core_type<tc>, window_params = [{transform_indices = @transform_0, window_bounds = array<i64: 1, 256, 128>}, {pipeline_mode = #tpu.pipeline_mode<synchronous>, transform_indices = @transform_1, window_bounds = array<i64: 1, 128>}, {pipeline_mode = #tpu.pipeline_mode<synchronous>, transform_indices = @transform_2, window_bounds = array<i64: 1, 128>}, {transform_indices = @transform_3, window_bounds = array<i64: 1, 256, 128>}]} {
    %c0 = arith.constant 0 : index
    %c0_0 = arith.constant 0 : index
    %c0_1 = arith.constant 0 : index
    %0 = vector.load %arg1[%c0, %c0_0, %c0_1] : memref<1x256x128xf32, #tpu.memory_space<vmem>>, vector<1x256x128xf32>
    %1 = vector.shape_cast %0 : vector<1x256x128xf32> to vector<256x128xf32>
    %c0_2 = arith.constant 0 : index
    %c0_3 = arith.constant 0 : index
    %2 = vector.load %arg2[%c0_2, %c0_3] : memref<1x128xf32, #tpu.memory_space<vmem>>, vector<1x128xf32>
    %3 = vector.broadcast %2 : vector<1x128xf32> to vector<256x128xf32>
    %4 = arith.mulf %1, %3 : vector<256x128xf32>
    %c0_4 = arith.constant 0 : index
    %c0_5 = arith.constant 0 : index
    %5 = vector.load %arg3[%c0_4, %c0_5] : memref<1x128xf32, #tpu.memory_space<vmem>>, vector<1x128xf32>
    %6 = vector.broadcast %5 : vector<1x128xf32> to vector<256x128xf32>
    %7 = arith.addf %4, %6 : vector<256x128xf32>
    %cst = arith.constant 0.000000e+00 : f32
    %8 = vector.broadcast %cst : f32 to vector<256x128xf32>
    %9 = arith.maximumf %7, %8 : vector<256x128xf32>
    %c0_6 = arith.constant 0 : index
    %c0_7 = arith.constant 0 : index
    %c0_8 = arith.constant 0 : index
    %10 = vector.load %arg4[%c0_6, %c0_7, %c0_8] : memref<1x256x128xf32, #tpu.memory_space<vmem>>, vector<1x256x128xf32>
    %11 = vector.shape_cast %10 : vector<1x256x128xf32> to vector<256x128xf32>
    %12 = vector.shape_cast %9 : vector<256x128xf32> to vector<1x256x128xf32>
    tpu.vector_store %arg4[%c0_6, %c0_7, %c0_8], %12 {strides = array<i32>} : memref<1x256x128xf32, #tpu.memory_space<vmem>>, vector<1x256x128xf32>,
    return
  }
  func.func @transform_0(%arg0: i32) -> (i32, i32, i32) {
    %c0_i32 = arith.constant 0 : i32
    %c0_i32_0 = arith.constant 0 : i32
    %c0_i32_1 = arith.constant 0 : i32
    return %arg0, %c0_i32, %c0_i32_0 : i32, i32, i32
  }
  func.func @transform_1(%arg0: i32) -> (i32, i32) {
    %c0_i32 = arith.constant 0 : i32
    %c0_i32_0 = arith.constant 0 : i32
    %c0_i32_1 = arith.constant 0 : i32
    return %c0_i32, %c0_i32_0 : i32, i32
  }
  func.func @transform_2(%arg0: i32) -> (i32, i32) {
    %c0_i32 = arith.constant 0 : i32
    %c0_i32_0 = arith.constant 0 : i32
    %c0_i32_1 = arith.constant 0 : i32
    return %c0_i32, %c0_i32_0 : i32, i32
  }
  func.func @transform_3(%arg0: i32) -> (i32, i32, i32) {
    %c0_i32 = arith.constant 0 : i32
    %c0_i32_0 = arith.constant 0 : i32
    %c0_i32_1 = arith.constant 0 : i32
    return %arg0, %c0_i32, %c0_i32_0 : i32, i32, i32
  }
}

module attributes {stable_mosaic.version = 11 : i64} {
  func.func @_bnrelu_conv2_stats_kernel(%arg0: i32, %arg1: memref<1x256x128xf32, #tpu.memory_space<vmem>>, %arg2: memref<1x128xf32, #tpu.memory_space<vmem>>, %arg3: memref<1x128xf32, #tpu.memory_space<vmem>>, %arg4: memref<3x384x128xbf16, #tpu.memory_space<vmem>>, %arg5: memref<1x128xf32, #tpu.memory_space<vmem>>, %arg6: memref<1x256x128xf32, #tpu.memory_space<vmem>>, %arg7: memref<1x2x128xf32, #tpu.memory_space<vmem>>) attributes {dimension_semantics = [#tpu.dimension_semantics<parallel>], iteration_bounds = array<i64: 2>, scalar_prefetch = 0 : i64, scratch_operands = 0 : i64, tpu.core_type = #tpu.core_type<tc>, window_params = [{transform_indices = @transform_0, window_bounds = array<i64: 1, 256, 128>}, {pipeline_mode = #tpu.pipeline_mode<synchronous>, transform_indices = @transform_1, window_bounds = array<i64: 1, 128>}, {pipeline_mode = #tpu.pipeline_mode<synchronous>, transform_indices = @transform_2, window_bounds = array<i64: 1, 128>}, {pipeline_mode = #tpu.pipeline_mode<synchronous>, transform_indices = @transform_3, window_bounds = array<i64: 3, 384, 128>}, {pipeline_mode = #tpu.pipeline_mode<synchronous>, transform_indices = @transform_4, window_bounds = array<i64: 1, 128>}, {transform_indices = @transform_5, window_bounds = array<i64: 1, 256, 128>}, {transform_indices = @transform_6, window_bounds = array<i64: 1, 2, 128>}]} {
    %c0 = arith.constant 0 : index
    %c0_0 = arith.constant 0 : index
    %c0_1 = arith.constant 0 : index
    %0 = vector.load %arg1[%c0, %c0_0, %c0_1] : memref<1x256x128xf32, #tpu.memory_space<vmem>>, vector<1x256x128xf32>
    %1 = vector.shape_cast %0 : vector<1x256x128xf32> to vector<256x128xf32>
    %c0_2 = arith.constant 0 : index
    %c0_3 = arith.constant 0 : index
    %2 = vector.load %arg2[%c0_2, %c0_3] : memref<1x128xf32, #tpu.memory_space<vmem>>, vector<1x128xf32>
    %3 = vector.broadcast %2 : vector<1x128xf32> to vector<256x128xf32>
    %4 = arith.mulf %1, %3 : vector<256x128xf32>
    %c0_4 = arith.constant 0 : index
    %c0_5 = arith.constant 0 : index
    %5 = vector.load %arg3[%c0_4, %c0_5] : memref<1x128xf32, #tpu.memory_space<vmem>>, vector<1x128xf32>
    %6 = vector.broadcast %5 : vector<1x128xf32> to vector<256x128xf32>
    %7 = arith.addf %4, %6 : vector<256x128xf32>
    %cst = arith.constant 0.000000e+00 : f32
    %8 = vector.broadcast %cst : f32 to vector<256x128xf32>
    %9 = arith.maximumf %7, %8 : vector<256x128xf32>
    %10 = vector.shape_cast %9 : vector<256x128xf32> to vector<16x16x128xf32>
    %11 = arith.truncf %10 : vector<16x16x128xf32> to vector<16x16x128xbf16>
    %cst_6 = arith.constant 0.000000e+00 : bf16
    %12 = vector.broadcast %cst_6 : bf16 to vector<16x1x128xbf16>
    %13 = tpu.concatenate %12, %11, %12 in 1 : vector<16x1x128xbf16>, vector<16x16x128xbf16>, vector<16x1x128xbf16> -> vector<16x18x128xbf16>
    %cst_7 = arith.constant 0.000000e+00 : bf16
    %14 = vector.broadcast %cst_7 : bf16 to vector<1x18x128xbf16>
    %15 = tpu.concatenate %14, %13, %14 in 0 : vector<1x18x128xbf16>, vector<16x18x128xbf16>, vector<1x18x128xbf16> -> vector<18x18x128xbf16>
    %16 = vector.extract_strided_slice %15 {offsets = [0, 0, 0], sizes = [16, 18, 128], strides = [1, 1, 1]} : vector<18x18x128xbf16> to vector<16x18x128xbf16>
    %17 = vector.extract_strided_slice %16 {offsets = [0, 0, 0], sizes = [16, 16, 128], strides = [1, 1, 1]} : vector<16x18x128xbf16> to vector<16x16x128xbf16>
    %18 = vector.extract_strided_slice %16 {offsets = [0, 1, 0], sizes = [16, 16, 128], strides = [1, 1, 1]} : vector<16x18x128xbf16> to vector<16x16x128xbf16>
    %19 = vector.extract_strided_slice %16 {offsets = [0, 2, 0], sizes = [16, 16, 128], strides = [1, 1, 1]} : vector<16x18x128xbf16> to vector<16x16x128xbf16>
    %20 = tpu.concatenate %17, %18, %19 in 2 : vector<16x16x128xbf16>, vector<16x16x128xbf16>, vector<16x16x128xbf16> -> vector<16x16x384xbf16>
    %21 = vector.shape_cast %20 : vector<16x16x384xbf16> to vector<256x384xbf16>
    %c0_8 = arith.constant 0 : index
    %c0_9 = arith.constant 0 : index
    %c0_10 = arith.constant 0 : index
    %22 = vector.load %arg4[%c0_8, %c0_9, %c0_10] : memref<3x384x128xbf16, #tpu.memory_space<vmem>>, vector<1x384x128xbf16>
    %23 = vector.shape_cast %22 : vector<1x384x128xbf16> to vector<384x128xbf16>
    %cst_11 = arith.constant dense<0.000000e+00> : vector<256x128xf32>
    %24 = tpu.matmul %21, %23, %cst_11 {dimension_numbers = #tpu.dot_dimension_numbers<[1], [0], [0], [1], [0, 0, 1, 1], [], []>} : vector<256x384xbf16>, vector<384x128xbf16>, vector<256x128xf32> -> vector<256x128xf32>
    %25 = vector.extract_strided_slice %15 {offsets = [1, 0, 0], sizes = [16, 18, 128], strides = [1, 1, 1]} : vector<18x18x128xbf16> to vector<16x18x128xbf16>
    %26 = vector.extract_strided_slice %25 {offsets = [0, 0, 0], sizes = [16, 16, 128], strides = [1, 1, 1]} : vector<16x18x128xbf16> to vector<16x16x128xbf16>
    %27 = vector.extract_strided_slice %25 {offsets = [0, 1, 0], sizes = [16, 16, 128], strides = [1, 1, 1]} : vector<16x18x128xbf16> to vector<16x16x128xbf16>
    %28 = vector.extract_strided_slice %25 {offsets = [0, 2, 0], sizes = [16, 16, 128], strides = [1, 1, 1]} : vector<16x18x128xbf16> to vector<16x16x128xbf16>
    %29 = tpu.concatenate %26, %27, %28 in 2 : vector<16x16x128xbf16>, vector<16x16x128xbf16>, vector<16x16x128xbf16> -> vector<16x16x384xbf16>
    %30 = vector.shape_cast %29 : vector<16x16x384xbf16> to vector<256x384xbf16>
    %c1 = arith.constant 1 : index
    %c0_12 = arith.constant 0 : index
    %c0_13 = arith.constant 0 : index
    %31 = vector.load %arg4[%c1, %c0_12, %c0_13] : memref<3x384x128xbf16, #tpu.memory_space<vmem>>, vector<1x384x128xbf16>
    %32 = vector.shape_cast %31 : vector<1x384x128xbf16> to vector<384x128xbf16>
    %cst_14 = arith.constant dense<0.000000e+00> : vector<256x128xf32>
    %33 = tpu.matmul %30, %32, %cst_14 {dimension_numbers = #tpu.dot_dimension_numbers<[1], [0], [0], [1], [0, 0, 1, 1], [], []>} : vector<256x384xbf16>, vector<384x128xbf16>, vector<256x128xf32> -> vector<256x128xf32>
    %34 = arith.addf %24, %33 : vector<256x128xf32>
    %35 = vector.extract_strided_slice %15 {offsets = [2, 0, 0], sizes = [16, 18, 128], strides = [1, 1, 1]} : vector<18x18x128xbf16> to vector<16x18x128xbf16>
    %36 = vector.extract_strided_slice %35 {offsets = [0, 0, 0], sizes = [16, 16, 128], strides = [1, 1, 1]} : vector<16x18x128xbf16> to vector<16x16x128xbf16>
    %37 = vector.extract_strided_slice %35 {offsets = [0, 1, 0], sizes = [16, 16, 128], strides = [1, 1, 1]} : vector<16x18x128xbf16> to vector<16x16x128xbf16>
    %38 = vector.extract_strided_slice %35 {offsets = [0, 2, 0], sizes = [16, 16, 128], strides = [1, 1, 1]} : vector<16x18x128xbf16> to vector<16x16x128xbf16>
    %39 = tpu.concatenate %36, %37, %38 in 2 : vector<16x16x128xbf16>, vector<16x16x128xbf16>, vector<16x16x128xbf16> -> vector<16x16x384xbf16>
    %40 = vector.shape_cast %39 : vector<16x16x384xbf16> to vector<256x384xbf16>
    %c2 = arith.constant 2 : index
    %c0_15 = arith.constant 0 : index
    %c0_16 = arith.constant 0 : index
    %41 = vector.load %arg4[%c2, %c0_15, %c0_16] : memref<3x384x128xbf16, #tpu.memory_space<vmem>>, vector<1x384x128xbf16>
    %42 = vector.shape_cast %41 : vector<1x384x128xbf16> to vector<384x128xbf16>
    %cst_17 = arith.constant dense<0.000000e+00> : vector<256x128xf32>
    %43 = tpu.matmul %40, %42, %cst_17 {dimension_numbers = #tpu.dot_dimension_numbers<[1], [0], [0], [1], [0, 0, 1, 1], [], []>} : vector<256x384xbf16>, vector<384x128xbf16>, vector<256x128xf32> -> vector<256x128xf32>
    %44 = arith.addf %34, %43 : vector<256x128xf32>
    %c0_18 = arith.constant 0 : index
    %c0_19 = arith.constant 0 : index
    %45 = vector.load %arg5[%c0_18, %c0_19] : memref<1x128xf32, #tpu.memory_space<vmem>>, vector<1x128xf32>
    %46 = vector.broadcast %45 : vector<1x128xf32> to vector<256x128xf32>
    %47 = arith.addf %44, %46 : vector<256x128xf32>
    %c0_20 = arith.constant 0 : index
    %c0_21 = arith.constant 0 : index
    %c0_22 = arith.constant 0 : index
    %48 = vector.load %arg6[%c0_20, %c0_21, %c0_22] : memref<1x256x128xf32, #tpu.memory_space<vmem>>, vector<1x256x128xf32>
    %49 = vector.shape_cast %48 : vector<1x256x128xf32> to vector<256x128xf32>
    %50 = vector.shape_cast %47 : vector<256x128xf32> to vector<1x256x128xf32>
    tpu.vector_store %arg6[%c0_20, %c0_21, %c0_22], %50 {strides = array<i32>} : memref<1x256x128xf32, #tpu.memory_space<vmem>>, vector<1x256x128xf32>,
    %cst_23 = arith.constant dense<0.000000e+00> : vector<128xf32>
    %51 = vector.multi_reduction <add>, %47, %cst_23 [0] : vector<256x128xf32> to vector<128xf32>
    %52 = vector.shape_cast %51 : vector<128xf32> to vector<1x128xf32>
    %53 = arith.mulf %47, %47 : vector<256x128xf32>
    %cst_24 = arith.constant dense<0.000000e+00> : vector<128xf32>
    %54 = vector.multi_reduction <add>, %53, %cst_24 [0] : vector<256x128xf32> to vector<128xf32>
    %55 = vector.shape_cast %54 : vector<128xf32> to vector<1x128xf32>
    %56 = tpu.concatenate %52, %55 in 0 : vector<1x128xf32>, vector<1x128xf32> -> vector<2x128xf32>
    %c0_25 = arith.constant 0 : index
    %c0_26 = arith.constant 0 : index
    %c0_27 = arith.constant 0 : index
    %57 = vector.load %arg7[%c0_25, %c0_26, %c0_27] : memref<1x2x128xf32, #tpu.memory_space<vmem>>, vector<1x2x128xf32>
    %58 = vector.shape_cast %57 : vector<1x2x128xf32> to vector<2x128xf32>
    %59 = vector.shape_cast %56 : vector<2x128xf32> to vector<1x2x128xf32>
    tpu.vector_store %arg7[%c0_25, %c0_26, %c0_27], %59 {strides = array<i32>} : memref<1x2x128xf32, #tpu.memory_space<vmem>>, vector<1x2x128xf32>,
    return
  }
  func.func @transform_0(%arg0: i32) -> (i32, i32, i32) {
    %c0_i32 = arith.constant 0 : i32
    %c0_i32_0 = arith.constant 0 : i32
    %c0_i32_1 = arith.constant 0 : i32
    return %arg0, %c0_i32, %c0_i32_0 : i32, i32, i32
  }
  func.func @transform_1(%arg0: i32) -> (i32, i32) {
    %c0_i32 = arith.constant 0 : i32
    %c0_i32_0 = arith.constant 0 : i32
    %c0_i32_1 = arith.constant 0 : i32
    return %c0_i32, %c0_i32_0 : i32, i32
  }
  func.func @transform_2(%arg0: i32) -> (i32, i32) {
    %c0_i32 = arith.constant 0 : i32
    %c0_i32_0 = arith.constant 0 : i32
    %c0_i32_1 = arith.constant 0 : i32
    return %c0_i32, %c0_i32_0 : i32, i32
  }
  func.func @transform_3(%arg0: i32) -> (i32, i32, i32) {
    %c0_i32 = arith.constant 0 : i32
    %c0_i32_0 = arith.constant 0 : i32
    %c0_i32_1 = arith.constant 0 : i32
    %c0_i32_2 = arith.constant 0 : i32
    return %c0_i32, %c0_i32_0, %c0_i32_1 : i32, i32, i32
  }
  func.func @transform_4(%arg0: i32) -> (i32, i32) {
    %c0_i32 = arith.constant 0 : i32
    %c0_i32_0 = arith.constant 0 : i32
    %c0_i32_1 = arith.constant 0 : i32
    return %c0_i32, %c0_i32_0 : i32, i32
  }
  func.func @transform_5(%arg0: i32) -> (i32, i32, i32) {
    %c0_i32 = arith.constant 0 : i32
    %c0_i32_0 = arith.constant 0 : i32
    %c0_i32_1 = arith.constant 0 : i32
    return %arg0, %c0_i32, %c0_i32_0 : i32, i32, i32
  }
  func.func @transform_6(%arg0: i32) -> (i32, i32, i32) {
    %c0_i32 = arith.constant 0 : i32
    %c0_i32_0 = arith.constant 0 : i32
    %c0_i32_1 = arith.constant 0 : i32
    return %arg0, %c0_i32, %c0_i32_0 : i32, i32, i32
  }
}

</mosaic_0001>

<bundles_post_ra>
// kernel: up_forward.5
= control target key start
LH: loop header
LB: loop body
LE: loop exit
PB: predicated region body
PF: predicated region fallthrough
CT: control target
= control target key end

     0   :  { %s451_s12 = smov 0   ;;  %s610_s0 = inlined_call_operand.vmem [shape: f32[2,256,128], index: 0, kind: input, shape index: {}]   ;;  %s611_s1 = inlined_call_operand.vmem [shape: f32[1,128], index: 1, kind: input, shape index: {}]   ;;  %s612_s2 = inlined_call_operand.vmem [shape: f32[1,128], index: 2, kind: input, shape index: {}]   ;;  %s613_s3 = inlined_call_operand.vmem [shape: f32[2,256,128], index: 3, kind: output, shape index: {}]  }
   0x1 LB: > { %s400_s13 = sadd.s32 4294967295, %s429_s12   ;;  %p404_p0 = scmp.ge.s32.totalorder %s429_s12, 1  ;;  %s429_s12 = sphi %s451_s12, %s13_s12  }
   0x2   : > { %p137_p1 = scmp.lt.s32.totalorder %s429_s12, 3 }
   0x4   : > { %p138_p2 = pnand %p404_p0, %p137_p1 }
   0x5   : > { %p161_p3 = scmp.lt.s32.totalorder (!%p138_p2), %s400_s13, 1 }
   0x6   : > { %141 = sbr.rel (%p138_p2) target bundleno = 44 (0x2c), region = 32 }
   0xb   : > { %s615_s13 = smov (!%p161_p3, %s400_s13), 1  ;;  %v462_v0 = vld [vmem:[%s611_s1] ss:$0 sm:$0xff] }
   0xc   : > { %s413_s14 = sshll.u32 %s615_s13, 8  ;;  %v472_v1 = vld [vmem:[%s612_s2] ss:$0 sm:$0xff] }
   0xd   : > { %s467_s19 = scalar_lea.vmem %s610_s0, %s413_s14  ;;  %s495_s24 = scalar_lea.vmem %s613_s3, %s413_s14 }
   0xe   : > { %v171_v2 = vld [vmem:[%s467_s19] sm:$0xff]  ;;  %v172_v3 = vld [vmem:[%s467_s19 + $0x8] sm:$0xff]  ;;  %v173_v4 = vld [vmem:[%s467_s19 + $0x10] sm:$0xff] }
   0xf   : > { %v210_v5 = vmul.f32 %v462_v0, %v171_v2  ;;  %v211_v6 = vmul.f32 %v462_v0, %v172_v3  ;;  %v212_v7 = vmul.f32 %v462_v0, %v173_v4  ;;  %v174_v8 = vld [vmem:[%s467_s19 + $0x18] sm:$0xff]  ;;  %v175_v9 = vld [vmem:[%s467_s19 + $0x20] sm:$0xff]  ;;  %v176_v10 = vld [vmem:[%s467_s19 + $0x28] sm:$0xff] }
  0x10   : > { %v213_v11 = vmul.f32 %v462_v0, %v174_v8  ;;  %v214_v12 = vmul.f32 %v462_v0, %v175_v9  ;;  %v215_v13 = vmul.f32 %v462_v0, %v176_v10  ;;  %v177_v14 = vld [vmem:[%s467_s19 + $0x30] sm:$0xff]  ;;  %v178_v15 = vld [vmem:[%s467_s19 + $0x38] sm:$0xff]  ;;  %v179_v24 = vld [vmem:[%s467_s19 + $0x40] sm:$0xff] }
  0x11   : > { %v249_v16 = vadd.f32 %v472_v1, %v210_v5  ;;  %v250_v17 = vadd.f32 %v472_v1, %v211_v6  ;;  %v251_v18 = vadd.f32 %v472_v1, %v212_v7  ;;  %v216_v19 = vmul.f32 %v462_v0, %v177_v14  ;;  %v180_v25 = vld [vmem:[%s467_s19 + $0x48] sm:$0xff]  ;;  %v181_v26 = vld [vmem:[%s467_s19 + $0x50] sm:$0xff]  ;;  %v182_v31 = vld [vmem:[%s467_s19 + $0x58] sm:$0xff] }
  0x12   : > { %v252_v20 = vadd.f32 %v472_v1, %v213_v11  ;;  %v253_v21 = vadd.f32 %v472_v1, %v214_v12  ;;  %v254_v22 = vadd.f32 %v472_v1, %v215_v13  ;;  %v217_v23 = vmul.f32 %v462_v0, %v178_v15  ;;  %v183_v32 = vld [vmem:[%s467_s19 + $0x60] sm:$0xff]  ;;  %v184_v33 = vld [vmem:[%s467_s19 + $0x68] sm:$0xff]  ;;  %v185_v38 = vld [vmem:[%s467_s19 + $0x70] sm:$0xff] }
  0x13   : > { %v281_v27 = vmax.f32 %v249_v16, 0.0  ;;  %v282_v28 = vmax.f32 %v250_v17, 0.0  ;;  %v283_v29 = vmax.f32 %v251_v18, 0.0  ;;  %v255_v30 = vadd.f32 %v472_v1, %v216_v19  ;;  %v186_v43 = vld [vmem:[%s467_s19 + $0x78] sm:$0xff]  ;;  %v187_v56 = vld [vmem:[%s467_s19 + $0x80] sm:$0xff]  ;;  %v188_v57 = vld [vmem:[%s467_s19 + $0x88] sm:$0xff] }
  0x14   : > { %v284_v34 = vmax.f32 %v252_v20, 0.0  ;;  %v285_v35 = vmax.f32 %v253_v21, 0.0  ;;  %v286_v36 = vmax.f32 %v254_v22, 0.0  ;;  %v256_v37 = vadd.f32 %v472_v1, %v217_v23  ;;  %v189_v58 = vld [vmem:[%s467_s19 + $0x90] sm:$0xff]  ;;  %v190_v63 = vld [vmem:[%s467_s19 + $0x98] sm:$0xff]  ;;  %v191_v2 = vld [vmem:[%s467_s19 + $0xa0] sm:$0xff] }
  0x15   : > { %313 = vst [vmem:[%s495_s24] sm:$0xff] %v281_v27  ;;  %314 = vst [vmem:[%s495_s24 + $0x8] sm:$0xff] %v282_v28  ;;  %v287_v39 = vmax.f32 %v255_v30, 0.0  ;;  %v218_v40 = vmul.f32 %v462_v0, %v179_v24  ;;  %v219_v41 = vmul.f32 %v462_v0, %v180_v25  ;;  %v220_v42 = vmul.f32 %v462_v0, %v181_v26  ;;  %v192_v3 = vld [vmem:[%s467_s19 + $0xa8] sm:$0xff]  ;;  %v193_v8 = vld [vmem:[%s467_s19 + $0xb0] sm:$0xff] }
  0x16   : > { %315 = vst [vmem:[%s495_s24 + $0x10] sm:$0xff] %v283_v29  ;;  %316 = vst [vmem:[%s495_s24 + $0x18] sm:$0xff] %v284_v34  ;;  %v288_v44 = vmax.f32 %v256_v37, 0.0  ;;  %v221_v45 = vmul.f32 %v462_v0, %v182_v31  ;;  %v222_v46 = vmul.f32 %v462_v0, %v183_v32  ;;  %v223_v47 = vmul.f32 %v462_v0, %v184_v33  ;;  %v194_v13 = vld [vmem:[%s467_s19 + $0xb8] sm:$0xff]  ;;  %v195_v26 = vld [vmem:[%s467_s19 + $0xc0] sm:$0xff] }
  0x17   : > { %317 = vst [vmem:[%s495_s24 + $0x20] sm:$0xff] %v285_v35  ;;  %318 = vst [vmem:[%s495_s24 + $0x28] sm:$0xff] %v286_v36  ;;  %v257_v48 = vadd.f32 %v472_v1, %v218_v40  ;;  %v258_v49 = vadd.f32 %v472_v1, %v219_v41  ;;  %v259_v50 = vadd.f32 %v472_v1, %v220_v42  ;;  %v196_v27 = vld [vmem:[%s467_s19 + $0xc8] sm:$0xff]  ;;  %v197_v28 = vld [vmem:[%s467_s19 + $0xd0] sm:$0xff] }
  0x18   : > { %319 = vst [vmem:[%s495_s24 + $0x30] sm:$0xff] %v287_v39  ;;  %v224_v51 = vmul.f32 %v462_v0, %v185_v38  ;;  %320 = vst [vmem:[%s495_s24 + $0x38] sm:$0xff] %v288_v44  ;;  %v260_v52 = vadd.f32 %v472_v1, %v221_v45  ;;  %v261_v53 = vadd.f32 %v472_v1, %v222_v46  ;;  %v198_v33 = vld [vmem:[%s467_s19 + $0xd8] sm:$0xff]  ;;  %v199_v34 = vld [vmem:[%s467_s19 + $0xe0] sm:$0xff] }
  0x19   : > { %v262_v54 = vadd.f32 %v472_v1, %v223_v47  ;;  %v225_v55 = vmul.f32 %v462_v0, %v186_v43  ;;  %v289_v59 = vmax.f32 %v257_v48, 0.0  ;;  %v290_v60 = vmax.f32 %v258_v49, 0.0  ;;  %v200_v35 = vld [vmem:[%s467_s19 + $0xe8] sm:$0xff]  ;;  %v201_v40 = vld [vmem:[%s467_s19 + $0xf0] sm:$0xff]  ;;  %v202_v45 = vld [vmem:[%s467_s19 + $0xf8] sm:$0xff] }
  0x1a   : > { %v291_v61 = vmax.f32 %v259_v50, 0.0  ;;  %v263_v62 = vadd.f32 %v472_v1, %v224_v51  ;;  %v292_v4 = vmax.f32 %v260_v52, 0.0  ;;  %v293_v5 = vmax.f32 %v261_v53, 0.0 }
  0x1b   : > { %v294_v6 = vmax.f32 %v262_v54, 0.0  ;;  %v264_v7 = vadd.f32 %v472_v1, %v225_v55  ;;  %321 = vst [vmem:[%s495_s24 + $0x40] sm:$0xff] %v289_v59  ;;  %322 = vst [vmem:[%s495_s24 + $0x48] sm:$0xff] %v290_v60  ;;  %v226_v10 = vmul.f32 %v462_v0, %v187_v56  ;;  %v227_v11 = vmul.f32 %v462_v0, %v188_v57 }
  0x1c   : > { %323 = vst [vmem:[%s495_s24 + $0x50] sm:$0xff] %v291_v61  ;;  %v295_v9 = vmax.f32 %v263_v62, 0.0  ;;  %v228_v12 = vmul.f32 %v462_v0, %v189_v58  ;;  %324 = vst [vmem:[%s495_s24 + $0x58] sm:$0xff] %v292_v4  ;;  %v229_v15 = vmul.f32 %v462_v0, %v190_v63  ;;  %v230_v16 = vmul.f32 %v462_v0, %v191_v2 }
  0x1d   : > { %325 = vst [vmem:[%s495_s24 + $0x60] sm:$0xff] %v293_v5  ;;  %326 = vst [vmem:[%s495_s24 + $0x68] sm:$0xff] %v294_v6  ;;  %v296_v14 = vmax.f32 %v264_v7, 0.0  ;;  %v231_v17 = vmul.f32 %v462_v0, %v192_v3  ;;  %v265_v18 = vadd.f32 %v472_v1, %v226_v10  ;;  %v266_v19 = vadd.f32 %v472_v1, %v227_v11 }
  0x1e   : > { %327 = vst [vmem:[%s495_s24 + $0x70] sm:$0xff] %v295_v9  ;;  %v267_v20 = vadd.f32 %v472_v1, %v228_v12  ;;  %v232_v21 = vmul.f32 %v462_v0, %v193_v8  ;;  %v268_v22 = vadd.f32 %v472_v1, %v229_v15  ;;  %v269_v23 = vadd.f32 %v472_v1, %v230_v16 }
  0x1f   : > { %328 = vst [vmem:[%s495_s24 + $0x78] sm:$0xff] %v296_v14  ;;  %v270_v24 = vadd.f32 %v472_v1, %v231_v17  ;;  %v233_v25 = vmul.f32 %v462_v0, %v194_v13  ;;  %v297_v29 = vmax.f32 %v265_v18, 0.0  ;;  %v298_v30 = vmax.f32 %v266_v19, 0.0 }
  0x20   : > { %v299_v31 = vmax.f32 %v267_v20, 0.0  ;;  %v271_v32 = vadd.f32 %v472_v1, %v232_v21  ;;  %v300_v36 = vmax.f32 %v268_v22, 0.0  ;;  %v301_v37 = vmax.f32 %v269_v23, 0.0 }
  0x21   : > { %v302_v38 = vmax.f32 %v270_v24, 0.0  ;;  %v272_v39 = vadd.f32 %v472_v1, %v233_v25  ;;  %329 = vst [vmem:[%s495_s24 + $0x80] sm:$0xff] %v297_v29  ;;  %330 = vst [vmem:[%s495_s24 + $0x88] sm:$0xff] %v298_v30  ;;  %v234_v42 = vmul.f32 %v462_v0, %v195_v26  ;;  %v235_v43 = vmul.f32 %v462_v0, %v196_v27 }
  0x22   : > { %331 = vst [vmem:[%s495_s24 + $0x90] sm:$0xff] %v299_v31  ;;  %v303_v41 = vmax.f32 %v271_v32, 0.0  ;;  %v236_v44 = vmul.f32 %v462_v0, %v197_v28  ;;  %332 = vst [vmem:[%s495_s24 + $0x98] sm:$0xff] %v300_v36  ;;  %v237_v47 = vmul.f32 %v462_v0, %v198_v33  ;;  %v238_v48 = vmul.f32 %v462_v0, %v199_v34 }
  0x23   : > { %333 = vst [vmem:[%s495_s24 + $0xa0] sm:$0xff] %v301_v37  ;;  %334 = vst [vmem:[%s495_s24 + $0xa8] sm:$0xff] %v302_v38  ;;  %v304_v46 = vmax.f32 %v272_v39, 0.0  ;;  %v239_v49 = vmul.f32 %v462_v0, %v200_v35  ;;  %v273_v50 = vadd.f32 %v472_v1, %v234_v42  ;;  %v274_v51 = vadd.f32 %v472_v1, %v235_v43 }
  0x24   : > { %335 = vst [vmem:[%s495_s24 + $0xb0] sm:$0xff] %v303_v41  ;;  %v275_v52 = vadd.f32 %v472_v1, %v236_v44  ;;  %v240_v53 = vmul.f32 %v462_v0, %v201_v40  ;;  %v276_v54 = vadd.f32 %v472_v1, %v237_v47  ;;  %v277_v55 = vadd.f32 %v472_v1, %v238_v48 }
  0x25   : > { %336 = vst [vmem:[%s495_s24 + $0xb8] sm:$0xff] %v304_v46  ;;  %v278_v56 = vadd.f32 %v472_v1, %v239_v49  ;;  %v241_v57 = vmul.f32 %v462_v0, %v202_v45  ;;  %v305_v58 = vmax.f32 %v273_v50, 0.0  ;;  %v306_v59 = vmax.f32 %v274_v51, 0.0 }
  0x26   : > { %v307_v60 = vmax.f32 %v275_v52, 0.0  ;;  %v279_v61 = vadd.f32 %v472_v1, %v240_v53  ;;  %v308_v62 = vmax.f32 %v276_v54, 0.0  ;;  %v309_v63 = vmax.f32 %v277_v55, 0.0 }
  0x27   : > { %v310_v2 = vmax.f32 %v278_v56, 0.0  ;;  %v280_v3 = vadd.f32 %v472_v1, %v241_v57  ;;  %337 = vst [vmem:[%s495_s24 + $0xc0] sm:$0xff] %v305_v58  ;;  %338 = vst [vmem:[%s495_s24 + $0xc8] sm:$0xff] %v306_v59 }
  0x28   : > { %339 = vst [vmem:[%s495_s24 + $0xd0] sm:$0xff] %v307_v60  ;;  %v311_v4 = vmax.f32 %v279_v61, 0.0  ;;  %340 = vst [vmem:[%s495_s24 + $0xd8] sm:$0xff] %v308_v62 }
  0x29   : > { %341 = vst [vmem:[%s495_s24 + $0xe0] sm:$0xff] %v309_v63  ;;  %342 = vst [vmem:[%s495_s24 + $0xe8] sm:$0xff] %v310_v2  ;;  %v312_v0 = vmax.f32 %v280_v3, 0.0 }
  0x2a   : > { %343 = vst [vmem:[%s495_s24 + $0xf0] sm:$0xff] %v311_v4 }
  0x2b   : > { %344 = vst [vmem:[%s495_s24 + $0xf8] sm:$0xff] %v312_v0 }
  0x2c PF: > { %s13_s12 = sadd.s32 1, %s429_s12  }
  0x2d   : > { %p10_p4 = scmp.ge.s32.totalorder %s13_s12, 4  }
  0x2f   :  { %12 = sbr.rel (!%p10_p4) target bundleno = 1 (0x1), region = 62 }

// kernel: up_forward.4
= control target key start
LH: loop header
LB: loop body
LE: loop exit
PB: predicated region body
PF: predicated region fallthrough
CT: control target
= control target key end

     0   :  { %s3642_s21 = smov 0   ;;  %s4956_s0 = inlined_call_operand.vmem [shape: f32[2,256,128], index: 0, kind: input, shape index: {}]   ;;  %s4957_s1 = inlined_call_operand.vmem [shape: f32[1,128], index: 1, kind: input, shape index: {}]   ;;  %s4958_s2 = inlined_call_operand.vmem [shape: f32[1,128], index: 2, kind: input, shape index: {}]   ;;  %s4959_s3 = inlined_call_operand.vmem [shape: bf16[3,384,128], index: 3, kind: input, shape index: {}]   ;;  %s4960_s4 = inlined_call_operand.vmem [shape: f32[1,128], index: 4, kind: input, shape index: {}]   ;;  %s4961_s5 = inlined_call_operand.vmem [shape: f32[2,256,128], index: 5, kind: output, shape index: {0}]   ;;  %s4962_s6 = inlined_call_operand.vmem [shape: f32[2,2,128], index: 6, kind: output, shape index: {1}]  }
   0x1 LB: > { %s2762_s22 = sadd.s32 4294967295, %s3604_s21   ;;  %p2766_p0 = scmp.ge.s32.totalorder %s3604_s21, 1  ;;  %s3604_s21 = sphi %s3642_s21, %s17_s21  }
   0x2   : > { %p215_p1 = scmp.lt.s32.totalorder %s3604_s21, 3 }
   0x4   : > { %p216_p2 = pnand %p2766_p0, %p215_p1 }
   0x6   : > { %219 = sbr.rel (%p216_p2) target bundleno = 556 (0x22c), region = 40 }
   0xb   : > { %v3524_v0 = vld [vmem:[%s4959_s3 + $0x138] sm:$0xff]   ;;  %v3526_v2 = vld [vmem:[%s4959_s3 + $0x130] sm:$0xff]   ;;  %p249_p3 = scmp.lt.s32.totalorder %s2762_s22, 1  ;;  %v3528_v4 = vld [vmem:[%s4959_s3 + $0x128] sm:$0xff]   ;;  %vm566_vm0 = vcmask 1040384   ;;  %vm837_vm4 = vcmask 1046528  }
   0xc   : > { %v3525_v1 = vld [vmem:[%s4959_s3 + $0xf8] sm:$0xff]   ;;  %2947 = vmatprep.subr.bf16.mxu0 %v3524_v0  ;;  %3499 = vmatprep.subr.bf16.mxu1 %v3524_v0  ;;  %v3527_v3 = vld [vmem:[%s4959_s3 + $0xf0] sm:$0xff]   ;;  %v3529_v5 = vld [vmem:[%s4959_s3 + $0xe8] sm:$0xff]   ;;  %vm567_vm1 = vsmask.f32 256 }
   0xd   : > { %2948 = vmatpush3.bf16.msra.mxu0 %v3525_v1  ;;  %3507 = vmatpush3.bf16.msra.mxu1 %v3525_v1  ;;  %s5002_s22 = smov (!%p249_p3, %s2762_s22), 1  ;;  %v3530_v6 = vld [vmem:[%s4959_s3 + $0x120] sm:$0xff]   ;;  %v3532_v8 = vld [vmem:[%s4959_s3 + $0x118] sm:$0xff]   ;;  %v3534_v10 = vld [vmem:[%s4959_s3 + $0x110] sm:$0xff]   ;;  %vm601_vm3 = vsmask.f32 7424 }
   0xe   : > { %2949 = vmatprep.subr.bf16.mxu0 %v3526_v2  ;;  %3500 = vmatprep.subr.bf16.mxu1 %v3526_v2  ;;  %s2945_s13 = sshll.u32 %s5002_s22, 8  ;;  %v3531_v7 = vld [vmem:[%s4959_s3 + $0xe0] sm:$0xff]   ;;  %v3533_v9 = vld [vmem:[%s4959_s3 + $0xd8] sm:$0xff]   ;;  %v3535_v20 = vld [vmem:[%s4959_s3 + $0xd0] sm:$0xff]  }
   0xf   : > { %s3685_s20 = scalar_lea.vmem %s4956_s0, %s2945_s13  ;;  %v3698_v13 = vld [vmem:[%s4957_s1] ss:$0 sm:$0xff]  ;;  %v3536_v24 = vld [vmem:[%s4959_s3 + $0x108] sm:$0xff]   ;;  %v3745_v50 = vld [vmem:[%s4959_s3 + $0x178] sm:$0xff]   ;;  %s4766_s14 = scalar_lea.vmem %s4961_s5, %s2945_s13 }
  0x10   : > { %v264_v11 = vld [vmem:[%s3685_s20] sm:$0xff]  ;;  %v265_v12 = vld [vmem:[%s3685_s20 + $0x8] sm:$0xff]  ;;  %v266_v30 = vld [vmem:[%s3685_s20 + $0x10] sm:$0xff]  ;;  %s2771_s13 = sshll.u32 %s5002_s22, 1 }
  0x11   : > { %2950 = vmatpush3.bf16.msra.mxu0 %v3527_v3  ;;  %3508 = vmatpush3.bf16.msra.mxu1 %v3527_v3  ;;  %v303_v14 = vmul.f32 %v3698_v13, %v264_v11  ;;  %v304_v15 = vmul.f32 %v3698_v13, %v265_v12  ;;  %v3705_v16 = vld [vmem:[%s4958_s2] ss:$0 sm:$0xff]  ;;  %v289_v18 = vld [vmem:[%s3685_s20 + $0xc8] sm:$0xff]  ;;  %v267_v31 = vld [vmem:[%s3685_s20 + $0x18] sm:$0xff]  ;;  %v305_v33 = vmul.f32 %v3698_v13, %v266_v30  ;;  %s262_s17 = scalar_lea.vmem %s4962_s6, %s2771_s13 }
  0x12   : > { %2951 = vmatprep.subr.bf16.mxu0 %v3528_v4  ;;  %3501 = vmatprep.subr.bf16.mxu1 %v3528_v4  ;;  %v288_v17 = vld [vmem:[%s3685_s20 + $0xc0] sm:$0xff]  ;;  %v328_v23 = vmul.f32 %v3698_v13, %v289_v18  ;;  %v3537_v26 = vld [vmem:[%s4959_s3 + $0xc8] sm:$0xff]   ;;  %v306_v34 = vmul.f32 %v3698_v13, %v267_v31  ;;  %v290_v35 = vld [vmem:[%s3685_s20 + $0xd0] sm:$0xff] }
  0x13   : > { %v327_v19 = vmul.f32 %v3698_v13, %v288_v17  ;;  %v342_v21 = vadd.f32 %v3705_v16, %v303_v14  ;;  %v343_v22 = vadd.f32 %v3705_v16, %v304_v15  ;;  %v291_v36 = vld [vmem:[%s3685_s20 + $0xd8] sm:$0xff]  ;;  %v3538_v37 = vld [vmem:[%s4959_s3 + $0x100] sm:$0xff]   ;;  %v329_v40 = vmul.f32 %v3698_v13, %v290_v35  ;;  %v269_v55 = vld [vmem:[%s3685_s20 + $0x28] sm:$0xff] }
  0x14   : > { %v367_v29 = vadd.f32 %v3705_v16, %v328_v23  ;;  %v330_v41 = vmul.f32 %v3698_v13, %v291_v36  ;;  %v344_v42 = vadd.f32 %v3705_v16, %v305_v33  ;;  %v345_v43 = vadd.f32 %v3705_v16, %v306_v34  ;;  %v3539_v44 = vld [vmem:[%s4959_s3 + $0xc0] sm:$0xff]   ;;  %v3750_v51 = vld [vmem:[%s4959_s3 + $0xb8] sm:$0xff]   ;;  %vm3757_vm2 = vmand %vm566_vm0, %vm567_vm1 }
  0x15   : > { %2952 = vmatpush3.bf16.msra.mxu0 %v3529_v5  ;;  %3509 = vmatpush3.bf16.msra.mxu1 %v3529_v5  ;;  %v366_v25 = vadd.f32 %v3705_v16, %v327_v19  ;;  %v374_v27 = vmax.f32 %v342_v21, 0.0  ;;  %v375_v28 = vmax.f32 %v343_v22, 0.0  ;;  %v368_v48 = vadd.f32 %v3705_v16, %v329_v40  ;;  %v268_v49 = vld [vmem:[%s3685_s20 + $0x20] sm:$0xff] }
  0x16   : > { %2953 = vmatprep.subr.bf16.mxu0 %v3530_v6  ;;  %3502 = vmatprep.subr.bf16.mxu1 %v3530_v6  ;;  %v399_v39 = vmax.f32 %v367_v29, 0.0  ;;  %v376_v52 = vmax.f32 %v344_v42, 0.0  ;;  %v377_v53 = vmax.f32 %v345_v43, 0.0  ;;  %v369_v54 = vadd.f32 %v3705_v16, %v330_v41  ;;  %v292_v1 = vld [vmem:[%s3685_s20 + $0xe0] sm:$0xff]  ;;  %v3542_v43 = vld [vmem:[%s4959_s3 + $0x170] sm:$0xff]  }
  0x17   : > { %v398_v32 = vmax.f32 %v366_v25, 0.0  ;;  %v406_v38 = vpack.c.bf16 %v375_v28, %v374_v27  ;;  %v307_v56 = vmul.f32 %v3698_v13, %v268_v49  ;;  %v400_v61 = vmax.f32 %v368_v48, 0.0 }
  0x18   : > { %v407_v62 = vpack.c.bf16 %v377_v53, %v376_v52  ;;  %v401_v63 = vmax.f32 %v369_v54, 0.0  ;;  %v308_v0 = vmul.f32 %v3698_v13, %v269_v55  ;;  %v331_v14 = vmul.f32 %v3698_v13, %v292_v1  ;;  %v271_v54 = vld [vmem:[%s3685_s20 + $0x38] sm:$0xff] }
  0x19   : > { %2954 = vmatpush3.bf16.msra.mxu0 %v3531_v7  ;;  %3510 = vmatpush3.bf16.msra.mxu1 %v3531_v7  ;;  %v423_v45 = vshrl.u32 %v406_v38, 16  ;;  %v426_v46 = vshll.u32 %v406_v38, 16  ;;  %v418_v47 = vpack.c.bf16 %v399_v39, %v398_v32  ;;  %v346_v5 = vadd.f32 %v3705_v16, %v307_v56  ;;  %v3545_v39 = vld [vmem:[%s4959_s3 + $0xb0] sm:$0xff]  }
  0x1a   : > { %2955 = vmatprep.subr.bf16.mxu0 %v3532_v8  ;;  %3503 = vmatprep.subr.bf16.mxu1 %v3532_v8  ;;  %v430_v7 = vshrl.u32 %v407_v62, 16  ;;  %v433_v8 = vshll.u32 %v407_v62, 16  ;;  %v347_v19 = vadd.f32 %v3705_v16, %v308_v0 }
  0x1b   : > { %v425_v57 = vrot.slane %v423_v45, 7  ;;  %v507_v59 = vshrl.u32 %v418_v47, 16  ;;  %v510_v60 = vshll.u32 %v418_v47, 16  ;;  %v378_v31 = vmax.f32 %v346_v5, 0.0  ;;  %v270_v47 = vld [vmem:[%s3685_s20 + $0x30] sm:$0xff] }
  0x1c   : > { %v432_v21 = vrot.slane %v430_v7, 7  ;;  %v379_v40 = vmax.f32 %v347_v19, 0.0  ;;  %v309_v5 = vmul.f32 %v3698_v13, %v270_v47 }
  0x1d   : > { %2956 = vmatpush3.bf16.msra.mxu0 %v3533_v9  ;;  %3511 = vmatpush3.bf16.msra.mxu1 %v3533_v9  ;;  %v428_v2 = vor.u32 %v426_v46, %v425_v57  ;;  %v3765_v3 = vsel %vm3757_vm2, %v425_v57, 0  ;;  %v509_v4 = vrot.slane %v507_v59, 7  ;;  %v419_v9 = vpack.c.bf16 %v401_v63, %v400_v61  ;;  %v293_v46 = vld [vmem:[%s3685_s20 + $0xe8] sm:$0xff] }
  0x1e   : > { %2957 = vmatprep.subr.bf16.mxu0 %v3534_v10  ;;  %3504 = vmatprep.subr.bf16.mxu1 %v3534_v10  ;;  %v618_v6 = vshll.u32 %v3765_v3, 16  ;;  %v435_v28 = vor.u32 %v433_v8, %v432_v21  ;;  %v3792_v29 = vsel %vm3757_vm2, %v432_v21, 0  ;;  %v408_v53 = vpack.c.bf16 %v379_v40, %v378_v31  ;;  %v3553_v31 = vld [vmem:[%s4959_s3 + $0xa0] sm:$0xff]  }
  0x1f   : > { %v3771_v10 = vsel %vm3757_vm2, 0, %v428_v2  ;;  %v512_v11 = vor.u32 %v510_v60, %v509_v4  ;;  %v3775_v12 = vsel %vm3757_vm2, %v509_v4, 0  ;;  %v514_v22 = vshrl.u32 %v419_v9, 16  ;;  %v294_v60 = vld [vmem:[%s3685_s20 + $0xf0] sm:$0xff] }
  0x20   : > { %v611_v15 = vshrl.u32 %v3771_v10, 16  ;;  %v613_v17 = vshll.u32 %v3771_v10, 16  ;;  %v762_v18 = vshll.u32 %v3775_v12, 16  ;;  %v517_v23 = vshll.u32 %v419_v9, 16  ;;  %v295_v9 = vld [vmem:[%s3685_s20 + $0xf8] sm:$0xff] }
  0x21   : > { %2958 = vmatpush3.bf16.msra.mxu0 %v3535_v20  ;;  %3512 = vmatpush3.bf16.msra.mxu1 %v3535_v20  ;;  %v3786_v20 = vsel %vm3757_vm2, 0, %v512_v11  ;;  %v620_v25 = vrot.slane %v618_v6, 1  ;;  %v516_v30 = vrot.slane %v514_v22, 7  ;;  %v630_v35 = vshll.u32 %v3792_v29, 16  ;;  %v3549_v6 = vld [vmem:[%s4959_s3 + $0xa8] sm:$0xff]  }
  0x22   : > { %2959 = vmatprep.subr.bf16.mxu0 %v3536_v24  ;;  %3505 = vmatprep.subr.bf16.mxu1 %v3536_v24  ;;  %v615_v24 = vrot.slane %v613_v17, 1  ;;  %v757_v27 = vshll.u32 %v3786_v20, 16  ;;  %v764_v34 = vrot.slane %v762_v18, 1  ;;  %v3797_v36 = vsel %vm3757_vm2, 0, %v435_v28  ;;  %v3543_v17 = vld [vmem:[%s4959_s3 + $0x168] sm:$0xff]  }
  0x23   : > { %v3801_v38 = vsel %vm3757_vm2, %v516_v30, 0  ;;  %v625_v45 = vshll.u32 %v3797_v36, 16  ;;  %v632_v48 = vrot.slane %v630_v35, 1  ;;  %v437_v62 = vshrl.u32 %v408_v53, 16 }
  0x24   : > { %v616_v32 = vor.u32 %v615_v24, %v611_v15  ;;  %v759_v33 = vrot.slane %v757_v27, 1  ;;  %v774_v52 = vshll.u32 %v3801_v38, 16  ;;  %v440_v63 = vshll.u32 %v408_v53, 16  ;;  %v272_v24 = vld [vmem:[%s3685_s20 + $0x40] sm:$0xff] }
  0x25   : > { %2960 = vmatpush3.bf16.msra.mxu0 %v3537_v26  ;;  %3513 = vmatpush3.bf16.msra.mxu1 %v3537_v26  ;;  %v755_v26 = vshrl.u32 %v3786_v20, 16  ;;  %v627_v56 = vrot.slane %v625_v45, 1  ;;  %v332_v0 = vmul.f32 %v3698_v13, %v293_v46  ;;  %v370_v4 = vadd.f32 %v3705_v16, %v331_v14 }
  0x26   : > { %2961 = vmatprep.subr.bf16.mxu0 %v3538_v37  ;;  %3506 = vmatprep.subr.bf16.mxu1 %v3538_v37  ;;  %v519_v37 = vor.u32 %v517_v23, %v516_v30  ;;  %v3807_v41 = vsel %vm601_vm3, %v616_v32, %v620_v25  ;;  %v776_v61 = vrot.slane %v774_v52, 1  ;;  %v310_v8 = vmul.f32 %v3698_v13, %v271_v54  ;;  %v273_v30 = vld [vmem:[%s3685_s20 + $0x48] sm:$0xff] }
  0x27   : > { %v760_v42 = vor.u32 %v759_v33, %v755_v26  ;;  %1193 = vmatprep.mubr.bf16.mxu0 %v3807_v41  ;;  %v371_v7 = vadd.f32 %v3705_v16, %v332_v0  ;;  %v333_v11 = vmul.f32 %v3698_v13, %v294_v60  ;;  %v348_v18 = vadd.f32 %v3705_v16, %v309_v5 }
  0x28   : > { %v3819_v49 = vsel %vm3757_vm2, 0, %v519_v37  ;;  %v349_v23 = vadd.f32 %v3705_v16, %v310_v8  ;;  %v334_v28 = vmul.f32 %v3698_v13, %v295_v9  ;;  %v3544_v37 = vld [vmem:[%s4959_s3 + $0x160] sm:$0xff]   ;;  %v311_v54 = vmul.f32 %v3698_v13, %v272_v24  ;;  %v3561_v9 = vld [vmem:[%s4959_s3 + $0x90] sm:$0xff]  }
  0x29   : > { %2962 = vmatpush3.bf16.msra.mxu0 %v3539_v44  ;;  %3514 = vmatpush3.bf16.msra.mxu1 %v3539_v44  ;;  %v623_v44 = vshrl.u32 %v3797_v36, 16  ;;  %v3824_v55 = vsel %vm601_vm3, %v760_v42, %v764_v34  ;;  %v767_v57 = vshrl.u32 %v3819_v49, 16  ;;  %v769_v59 = vshll.u32 %v3819_v49, 16 }
  0x2a   : > { %3355 = vmatprep.subr.bf16.mxu1 %v3745_v50  ;;  %3403 = vmatprep.subr.bf16.mxu0 %v3750_v51  ;;  %v403_v22 = vmax.f32 %v371_v7, 0.0  ;;  %v380_v27 = vmax.f32 %v348_v18, 0.0  ;;  %v381_v34 = vmax.f32 %v349_v23, 0.0  ;;  %v372_v35 = vadd.f32 %v3705_v16, %v333_v11 }
  0x2b   : > { %1289 = vmatprep.mubr.bf16.mxu1 %v3824_v55  ;;  %v628_v1 = vor.u32 %v627_v56, %v623_v44  ;;  %v771_v2 = vrot.slane %v769_v59, 1  ;;  %v312_v56 = vmul.f32 %v3698_v13, %v273_v30  ;;  %v350_v0 = vadd.f32 %v3705_v16, %v311_v54 }
  0x2c   : > { %1194 = vmatmul.mubr.bf16.vlgmr.msra.gmra.mxu0 %v3771_v10  ;;  %1290 = vmatmul.mubr.bf16.vlgmr.msra.gmra.mxu1 %v3786_v20  ;;  %v409_v46 = vpack.c.bf16 %v381_v34, %v380_v27  ;;  %v404_v47 = vmax.f32 %v372_v35, 0.0 }
  0x2d   : > { %3404 = vmatpush3.bf16.msra.mxu0 %v3750_v51  ;;  %3356 = vmatpush3.bf16.msra.mxu1 %v3745_v50  ;;  %v439_v51 = vrot.slane %v437_v62, 7  ;;  %v3845_v14 = vsel %vm601_vm3, %v628_v1, %v632_v48  ;;  %v772_v15 = vor.u32 %v771_v2, %v767_v57  ;;  %v402_v50 = vmax.f32 %v370_v4, 0.0  ;;  %v3558_v48 = vld [vmem:[%s4959_s3 + $0x98] sm:$0xff]  }
  0x2e   : > { %3405 = vmatprep.subr.bf16.mxu0 %v3545_v39  ;;  %3357 = vmatprep.subr.bf16.mxu1 %v3542_v43  ;;  %v444_v59 = vshrl.u32 %v409_v46, 16  ;;  %v447_v60 = vshll.u32 %v409_v46, 16  ;;  %v3546_v62 = vld [vmem:[%s4959_s3 + $0x158] sm:$0xff]   ;;  %v351_v5 = vadd.f32 %v3705_v16, %v312_v56 }
  0x2f   : > { %1201 = vmatprep.mubr.bf16.mxu0 %v3845_v14  ;;  %v442_v19 = vor.u32 %v440_v63, %v439_v51  ;;  %v3854_v21 = vsel %vm3757_vm2, %v439_v51, 0  ;;  %v3859_v25 = vsel %vm601_vm3, %v772_v15, %v776_v61  ;;  %v420_v33 = vpack.c.bf16 %v403_v22, %v402_v50  ;;  %v3547_v22 = vld [vmem:[%s4959_s3 + $0x150] sm:$0xff]   ;;  %v275_v46 = vld [vmem:[%s3685_s20 + $0x58] sm:$0xff] }
  0x30   : > { %v642_v26 = vshll.u32 %v3854_v21, 16  ;;  %1297 = vmatprep.mubr.bf16.mxu1 %v3859_v25  ;;  %v446_v4 = vrot.slane %v444_v59, 7  ;;  %v382_v50 = vmax.f32 %v350_v0, 0.0  ;;  %v383_v27 = vmax.f32 %v351_v5, 0.0 }
  0x31   : > { %3406 = vmatpush3.bf16.msra.mxu0 %v3545_v39  ;;  %3358 = vmatpush3.bf16.msra.mxu1 %v3542_v43  ;;  %v3870_v32 = vsel %vm3757_vm2, 0, %v442_v19  ;;  %v373_v43 = vadd.f32 %v3705_v16, %v334_v28  ;;  %v521_v44 = vshrl.u32 %v420_v33, 16  ;;  %v524_v45 = vshll.u32 %v420_v33, 16  ;;  %v274_v28 = vld [vmem:[%s3685_s20 + $0x50] sm:$0xff] }
  0x32   : > { %3407 = vmatprep.subr.bf16.mxu0 %v3549_v6  ;;  %3359 = vmatprep.subr.bf16.mxu1 %v3543_v17  ;;  %v635_v39 = vshrl.u32 %v3870_v32, 16  ;;  %v637_v40 = vshll.u32 %v3870_v32, 16  ;;  %v644_v42 = vrot.slane %v642_v26, 1  ;;  %v449_v15 = vor.u32 %v447_v60, %v446_v4 }
  0x33   : > { %v405_v53 = vmax.f32 %v373_v43, 0.0  ;;  %v523_v57 = vrot.slane %v521_v44, 7 }
  0x34   : > { %1202 = vmatmul.mubr.bf16.gmra.mxu0 %v3797_v36  ;;  %1298 = vmatmul.mubr.bf16.gmra.mxu1 %v3819_v49  ;;  %v639_v52 = vrot.slane %v637_v40, 1  ;;  %v3920_v24 = vsel %vm3757_vm2, 0, %v449_v15  ;;  %v410_v40 = vpack.c.bf16 %v383_v27, %v382_v50 }
  0x35   : > { %3408 = vmatpush3.bf16.msra.mxu0 %v3549_v6  ;;  %3360 = vmatpush3.bf16.msra.mxu1 %v3543_v17  ;;  %v421_v63 = vpack.c.bf16 %v405_v53, %v404_v47  ;;  %v526_v1 = vor.u32 %v524_v45, %v523_v57  ;;  %v3892_v2 = vsel %vm3757_vm2, %v523_v57, 0  ;;  %v3909_v17 = vsel %vm3757_vm2, %v446_v4, 0  ;;  %v3548_v45 = vld [vmem:[%s4959_s3 + $0x148] sm:$0xff]  }
  0x36   : > { %3409 = vmatprep.subr.bf16.mxu0 %v3553_v31  ;;  %3361 = vmatprep.subr.bf16.mxu1 %v3544_v37  ;;  %v640_v61 = vor.u32 %v639_v52, %v635_v39  ;;  %v786_v51 = vshll.u32 %v3892_v2, 16  ;;  %v654_v23 = vshll.u32 %v3909_v17, 16  ;;  %v647_v33 = vshrl.u32 %v3920_v24, 16  ;;  %v3566_v4 = vld [vmem:[%s4959_s3 + $0x88] sm:$0xff]  }
  0x37   : > { %v528_v7 = vshrl.u32 %v421_v63, 16  ;;  %v531_v8 = vshll.u32 %v421_v63, 16  ;;  %v3905_v11 = vsel %vm3757_vm2, 0, %v526_v1  ;;  %v649_v34 = vshll.u32 %v3920_v24, 16  ;;  %v276_v1 = vld [vmem:[%s3685_s20 + $0x60] sm:$0xff] }
  0x38   : > { %v3896_v6 = vsel %vm601_vm3, %v640_v61, %v644_v42  ;;  %v779_v18 = vshrl.u32 %v3905_v11, 16  ;;  %v781_v19 = vshll.u32 %v3905_v11, 16  ;;  %v656_v35 = vrot.slane %v654_v23, 1 }
  0x39   : > { %3410 = vmatpush3.bf16.msra.mxu0 %v3553_v31  ;;  %3362 = vmatpush3.bf16.msra.mxu1 %v3544_v37  ;;  %v530_v26 = vrot.slane %v528_v7, 7  ;;  %v788_v31 = vrot.slane %v786_v51, 1  ;;  %v651_v43 = vrot.slane %v649_v34, 1  ;;  %v313_v47 = vmul.f32 %v3698_v13, %v274_v28 }
  0x3a   : > { %3411 = vmatprep.subr.bf16.mxu0 %v3558_v48  ;;  %1209 = vmatprep.mubr.bf16.mxu0 %v3896_v6  ;;  %v783_v30 = vrot.slane %v781_v19, 1  ;;  %v451_v53 = vshrl.u32 %v410_v40, 16  ;;  %v454_v54 = vshll.u32 %v410_v40, 16  ;;  %v314_v63 = vmul.f32 %v3698_v13, %v275_v46 }
  0x3b   : > { %3363 = vmatprep.subr.bf16.mxu1 %v3546_v62  ;;  %v533_v37 = vor.u32 %v531_v8, %v530_v26  ;;  %v3927_v39 = vsel %vm3757_vm2, %v530_v26, 0  ;;  %v652_v57 = vor.u32 %v651_v43, %v647_v33  ;;  %v352_v0 = vadd.f32 %v3705_v16, %v313_v47  ;;  %v3551_v26 = vld [vmem:[%s4959_s3 + $0x78] sm:$0xff]   ;;  %v278_v33 = vld [vmem:[%s3685_s20 + $0x70] sm:$0xff] }
  0x3c   : > { %1210 = vmatmul.mubr.bf16.gmra.mxu0 %v3870_v32  ;;  %v784_v42 = vor.u32 %v783_v30, %v779_v18  ;;  %v957_v44 = vshll.u32 %v3927_v39, 16  ;;  %v453_v61 = vrot.slane %v451_v53, 7  ;;  %v841_v8 = vrot.slane %v3765_v3, 1  ;;  %v279_v47 = vld [vmem:[%s3685_s20 + $0x78] sm:$0xff] }
  0x3d   : > { %3412 = vmatpush3.bf16.msra.mxu0 %v3558_v48  ;;  %3364 = vmatpush3.bf16.msra.mxu1 %v3546_v62  ;;  %v844_v48 = vrot.slane %v3792_v29, 1  ;;  %v3938_v52 = vsel %vm3757_vm2, 0, %v533_v37  ;;  %v3550_v29 = vld [vmem:[%s4959_s3 + $0x140] sm:$0xff]   ;;  %v840_v62 = vrot.slane %v3771_v10, 1  ;;  %v3958_v5 = vsel %vm601_vm3, %v652_v57, %v656_v35 }
  0x3e   : > { %3413 = vmatprep.subr.bf16.mxu0 %v3561_v9  ;;  %3365 = vmatprep.subr.bf16.mxu1 %v3547_v22  ;;  %v3941_v56 = vsel %vm601_vm3, %v784_v42, %v788_v31  ;;  %v950_v59 = vshrl.u32 %v3938_v52, 16  ;;  %v952_v60 = vshll.u32 %v3938_v52, 16  ;;  %v959_v7 = vrot.slane %v957_v44, 1  ;;  %v3569_v42 = vld [vmem:[%s4959_s3 + $0x80] sm:$0xff]  }
  0x3f   : > { %1305 = vmatprep.mubr.bf16.mxu1 %v3941_v56  ;;  %1217 = vmatprep.mubr.bf16.mxu0 %v3958_v5  ;;  %v456_v15 = vor.u32 %v454_v54, %v453_v61  ;;  %v3965_v50 = vsel %vm3757_vm2, %v453_v61, 0  ;;  %v353_v18 = vadd.f32 %v3705_v16, %v314_v63  ;;  %v384_v19 = vmax.f32 %v352_v0, 0.0 }
  0x40   : > { %1306 = vmatmul.mubr.bf16.gmra.mxu1 %v3905_v11  ;;  %v954_v51 = vrot.slane %v952_v60, 1  ;;  %v666_v23 = vshll.u32 %v3965_v50, 16  ;;  %v843_v3 = vrot.slane %v3797_v36, 1  ;;  %v846_v30 = vrot.slane %v3870_v32, 1  ;;  %v281_v60 = vld [vmem:[%s3685_s20 + $0x88] sm:$0xff] }
  0x41   : > { %3414 = vmatpush3.bf16.msra.mxu0 %v3561_v9  ;;  %3366 = vmatpush3.bf16.msra.mxu1 %v3547_v22  ;;  %v277_v9 = vld [vmem:[%s3685_s20 + $0x68] sm:$0xff]  ;;  %v3976_v27 = vsel %vm3757_vm2, 0, %v456_v15  ;;  %v385_v28 = vmax.f32 %v353_v18, 0.0  ;;  %v315_v31 = vmul.f32 %v3698_v13, %v276_v1  ;;  %v847_v40 = vrot.slane %v3854_v21, 1  ;;  %v282_v1 = vld [vmem:[%s3685_s20 + $0x90] sm:$0xff] }
  0x42   : > { %3367 = vmatprep.subr.bf16.mxu1 %v3548_v45  ;;  %3415 = vmatprep.subr.bf16.mxu0 %v3566_v4  ;;  %v955_v22 = vor.u32 %v954_v51, %v950_v59  ;;  %v659_v35 = vshrl.u32 %v3976_v27, 16  ;;  %v661_v37 = vshll.u32 %v3976_v27, 16  ;;  %v3992_v43 = vsel %vm837_vm4, %v840_v62, %v841_v8  ;;  %v280_v59 = vld [vmem:[%s3685_s20 + $0x80] sm:$0xff] }
  0x43   : > { %v411_v44 = vpack.c.bf16 %v385_v28, %v384_v19  ;;  %v354_v46 = vadd.f32 %v3705_v16, %v315_v31  ;;  %v668_v54 = vrot.slane %v666_v23, 1  ;;  %v3998_v21 = vsel %vm837_vm4, %v843_v3, %v844_v48 }
  0x44   : > { %1218 = vmatmul.mubr.bf16.gmra.mxu0 %v3920_v24  ;;  %v3982_v34 = vsel %vm601_vm3, %v955_v22, %v959_v7  ;;  %v663_v53 = vrot.slane %v661_v37, 1  ;;  %v317_v57 = vmul.f32 %v3698_v13, %v278_v33  ;;  %v4007_v48 = vsel %vm837_vm4, %v846_v30, %v847_v40 }
  0x45   : > { %3368 = vmatpush3.bf16.msra.mxu1 %v3548_v45  ;;  %3416 = vmatpush3.bf16.msra.mxu0 %v3566_v4  ;;  %v316_v45 = vmul.f32 %v3698_v13, %v277_v9  ;;  %v458_v61 = vshrl.u32 %v411_v44, 16  ;;  %v461_v62 = vshll.u32 %v411_v44, 16  ;;  %v386_v0 = vmax.f32 %v354_v46, 0.0 }
  0x46   : > { %3369 = vmatprep.subr.bf16.mxu1 %v3550_v29  ;;  %1313 = vmatprep.mubr.bf16.mxu1 %v3982_v34  ;;  %v664_v4 = vor.u32 %v663_v53, %v659_v35  ;;  %v849_v51 = vrot.slane %v3920_v24, 1  ;;  %v318_v7 = vmul.f32 %v3698_v13, %v279_v47  ;;  %v356_v15 = vadd.f32 %v3705_v16, %v317_v57  ;;  %v3554_v35 = vld [vmem:[%s4959_s3 + $0x70] sm:$0xff]   ;;  %v283_v53 = vld [vmem:[%s3685_s20 + $0x98] sm:$0xff] }
  0x47   : > { %3417 = vmatprep.subr.bf16.mxu0 %v3569_v42  ;;  %v355_v63 = vadd.f32 %v3705_v16, %v316_v45  ;;  %v460_v8 = vrot.slane %v458_v61, 7  ;;  %v319_v18 = vmul.f32 %v3698_v13, %v280_v59  ;;  %v850_v22 = vrot.slane %v3909_v17, 1  ;;  %v3552_v17 = vld [vmem:[%s4959_s3 + $0x38] sm:$0xff]  }
  0x48   : > { %1314 = vmatmul.mubr.bf16.gmra.mxu1 %v3938_v52  ;;  %v4018_v19 = vsel %vm601_vm3, %v664_v4, %v668_v54  ;;  %v357_v23 = vadd.f32 %v3705_v16, %v318_v7  ;;  %v320_v3 = vmul.f32 %v3698_v13, %v281_v60  ;;  %v388_v31 = vmax.f32 %v356_v15, 0.0 }
  0x49   : > { %3370 = vmatpush3.bf16.msra.mxu1 %v3550_v29  ;;  %3418 = vmatpush3.bf16.msra.mxu0 %v3569_v42  ;;  %v3573_v29 = vld [vmem:[%s4959_s3 + $0x1f8] sm:$0xff]   ;;  %v387_v9 = vmax.f32 %v355_v63, 0.0  ;;  %v4026_v28 = vsel %vm3757_vm2, %v460_v8, 0  ;;  %v358_v40 = vadd.f32 %v3705_v16, %v319_v18  ;;  %v321_v42 = vmul.f32 %v3698_v13, %v282_v1 }
  0x4a   : > { %3083 = vmatprep.subr.bf16.mxu1 %v3551_v26  ;;  %3371 = vmatprep.mubr.bf16.mxu1 %v3992_v43  ;;  %v463_v26 = vor.u32 %v461_v62, %v460_v8  ;;  %v678_v33 = vshll.u32 %v4026_v28, 16  ;;  %v389_v37 = vmax.f32 %v357_v23, 0.0  ;;  %v359_v47 = vadd.f32 %v3705_v16, %v320_v3  ;;  %v3555_v8 = vld [vmem:[%s4959_s3 + $0x30] sm:$0xff]  }
  0x4b   : > { %3219 = vmatprep.subr.bf16.mxu0 %v3573_v29  ;;  %1225 = vmatprep.mubr.bf16.mxu0 %v4018_v19  ;;  %v412_v30 = vpack.c.bf16 %v387_v9, %v386_v0  ;;  %v852_v59 = vrot.slane %v3976_v27, 1  ;;  %v853_v60 = vrot.slane %v3965_v50, 1  ;;  %v390_v63 = vmax.f32 %v358_v40, 0.0 }
  0x4c   : > { %1226 = vmatmul.mubr.bf16.gmra.mxu0 %v3976_v27  ;;  %v4040_v44 = vsel %vm3757_vm2, 0, %v463_v26  ;;  %v413_v62 = vpack.c.bf16 %v389_v37, %v388_v31  ;;  %v391_v0 = vmax.f32 %v359_v47, 0.0  ;;  %v680_v4 = vrot.slane %v678_v33, 1  ;;  %v3556_v26 = vld [vmem:[%s4959_s3 + $0x68] sm:$0xff]  }
  0x4d   : > { %v465_v45 = vshrl.u32 %v412_v30, 16  ;;  %v468_v46 = vshll.u32 %v412_v30, 16  ;;  %v671_v54 = vshrl.u32 %v4040_v44, 16  ;;  %v673_v57 = vshll.u32 %v4040_v44, 16 }
  0x4e   : > { %v322_v7 = vmul.f32 %v3698_v13, %v283_v53  ;;  %v360_v29 = vadd.f32 %v3705_v16, %v321_v42  ;;  %v472_v15 = vshrl.u32 %v413_v62, 16  ;;  %v475_v18 = vshll.u32 %v413_v62, 16  ;;  %v3557_v42 = vld [vmem:[%s4959_s3 + $0x28] sm:$0xff]   ;;  %v3560_v62 = vld [vmem:[%s4959_s3 + $0x20] sm:$0xff]  }
  0x4f   : > { %v467_v61 = vrot.slane %v465_v45, 7  ;;  %v675_v1 = vrot.slane %v673_v57, 1  ;;  %v4060_v3 = vsel %vm837_vm4, %v849_v51, %v850_v22  ;;  %v414_v30 = vpack.c.bf16 %v391_v0, %v390_v63 }
  0x50   : > { %3372 = vmatmul.mubr.bf16.vlgmr.msra.gmra.mxu1 %v3998_v21  ;;  %v474_v33 = vrot.slane %v472_v15, 7  ;;  %v361_v37 = vadd.f32 %v3705_v16, %v322_v7  ;;  %v856_v40 = vrot.slane %v4026_v28, 1  ;;  %v392_v53 = vmax.f32 %v360_v29, 0.0 }
  0x51   : > { %3084 = vmatpush3.bf16.msra.mxu1 %v3552_v17  ;;  %3375 = vmatprep.mubr.bf16.mxu1 %v4007_v48  ;;  %v470_v50 = vor.u32 %v468_v46, %v467_v61  ;;  %v4057_v9 = vsel %vm3757_vm2, %v467_v61, 0  ;;  %v676_v23 = vor.u32 %v675_v1, %v671_v54  ;;  %v4071_v17 = vsel %vm837_vm4, %v852_v59, %v853_v60  ;;  %v3559_v46 = vld [vmem:[%s4959_s3 + $0x60] sm:$0xff]  }
  0x52   : > { %3085 = vmatprep.subr.bf16.mxu1 %v3554_v35  ;;  %v690_v13 = vshll.u32 %v4057_v9, 16  ;;  %v477_v45 = vor.u32 %v475_v18, %v474_v33  ;;  %v4086_v16 = vsel %vm3757_vm2, %v474_v33, 0  ;;  %v479_v47 = vshrl.u32 %v414_v30, 16  ;;  %v285_v33 = vld [vmem:[%s3685_s20 + $0xa8] sm:$0xff] }
  0x53   : > { %v4068_v31 = vsel %vm3757_vm2, 0, %v470_v50  ;;  %v4075_v51 = vsel %vm601_vm3, %v676_v23, %v680_v4  ;;  %v702_v57 = vshll.u32 %v4086_v16, 16  ;;  %v482_v59 = vshll.u32 %v414_v30, 16  ;;  %v284_v50 = vld [vmem:[%s3685_s20 + $0xa0] sm:$0xff] }
  0x54   : > { %v683_v22 = vshrl.u32 %v4068_v31, 16  ;;  %v685_v35 = vshll.u32 %v4068_v31, 16  ;;  %1233 = vmatprep.mubr.bf16.mxu0 %v4075_v51  ;;  %v692_v54 = vrot.slane %v690_v13, 1  ;;  %v855_v60 = vrot.slane %v4040_v44, 1 }
  0x55   : > { %3086 = vmatpush3.bf16.msra.mxu1 %v3555_v8  ;;  %1234 = vmatmul.mubr.bf16.gmra.mxu0 %v4040_v44  ;;  %v4096_v61 = vsel %vm3757_vm2, 0, %v477_v45  ;;  %v481_v63 = vrot.slane %v479_v47, 7  ;;  %v393_v0 = vmax.f32 %v361_v37, 0.0  ;;  %v859_v29 = vrot.slane %v4057_v9, 1  ;;  %v3562_v8 = vld [vmem:[%s4959_s3 + $0x58] sm:$0xff]   ;;  %v286_v37 = vld [vmem:[%s3685_s20 + $0xb0] sm:$0xff] }
  0x56   : > { %v687_v28 = vrot.slane %v685_v35, 1  ;;  %3087 = vmatprep.subr.bf16.mxu1 %v3556_v26  ;;  %v695_v4 = vshrl.u32 %v4096_v61, 16  ;;  %v697_v7 = vshll.u32 %v4096_v61, 16  ;;  %v858_v15 = vrot.slane %v4068_v31, 1  ;;  %v287_v47 = vld [vmem:[%s3685_s20 + $0xb8] sm:$0xff] }
  0x57   : > { %v484_v18 = vor.u32 %v482_v59, %v481_v63  ;;  %v4113_v23 = vsel %vm3757_vm2, %v481_v63, 0  ;;  %v415_v13 = vpack.c.bf16 %v393_v0, %v392_v53  ;;  %v704_v30 = vrot.slane %v702_v57, 1  ;;  %v3563_v59 = vld [vmem:[%s4959_s3 + $0x18] sm:$0xff]  }
  0x58   : > { %3376 = vmatmul.mubr.bf16.gmra.mxu1 %v4060_v3  ;;  %v688_v1 = vor.u32 %v687_v28, %v683_v22  ;;  %v699_v9 = vrot.slane %v697_v7, 1  ;;  %v4122_v22 = vsel %vm837_vm4, %v855_v60, %v856_v40  ;;  %v4133_v57 = vsel %vm837_vm4, %v858_v15, %v859_v29  ;;  %v3596_v60 = vld [vmem:[%s4957_s1] ss:$0 sm:$0xff]  ;;  %v3564_v29 = vld [vmem:[%s4959_s3 + $0x50] sm:$0xff]  }
  0x59   : > { %3379 = vmatprep.mubr.bf16.mxu1 %v4071_v17  ;;  %3088 = vmatpush3.bf16.msra.mxu1 %v3557_v42  ;;  %v4126_v35 = vsel %vm3757_vm2, 0, %v484_v18  ;;  %v486_v42 = vshrl.u32 %v415_v13, 16  ;;  %v489_v45 = vshll.u32 %v415_v13, 16  ;;  %v323_v63 = vmul.f32 %v3596_v60, %v284_v50  ;;  %v3597_v50 = vld [vmem:[%s4958_s2] ss:$0 sm:$0xff] }
  0x5a   : > { %v4116_v26 = vsel %vm601_vm3, %v688_v1, %v692_v54  ;;  %3089 = vmatprep.subr.bf16.mxu1 %v3559_v46  ;;  %v700_v53 = vor.u32 %v699_v9, %v695_v4  ;;  %v707_v28 = vshrl.u32 %v4126_v35, 16  ;;  %v709_v54 = vshll.u32 %v4126_v35, 16 }
  0x5b   : > { %1241 = vmatprep.mubr.bf16.mxu0 %v4116_v26  ;;  %v714_v46 = vshll.u32 %v4113_v23, 16  ;;  %v488_v40 = vrot.slane %v486_v42, 7  ;;  %v324_v0 = vmul.f32 %v3596_v60, %v285_v33  ;;  %v325_v7 = vmul.f32 %v3596_v60, %v286_v37 }
  0x5c   : > { %v4143_v1 = vsel %vm601_vm3, %v700_v53, %v704_v30  ;;  %v711_v4 = vrot.slane %v709_v54, 1  ;;  %v862_v15 = vrot.slane %v4086_v16, 1  ;;  %v362_v13 = vadd.f32 %v3597_v50, %v323_v63 }
  0x5d   : > { %3090 = vmatpush3.bf16.msra.mxu1 %v3560_v62  ;;  %1242 = vmatmul.mubr.bf16.gmra.mxu0 %v4068_v31  ;;  %v326_v62 = vmul.f32 %v3596_v60, %v287_v47  ;;  %v491_v18 = vor.u32 %v489_v45, %v488_v40  ;;  %v861_v9 = vrot.slane %v4096_v61, 1  ;;  %v716_v33 = vrot.slane %v714_v46, 1 }
  0x5e   : > { %3091 = vmatprep.subr.bf16.mxu1 %v3562_v8  ;;  %1249 = vmatprep.mubr.bf16.mxu0 %v4143_v1  ;;  %v3565_v8 = vld [vmem:[%s4959_s3 + $0x10] sm:$0xff]   ;;  %v712_v30 = vor.u32 %v711_v4, %v707_v28  ;;  %v363_v37 = vadd.f32 %v3597_v50, %v324_v0  ;;  %v394_v42 = vmax.f32 %v362_v13, 0.0  ;;  %v364_v45 = vadd.f32 %v3597_v50, %v325_v7  ;;  %v3567_v28 = vld [vmem:[%s4959_s3 + $0x48] sm:$0xff]  }
  0x5f   : > { %v4161_v16 = vsel %vm3757_vm2, 0, %v491_v18  ;;  %v365_v47 = vadd.f32 %v3597_v50, %v326_v62  ;;  %v864_v53 = vrot.slane %v4126_v35, 1  ;;  %v865_v54 = vrot.slane %v4113_v23, 1 }
  0x60   : > { %3380 = vmatmul.mubr.bf16.gmra.mxu1 %v4122_v22  ;;  %v721_v60 = vshll.u32 %v4161_v16, 16  ;;  %v594_v46 = vsel %vm3757_vm2, %v488_v40, 0  ;;  %v395_v63 = vmax.f32 %v363_v37, 0.0  ;;  %v396_v0 = vmax.f32 %v364_v45, 0.0  ;;  %v3568_v40 = vld [vmem:[%s4959_s3 + $0x8] sm:$0xff]   ;;  %v3571_v45 = vld [vmem:[%s4959_s3] sm:$0xff]  }
  0x61   : > { %3383 = vmatprep.mubr.bf16.mxu1 %v4133_v57  ;;  %3092 = vmatpush3.bf16.msra.mxu1 %v3563_v59  ;;  %v397_v59 = vmax.f32 %v365_v47, 0.0  ;;  %v4172_v4 = vsel %vm601_vm3, %v712_v30, %v716_v33  ;;  %v719_v7 = vshrl.u32 %v4161_v16, 16  ;;  %v726_v23 = vshll.u32 %v594_v46, 16  ;;  %v3570_v30 = vld [vmem:[%s4959_s3 + $0x40] sm:$0xff]  }
  0x62   : > { %3093 = vmatprep.subr.bf16.mxu1 %v3564_v29  ;;  %v723_v62 = vrot.slane %v721_v60, 1  ;;  %v4176_v18 = vsel %vm837_vm4, %v861_v9, %v862_v15  ;;  %v416_v29 = vpack.c.bf16 %v395_v63, %v394_v42  ;;  %v4183_v13 = vsel %vm837_vm4, %v864_v53, %v865_v54 }
  0x63   : > { %v417_v50 = vpack.c.bf16 %v397_v59, %v396_v0  ;;  %v728_v42 = vrot.slane %v726_v23, 1  ;;  %v867_v47 = vrot.slane %v4161_v16, 1  ;;  %v868_v53 = vrot.slane %v594_v46, 1 }
  0x64   : > { %v493_v15 = vshrl.u32 %v416_v29, 16  ;;  %v496_v9 = vshll.u32 %v416_v29, 16  ;;  %v724_v37 = vor.u32 %v723_v62, %v719_v7 }
  0x65   : > { %3094 = vmatpush3.bf16.msra.mxu1 %v3565_v8  ;;  %1250 = vmatmul.mubr.bf16.gmra.mxu0 %v4096_v61  ;;  %v500_v33 = vshrl.u32 %v417_v50, 16  ;;  %v503_v8 = vshll.u32 %v417_v50, 16  ;;  %v4206_v46 = vsel %vm837_vm4, %v867_v47, %v868_v53  ;;  %v876_v53 = vrot.slane %v3786_v20, 1 }
  0x66   : > { %3095 = vmatprep.subr.bf16.mxu1 %v3567_v28  ;;  %1257 = vmatprep.mubr.bf16.mxu0 %v4172_v4  ;;  %v495_v54 = vrot.slane %v493_v15, 7  ;;  %v4198_v28 = vld [vmem:[%s4959_s3 + $0x238] sm:$0xff]   ;;  %v4203_v7 = vsel %vm601_vm3, %v724_v37, %v728_v42 }
  0x67   : > { %v502_v60 = vrot.slane %v500_v33, 7 }
  0x68   : > { %3384 = vmatmul.mubr.bf16.gmra.mxu1 %v4176_v18  ;;  %v498_v63 = vor.u32 %v496_v9, %v495_v54  ;;  %v595_v0 = vsel %vm3757_vm2, %v495_v54, 0  ;;  %v877_v54 = vrot.slane %v3775_v12, 1 }
  0x69   : > { %3387 = vmatprep.mubr.bf16.mxu1 %v4183_v13  ;;  %3096 = vmatpush3.bf16.msra.mxu1 %v3568_v40  ;;  %v505_v59 = vor.u32 %v503_v8, %v502_v60  ;;  %v871_v62 = vrot.slane %v595_v0, 1  ;;  %v738_v23 = vshll.u32 %v595_v0, 16  ;;  %v596_v50 = vsel %vm3757_vm2, %v502_v60, 0 }
  0x6a   : > { %3097 = vmatprep.subr.bf16.mxu1 %v3570_v30  ;;  %v4210_v29 = vsel %vm3757_vm2, 0, %v498_v63 }
  0x6b   : > { %v870_v40 = vrot.slane %v4210_v29, 1  ;;  %v4218_v30 = vsel %vm3757_vm2, 0, %v505_v59  ;;  %v731_v15 = vshrl.u32 %v4210_v29, 16  ;;  %v733_v9 = vshll.u32 %v4210_v29, 16 }
  0x6c   : > { %v740_v37 = vrot.slane %v738_v23, 1  ;;  %v745_v42 = vshll.u32 %v4218_v30, 16  ;;  %v873_v58 = vrot.slane %v4218_v30, 1  ;;  %v743_v63 = vshrl.u32 %v4218_v30, 16 }
  0x6d   : > { %3098 = vmatpush3.bf16.msra.mxu1 %v3571_v45  ;;  %1258 = vmatmul.mubr.bf16.gmra.mxu0 %v4126_v35  ;;  %v4226_v33 = vsel %vm837_vm4, %v870_v40, %v871_v62  ;;  %v735_v8 = vrot.slane %v733_v9, 1  ;;  %v874_v45 = vrot.slane %v596_v50, 1  ;;  %v750_v59 = vshll.u32 %v596_v50, 16 }
  0x6e   : > { %3451 = vmatprep.subr.bf16.mxu1 %v4198_v28  ;;  %1265 = vmatprep.mubr.bf16.mxu0 %v4203_v7  ;;  %v747_v0 = vrot.slane %v745_v42, 1  ;;  %v4242_v23 = vsel %vm837_vm4, %v876_v53, %v877_v54  ;;  %v880_v50 = vrot.slane %v3801_v38, 1  ;;  %v882_v9 = vrot.slane %v3905_v11, 1  ;;  %v3574_v54 = vld [vmem:[%s4959_s3 + $0x1b8] sm:$0xff]  }
  0x6f   : > { %v736_v47 = vor.u32 %v735_v8, %v731_v15  ;;  %v4238_v62 = vsel %vm837_vm4, %v873_v58, %v874_v45  ;;  %v752_v40 = vrot.slane %v750_v59, 1  ;;  %v879_v15 = vrot.slane %v3819_v49, 1  ;;  %v3578_v59 = vld [vmem:[%s4959_s3 + $0x1e8] sm:$0xff]  }
  0x70   : > { %3388 = vmatmul.mubr.bf16.gmra.mxu1 %v4206_v46  ;;  %v748_v12 = vor.u32 %v747_v0, %v743_v63  ;;  %v883_v8 = vrot.slane %v3892_v2, 1  ;;  %v964_v38 = vrot.slane %v3938_v52, 1  ;;  %v965_v2 = vrot.slane %v3927_v39, 1  ;;  %v3575_v39 = vld [vmem:[%s4959_s3 + $0x1f0] sm:$0xff]  }
  0x71   : > { %3391 = vmatprep.mubr.bf16.mxu1 %v4226_v33  ;;  %v4234_v60 = vsel %vm601_vm3, %v736_v47, %v740_v37  ;;  %v4255_v42 = vsel %vm837_vm4, %v879_v15, %v880_v50  ;;  %v3606_v45 = vmov 0   ;;  %v3577_v63 = vld [vmem:[%s4959_s3 + $0x230] sm:$0xff]   ;;  %v3583_v15 = vld [vmem:[%s4959_s3 + $0x1d8] sm:$0xff]  }
  0x72   : > { %v4252_v37 = vsel %vm601_vm3, %v748_v12, %v752_v40  ;;  %v4259_v58 = vsel %vm837_vm4, %v882_v9, %v883_v8  ;;  %v4267_v47 = vrot.slane %v3606_v45, 1  ;;  %v4270_v53 = vsel %vm837_vm4, %v964_v38, %v965_v2  ;;  %v3576_v0 = vld [vmem:[%s4959_s3 + $0x1b0] sm:$0xff]   ;;  %v3579_v12 = vld [vmem:[%s4959_s3 + $0x1a8] sm:$0xff]   ;;  %v3580_v40 = vld [vmem:[%s4959_s3 + $0x1e0] sm:$0xff]  }
  0x73   : > { %v3592_v50 = vld [vmem:[%s4959_s3 + $0x218] sm:$0xff]   ;;  %v3593_v8 = vld [vmem:[%s4959_s3 + $0x210] sm:$0xff]   ;;  %v3588_v2 = vld [vmem:[%s4959_s3 + $0x1c8] sm:$0xff]  }
  0x74   : > { %v3584_v9 = vld [vmem:[%s4959_s3 + $0x198] sm:$0xff]   ;;  %v3586_v38 = vld [vmem:[%s4959_s3 + $0x190] sm:$0xff]  }
  0x75   : > { %1266 = vmatmul.mubr.bf16.gmra.mxu0 %v4161_v16 }
  0x76   : > { %1273 = vmatprep.mubr.bf16.mxu0 %v4234_v60 }
  0x78   : > { %3392 = vmatmul.mubr.bf16.gmra.mxu1 %v4238_v62 }
  0x79   : > { %3395 = vmatprep.mubr.bf16.mxu1 %v4242_v23 }
  0x7d   : > { %1274 = vmatmul.mubr.bf16.gmra.mxu0 %v4210_v29 }
  0x7e   : > { %1281 = vmatprep.mubr.bf16.mxu0 %v4252_v37 }
  0x80   : > { %3396 = vmatmul.mubr.bf16.gmra.mxu1 %v4255_v42 }
  0x81   : > { %3399 = vmatprep.mubr.bf16.mxu1 %v4259_v58 }
  0x85   : > { %1282 = vmatmul.mubr.bf16.gmra.mxu0 %v4218_v30 }
  0x86   : > { %3419 = vmatprep.mubr.bf16.mxu0 %v4267_v47 }
  0x88   : > { %3400 = vmatmul.mubr.bf16.gmra.mxu1 %v4270_v53 }
  0x89   : > { %1659 = vmatprep.mubr.bf16.mxu1 %v4267_v47 }
  0x8d   : > { %3420 = vmatmul.mubr.bf16.vlgmr.msra.gmra.mxu0 %v3992_v43  ;;  %v3582_v43 = vld [vmem:[%s4959_s3 + $0x228] sm:$0xff]  }
  0x8e   : > { %3220 = vmatpush3.bf16.msra.mxu0 %v3574_v54  ;;  %3423 = vmatprep.mubr.bf16.mxu0 %v3998_v21  ;;  %v3594_v54 = vld [vmem:[%s4959_s3 + $0x208] sm:$0xff]  }
  0x8f   : > { %3221 = vmatprep.subr.bf16.mxu0 %v3575_v39  ;;  %v3589_v39 = vld [vmem:[%s4959_s3 + $0x188] sm:$0xff]  }
  0x90   : > { %1660 = vmatmul.mubr.bf16.vlgmr.msra.gmra.mxu1 %v3606_v45 }
  0x91   : > { %3452 = vmatpush3.bf16.msra.mxu1 %v4198_v28  ;;  %1667 = vmatprep.mubr.bf16.mxu1 %v3807_v41  ;;  %v3587_v41 = vld [vmem:[%s4959_s3 + $0x220] sm:$0xff]  }
  0x92   : > { %3453 = vmatprep.subr.bf16.mxu1 %v3577_v63  ;;  %3222 = vmatpush3.bf16.msra.mxu0 %v3576_v0  ;;  %v3581_v28 = vld [vmem:[%s4959_s3 + $0x1a0] sm:$0xff]  }
  0x93   : > { %3223 = vmatprep.subr.bf16.mxu0 %v3578_v59  ;;  %v3595_v0 = vld [vmem:[%s4959_s3 + $0x200] sm:$0xff]  }
  0x94   : > { %v3591_v59 = vld [vmem:[%s4959_s3 + $0x180] sm:$0xff]  }
  0x95   : > { %3454 = vmatpush3.bf16.msra.mxu1 %v3577_v63  ;;  %3424 = vmatmul.mubr.bf16.gmra.mxu0 %v4007_v48  ;;  %v3590_v63 = vld [vmem:[%s4959_s3 + $0x1c0] sm:$0xff]  }
  0x96   : > { %3455 = vmatprep.subr.bf16.mxu1 %v3582_v43  ;;  %3427 = vmatprep.mubr.bf16.mxu0 %v4060_v3 }
  0x97   : > { %3224 = vmatpush3.bf16.msra.mxu0 %v3579_v12 }
  0x98   : > { %1668 = vmatmul.mubr.bf16.gmra.mxu1 %v3771_v10  ;;  %3225 = vmatprep.subr.bf16.mxu0 %v3580_v40  ;;  %v3585_v10 = vld [vmem:[%s4959_s3 + $0x1d0] sm:$0xff]  }
  0x99   : > { %1675 = vmatprep.mubr.bf16.mxu1 %v3845_v14  ;;  %3456 = vmatpush3.bf16.msra.mxu1 %v3582_v43 }
  0x9a   : > { %3457 = vmatprep.subr.bf16.mxu1 %v3587_v41 }
  0x9b   : > { %3226 = vmatpush3.bf16.msra.mxu0 %v3581_v28 }
  0x9c   : > { %3227 = vmatprep.subr.bf16.mxu0 %v3583_v15 }
  0x9d   : > { %3458 = vmatpush3.bf16.msra.mxu1 %v3587_v41  ;;  %3428 = vmatmul.mubr.bf16.gmra.mxu0 %v4071_v17 }
  0x9e   : > { %3459 = vmatprep.subr.bf16.mxu1 %v3592_v50  ;;  %3431 = vmatprep.mubr.bf16.mxu0 %v4122_v22 }
  0x9f   : > { %3228 = vmatpush3.bf16.msra.mxu0 %v3584_v9 }
  0xa0   : > { %1676 = vmatmul.mubr.bf16.gmra.mxu1 %v3797_v36  ;;  %3229 = vmatprep.subr.bf16.mxu0 %v3585_v10 }
  0xa1   : > { %1683 = vmatprep.mubr.bf16.mxu1 %v3896_v6  ;;  %3460 = vmatpush3.bf16.msra.mxu1 %v3592_v50 }
  0xa2   : > { %3461 = vmatprep.subr.bf16.mxu1 %v3593_v8 }
  0xa3   : > { %3230 = vmatpush3.bf16.msra.mxu0 %v3586_v38 }
  0xa4   : > { %3231 = vmatprep.subr.bf16.mxu0 %v3588_v2 }
  0xa5   : > { %3462 = vmatpush3.bf16.msra.mxu1 %v3593_v8  ;;  %3432 = vmatmul.mubr.bf16.gmra.mxu0 %v4133_v57 }
  0xa6   : > { %3463 = vmatprep.subr.bf16.mxu1 %v3594_v54  ;;  %3435 = vmatprep.mubr.bf16.mxu0 %v4176_v18 }
  0xa7   : > { %3232 = vmatpush3.bf16.msra.mxu0 %v3589_v39 }
  0xa8   : > { %1684 = vmatmul.mubr.bf16.gmra.mxu1 %v3870_v32  ;;  %3233 = vmatprep.subr.bf16.mxu0 %v3590_v63 }
  0xa9   : > { %1691 = vmatprep.mubr.bf16.mxu1 %v3958_v5  ;;  %3464 = vmatpush3.bf16.msra.mxu1 %v3594_v54 }
  0xaa   : > { %3465 = vmatprep.subr.bf16.mxu1 %v3595_v0 }
  0xab   : > { %3234 = vmatpush3.bf16.msra.mxu0 %v3591_v59 }
  0xad   : > { %3466 = vmatpush3.bf16.msra.mxu1 %v3595_v0  ;;  %3436 = vmatmul.mubr.bf16.gmra.mxu0 %v4183_v13 }
  0xae   : > { %3439 = vmatprep.mubr.bf16.mxu0 %v4206_v46 }
  0xb0   : > { %1692 = vmatmul.mubr.bf16.gmra.mxu1 %v3920_v24 }
  0xb1   : > { %1699 = vmatprep.mubr.bf16.mxu1 %v4018_v19 }
  0xb5   : > { %3440 = vmatmul.mubr.bf16.gmra.mxu0 %v4226_v33 }
  0xb6   : > { %3443 = vmatprep.mubr.bf16.mxu0 %v4238_v62 }
  0xb8   : > { %1700 = vmatmul.mubr.bf16.gmra.mxu1 %v3976_v27 }
  0xb9   : > { %1707 = vmatprep.mubr.bf16.mxu1 %v4075_v51 }
  0xbd   : > { %3444 = vmatmul.mubr.bf16.gmra.mxu0 %v4242_v23 }
  0xbe   : > { %3447 = vmatprep.mubr.bf16.mxu0 %v4255_v42 }
  0xc0   : > { %1708 = vmatmul.mubr.bf16.gmra.mxu1 %v4040_v44 }
  0xc1   : > { %1715 = vmatprep.mubr.bf16.mxu1 %v4116_v26 }
  0xc5   : > { %3448 = vmatmul.mubr.bf16.gmra.mxu0 %v4259_v58 }
  0xc6   : > { %2174 = vmatprep.mubr.bf16.mxu0 %v3845_v14 }
  0xc8   : > { %1716 = vmatmul.mubr.bf16.gmra.mxu1 %v4068_v31 }
  0xc9   : > { %1723 = vmatprep.mubr.bf16.mxu1 %v4143_v1 }
  0xcd   : > { %2175 = vmatmul.mubr.bf16.vlgmr.msra.gmra.mxu0 %v3797_v36 }
  0xce   : > { %2182 = vmatprep.mubr.bf16.mxu0 %v3896_v6 }
  0xd0   : > { %1724 = vmatmul.mubr.bf16.gmra.mxu1 %v4096_v61 }
  0xd1   : > { %1731 = vmatprep.mubr.bf16.mxu1 %v4172_v4 }
  0xd5   : > { %2183 = vmatmul.mubr.bf16.gmra.mxu0 %v3870_v32 }
  0xd6   : > { %2190 = vmatprep.mubr.bf16.mxu0 %v3958_v5 }
  0xd8   : > { %1732 = vmatmul.mubr.bf16.gmra.mxu1 %v4126_v35 }
  0xd9   : > { %1739 = vmatprep.mubr.bf16.mxu1 %v4203_v7 }
  0xdd   : > { %2191 = vmatmul.mubr.bf16.gmra.mxu0 %v3920_v24 }
  0xde   : > { %2198 = vmatprep.mubr.bf16.mxu0 %v4018_v19 }
  0xe0   : > { %1740 = vmatmul.mubr.bf16.gmra.mxu1 %v4161_v16 }
  0xe1   : > { %1747 = vmatprep.mubr.bf16.mxu1 %v4234_v60 }
  0xe5   : > { %2199 = vmatmul.mubr.bf16.gmra.mxu0 %v3976_v27 }
  0xe6   : > { %2206 = vmatprep.mubr.bf16.mxu0 %v4075_v51 }
  0xe8   : > { %1748 = vmatmul.mubr.bf16.gmra.mxu1 %v4210_v29 }
  0xe9   : > { %1755 = vmatprep.mubr.bf16.mxu1 %v4252_v37 }
  0xec   : > { %v2963_v36 = vpop.f32.mrf.mxu0  ;;  %v3035_v14 = vpop.f32.mrf.mxu1 }
  0xed   : > { %2207 = vmatmul.mubr.bf16.gmra.mxu0 %v4040_v44 }
  0xee   : > { %v2964_v32 = vpop.f32.mrf.mxu0  ;;  %v3036_v24 = vpop.f32.mrf.mxu1  ;;  %2214 = vmatprep.mubr.bf16.mxu0 %v4116_v26 }
  0xef   : > { %v4391_v6 = vadd.f32 %v2964_v32, %v2963_v36  ;;  %v4393_v19 = vadd.f32 %v3036_v24, %v3035_v14 }
  0xf0   : > { %v2966_v5 = vpop.f32.mrf.mxu0  ;;  %v3038_v43 = vpop.f32.mrf.mxu1  ;;  %1756 = vmatmul.mubr.bf16.gmra.mxu1 %v4218_v30 }
  0xf1   : > { %1763 = vmatprep.mubr.bf16.mxu1 %v3824_v55 }
  0xf2   : > { %v2967_v12 = vpop.f32.mrf.mxu0  ;;  %v3039_v51 = vpop.f32.mrf.mxu1 }
  0xf3   : > { %v4396_v27 = vadd.f32 %v2967_v12, %v2966_v5  ;;  %v4400_v41 = vadd.f32 %v3039_v51, %v3038_v43 }
  0xf4   : > { %v2969_v40 = vpop.f32.mrf.mxu0  ;;  %v3041_v28 = vpop.f32.mrf.mxu1 }
  0xf5   : > { %2215 = vmatmul.mubr.bf16.gmra.mxu0 %v4068_v31 }
  0xf6   : > { %v2970_v15 = vpop.f32.mrf.mxu0  ;;  %v3042_v9 = vpop.f32.mrf.mxu1  ;;  %2222 = vmatprep.mubr.bf16.mxu0 %v4143_v1 }
  0xf7   : > { %v2971_v50 = vadd.f32 %v2970_v15, %v2969_v40  ;;  %v4403_v44 = vadd.f32 %v3042_v9, %v3041_v28 }
  0xf8   : > { %v2972_v10 = vpop.f32.mrf.mxu0  ;;  %v3044_v8 = vpop.f32.mrf.mxu1  ;;  %1764 = vmatmul.mubr.bf16.gmra.mxu1 %v3786_v20 }
  0xf9   : > { %1771 = vmatprep.mubr.bf16.mxu1 %v3859_v25 }
  0xfa   : > { %v2973_v38 = vpop.f32.mrf.mxu0  ;;  %v3045_v2 = vpop.f32.mrf.mxu1 }
  0xfb   : > { %v2974_v26 = vadd.f32 %v2973_v38, %v2972_v10  ;;  %v4408_v39 = vadd.f32 %v3045_v2, %v3044_v8 }
  0xfc   : > { %v2975_v54 = vpop.f32.mrf.mxu0 }
  0xfd   : > { %2223 = vmatmul.mubr.bf16.gmra.mxu0 %v4096_v61 }
  0xfe   : > { %v2976_v63 = vpop.f32.mrf.mxu0  ;;  %2230 = vmatprep.mubr.bf16.mxu0 %v4172_v4 }
  0xff   : > { %v2977_v0 = vadd.f32 %v2976_v63, %v2975_v54 }
 0x100   : > { %v2978_v59 = vpop.f32.mrf.mxu0  ;;  %v3047_v14 = vpop.f32.mrf.mxu1  ;;  %1772 = vmatmul.mubr.bf16.gmra.mxu1 %v3819_v49 }
 0x101   : > { %1779 = vmatprep.mubr.bf16.mxu1 %v3941_v56 }
 0x102   : > { %v2979_v36 = vpop.f32.mrf.mxu0  ;;  %v3048_v1 = vpop.f32.mrf.mxu1 }
 0x103   : > { %v4412_v31 = vadd.f32 %v2979_v36, %v2978_v59  ;;  %v4417_v24 = vadd.f32 %v3048_v1, %v3047_v14 }
 0x104   : > { %v2981_v32 = vpop.f32.mrf.mxu0  ;;  %v3050_v5 = vpop.f32.mrf.mxu1 }
 0x105   : > { %2231 = vmatmul.mubr.bf16.gmra.mxu0 %v4126_v35 }
 0x106   : > { %v2982_v43 = vpop.f32.mrf.mxu0  ;;  %v3051_v51 = vpop.f32.mrf.mxu1  ;;  %2238 = vmatprep.mubr.bf16.mxu0 %v4203_v7 }
 0x107   : > { %v2983_v12 = vadd.f32 %v2982_v43, %v2981_v32  ;;  %v4420_v40 = vadd.f32 %v3051_v51, %v3050_v5 }
 0x108   : > { %v2984_v61 = vpop.f32.mrf.mxu0  ;;  %v3053_v4 = vpop.f32.mrf.mxu1  ;;  %1780 = vmatmul.mubr.bf16.gmra.mxu1 %v3905_v11 }
 0x109   : > { %3467 = vmatprep.mubr.bf16.mxu1 %v3998_v21 }
 0x10a   : > { %v2985_v28 = vpop.f32.mrf.mxu0  ;;  %v3054_v9 = vpop.f32.mrf.mxu1 }
 0x10b   : > { %v2986_v15 = vadd.f32 %v2985_v28, %v2984_v61  ;;  %v4425_v10 = vadd.f32 %v3054_v9, %v3053_v4 }
 0x10c   : > { %v3056_v8 = vpop.f32.mrf.mxu1  ;;  %v2987_v38 = vpop.f32.mrf.mxu0 }
 0x10d   : > { %2239 = vmatmul.mubr.bf16.gmra.mxu0 %v4161_v16 }
 0x10e   : > { %v3057_v2 = vpop.f32.mrf.mxu1  ;;  %v2988_v35 = vpop.f32.mrf.mxu0  ;;  %2246 = vmatprep.mubr.bf16.mxu0 %v4234_v60 }
 0x10f   : > { %v4428_v54 = vadd.f32 %v3057_v2, %v3056_v8  ;;  %v2989_v63 = vadd.f32 %v2988_v35, %v2987_v38 }
 0x110   : > { %v3373_v7 = vpop.f32.mrf.mxu1  ;;  %3468 = vmatmul.mubr.bf16.vlgmr.msra.gmra.mxu1 %v4007_v48  ;;  %v2990_v59 = vpop.f32.mrf.mxu0 }
 0x111   : > { %v4432_v36 = vadd.f32 %v3373_v7, %v2971_v50  ;;  %3471 = vmatprep.mubr.bf16.mxu1 %v4060_v3 }
 0x112   : > { %v1356_v21 = vpop.f32.mrf.mxu1  ;;  %v2991_v14 = vpop.f32.mrf.mxu0 }
 0x113   : > { %v4436_v1 = vadd.f32 %v4391_v6, %v1356_v21  ;;  %v2992_v16 = vadd.f32 %v2991_v14, %v2990_v59 }
 0x114   : > { %v3374_v32 = vpop.f32.mrf.mxu1 }
 0x115   : > { %v4438_v5 = vadd.f32 %v3374_v32, %v2974_v26  ;;  %v2993_v51 = vpop.f32.mrf.mxu0  ;;  %2247 = vmatmul.mubr.bf16.gmra.mxu0 %v4210_v29 }
 0x116   : > { %v1359_v43 = vpop.f32.mrf.mxu1  ;;  %2254 = vmatprep.mubr.bf16.mxu0 %v4252_v37 }
 0x117   : > { %v4442_v48 = vadd.f32 %v4396_v27, %v1359_v43  ;;  %v2994_v3 = vpop.f32.mrf.mxu0 }
 0x118   : > { %v3377_v60 = vpop.f32.mrf.mxu1  ;;  %3472 = vmatmul.mubr.bf16.gmra.mxu1 %v4071_v17  ;;  %v2995_v6 = vadd.f32 %v2994_v3, %v2993_v51 }
 0x119   : > { %v4446_v50 = vadd.f32 %v3377_v60, %v2983_v12  ;;  %3475 = vmatprep.mubr.bf16.mxu1 %v4122_v22  ;;  %v2996_v61 = vpop.f32.mrf.mxu0 }
 0x11a   : > { %v1372_v26 = vpop.f32.mrf.mxu1 }
 0x11b   : > { %v4449_v4 = vadd.f32 %v2977_v0, %v1372_v26  ;;  %v2997_v29 = vpop.f32.mrf.mxu0 }
 0x11c   : > { %v3378_v28 = vpop.f32.mrf.mxu1  ;;  %v2998_v27 = vadd.f32 %v2997_v29, %v2996_v61 }
 0x11d   : > { %v4451_v9 = vadd.f32 %v3378_v28, %v2986_v15  ;;  %v2999_v37 = vpop.f32.mrf.mxu0  ;;  %2255 = vmatmul.mubr.bf16.gmra.mxu0 %v4218_v30 }
 0x11e   : > { %v1375_v8 = vpop.f32.mrf.mxu1  ;;  %2262 = vmatprep.mubr.bf16.mxu0 %v3824_v55 }
 0x11f   : > { %v4455_v17 = vadd.f32 %v4412_v31, %v1375_v8  ;;  %v3000_v22 = vpop.f32.mrf.mxu0 }
 0x120   : > { %v3381_v12 = vpop.f32.mrf.mxu1  ;;  %3476 = vmatmul.mubr.bf16.gmra.mxu1 %v4133_v57  ;;  %v3001_v38 = vadd.f32 %v3000_v22, %v2999_v37 }
 0x121   : > { %v4459_v0 = vadd.f32 %v3381_v12, %v2995_v6  ;;  %3479 = vmatprep.mubr.bf16.mxu1 %v4176_v18  ;;  %v3002_v2 = vpop.f32.mrf.mxu0 }
 0x122   : > { %v1388_v15 = vpop.f32.mrf.mxu1 }
 0x123   : > { %v4462_v35 = vadd.f32 %v2989_v63, %v1388_v15  ;;  %v3003_v30 = vpop.f32.mrf.mxu0 }
 0x124   : > { %v3382_v7 = vpop.f32.mrf.mxu1  ;;  %v3004_v31 = vadd.f32 %v3003_v30, %v3002_v2 }
 0x125   : > { %v4464_v59 = vadd.f32 %v3382_v7, %v2998_v27  ;;  %v3005_v55 = vpop.f32.mrf.mxu0  ;;  %2263 = vmatmul.mubr.bf16.gmra.mxu0 %v3786_v20 }
 0x126   : > { %v1391_v21 = vpop.f32.mrf.mxu1  ;;  %2270 = vmatprep.mubr.bf16.mxu0 %v3859_v25 }
 0x127   : > { %v4467_v57 = vadd.f32 %v2992_v16, %v1391_v21  ;;  %v3006_v18 = vpop.f32.mrf.mxu0 }
 0x128   : > { %v3385_v14 = vpop.f32.mrf.mxu1  ;;  %3480 = vmatmul.mubr.bf16.gmra.mxu1 %v4183_v13  ;;  %v3007_v32 = vadd.f32 %v3006_v18, %v3005_v55 }
 0x129   : > { %3483 = vmatprep.mubr.bf16.mxu1 %v4206_v46  ;;  %v3008_v43 = vpop.f32.mrf.mxu0 }
 0x12a   : > { %v1404_v63 = vpop.f32.mrf.mxu1  ;;  %v4472_v51 = vadd.f32 %v3385_v14, %v3007_v32 }
 0x12b   : > { %v4474_v60 = vadd.f32 %v3001_v38, %v1404_v63  ;;  %v3009_v6 = vpop.f32.mrf.mxu0 }
 0x12c   : > { %v3386_v3 = vpop.f32.mrf.mxu1  ;;  %v3010_v20 = vadd.f32 %v3009_v6, %v3008_v43 }
 0x12d   : > { %v3011_v26 = vpop.f32.mrf.mxu0  ;;  %2271 = vmatmul.mubr.bf16.gmra.mxu0 %v3819_v49 }
 0x12e   : > { %v1407_v16 = vpop.f32.mrf.mxu1  ;;  %v4477_v25 = vadd.f32 %v3386_v3, %v3010_v20  ;;  %2278 = vmatprep.mubr.bf16.mxu0 %v3941_v56 }
 0x12f   : > { %v4479_v13 = vadd.f32 %v3004_v31, %v1407_v16  ;;  %v3012_v61 = vpop.f32.mrf.mxu0 }
 0x130   : > { %v3389_v46 = vpop.f32.mrf.mxu1  ;;  %3484 = vmatmul.mubr.bf16.gmra.mxu1 %v4226_v33  ;;  %v3013_v28 = vadd.f32 %v3012_v61, %v3011_v26 }
 0x131   : > { %3487 = vmatprep.mubr.bf16.mxu1 %v4238_v62  ;;  %v3014_v27 = vpop.f32.mrf.mxu0 }
 0x132   : > { %v1420_v29 = vpop.f32.mrf.mxu1 }
 0x133   : > { %v4484_v8 = vadd.f32 %v3013_v28, %v1420_v29  ;;  %v3015_v12 = vpop.f32.mrf.mxu0 }
 0x134   : > { %v3390_v37 = vpop.f32.mrf.mxu1  ;;  %v3016_v49 = vadd.f32 %v3015_v12, %v3014_v27 }
 0x135   : > { %v3017_v38 = vpop.f32.mrf.mxu0  ;;  %2279 = vmatmul.mubr.bf16.gmra.mxu0 %v3905_v11 }
 0x136   : > { %v1423_v22 = vpop.f32.mrf.mxu1  ;;  %2286 = vmatprep.mubr.bf16.mxu0 %v3982_v34 }
 0x137   : > { %v4487_v15 = vadd.f32 %v3016_v49, %v1423_v22  ;;  %v3018_v33 = vpop.f32.mrf.mxu0 }
 0x138   : > { %v3393_v56 = vpop.f32.mrf.mxu1  ;;  %3488 = vmatmul.mubr.bf16.gmra.mxu1 %v4242_v23  ;;  %v3019_v62 = vadd.f32 %v3018_v33, %v3017_v38 }
 0x139   : > { %3491 = vmatprep.mubr.bf16.mxu1 %v4255_v42  ;;  %v3020_v7 = vpop.f32.mrf.mxu0 }
 0x13a   : > { %v1436_v2 = vpop.f32.mrf.mxu1  ;;  %v4492_v30 = vadd.f32 %v3389_v46, %v3019_v62 }
 0x13b   : > { %v3021_v21 = vpop.f32.mrf.mxu0 }
 0x13c   : > { %v3394_v31 = vpop.f32.mrf.mxu1  ;;  %v3022_v55 = vadd.f32 %v3021_v21, %v3020_v7 }
 0x13d   : > { %v3023_v11 = vpop.f32.mrf.mxu0  ;;  %2287 = vmatmul.mubr.bf16.gmra.mxu0 %v3938_v52 }
 0x13e   : > { %v1439_v14 = vpop.f32.mrf.mxu1  ;;  %v4495_v18 = vadd.f32 %v3390_v37, %v3022_v55  ;;  %2294 = vmatprep.mubr.bf16.mxu0 %v4267_v47 }
 0x13f   : > { %v3024_v23 = vpop.f32.mrf.mxu0 }
 0x140   : > { %v3397_v34 = vpop.f32.mrf.mxu1  ;;  %3492 = vmatmul.mubr.bf16.gmra.mxu1 %v4259_v58  ;;  %v3025_v32 = vadd.f32 %v3024_v23, %v3023_v11 }
 0x141   : > { %v4500_v42 = vadd.f32 %v3397_v34, %v4403_v44  ;;  %3495 = vmatprep.mubr.bf16.mxu1 %v4270_v53  ;;  %v3026_v43 = vpop.f32.mrf.mxu0 }
 0x142   : > { %v1452_v63 = vpop.f32.mrf.mxu1  ;;  %v4503_v3 = vadd.f32 %v3025_v32, %v1436_v2 }
 0x143   : > { %v4506_v52 = vadd.f32 %v4393_v19, %v1452_v63  ;;  %v3027_v20 = vpop.f32.mrf.mxu0 }
 0x144   : > { %v3398_v6 = vpop.f32.mrf.mxu1  ;;  %v3028_v58 = vadd.f32 %v3027_v20, %v3026_v43 }
 0x145   : > { %v4509_v16 = vadd.f32 %v3398_v6, %v4408_v39  ;;  %v3029_v46 = vpop.f32.mrf.mxu0  ;;  %2295 = vmatmul.mubr.bf16.gmra.mxu0 %v3606_v45 }
 0x146   : > { %v1455_v26 = vpop.f32.mrf.mxu1  ;;  %v4512_v44 = vadd.f32 %v3028_v58, %v1439_v14 }
 0x147   : > { %v4515_v53 = vadd.f32 %v4400_v41, %v1455_v26  ;;  %v3030_v19 = vpop.f32.mrf.mxu0 }
 0x148   : > { %v3401_v61 = vpop.f32.mrf.mxu1  ;;  %3496 = vmatmul.mubr.bf16.gmra.mxu1 %v4267_v47  ;;  %v3031_v29 = vadd.f32 %v3030_v19, %v3029_v46 }
 0x149   : > { %v4519_v28 = vadd.f32 %v3401_v61, %v4425_v10  ;;  %v3032_v27 = vpop.f32.mrf.mxu0 }
 0x14a   : > { %v1468_v39 = vpop.f32.mrf.mxu1  ;;  %v4521_v37 = vadd.f32 %v3393_v56, %v3031_v29 }
 0x14b   : > { %4965 = vst [vmem:[#allocation2_spill] sm:$0xff] %v4519_v28  ;;  %v4524_v12 = vadd.f32 %v4417_v24, %v1468_v39  ;;  %v3033_v49 = vpop.f32.mrf.mxu0 }
 0x14c   : > { %v3402_v45 = vpop.f32.mrf.mxu1  ;;  %v3034_v22 = vadd.f32 %v3033_v49, %v3032_v27 }
 0x14d   : > { %v4527_v41 = vadd.f32 %v3402_v45, %v4428_v54  ;;  %v3421_v47 = vpop.f32.mrf.mxu0 }
 0x14e   : > { %v1471_v38 = vpop.f32.mrf.mxu1  ;;  %v4529_v33 = vadd.f32 %v3394_v31, %v3034_v22 }
 0x14f   : > { %4966 = vst [vmem:[#allocation3_spill] sm:$0xff] %v4527_v41  ;;  %v4532_v10 = vadd.f32 %v4420_v40, %v1471_v38  ;;  %v1822_v2 = vpop.f32.mrf.mxu0 }
 0x150   : > { %v3099_v62 = vpop.f32.mrf.mxu1 }
 0x151   : > { %v3422_v7 = vpop.f32.mrf.mxu0 }
 0x152   : > { %v3100_v56 = vpop.f32.mrf.mxu1 }
 0x153   : > { %v3101_v21 = vadd.f32 %v3100_v56, %v3099_v62  ;;  %v1825_v55 = vpop.f32.mrf.mxu0 }
 0x154   : > { %v3102_v24 = vpop.f32.mrf.mxu1 }
 0x155   : > { %v1662_v14 = vadd.f32 %v3101_v21, %v4436_v1  ;;  %v3425_v54 = vpop.f32.mrf.mxu0 }
 0x156   : > { %v3103_v11 = vpop.f32.mrf.mxu1 }
 0x157   : > { %v4535_v34 = vadd.f32 %v1822_v2, %v1662_v14  ;;  %v3104_v23 = vadd.f32 %v3103_v11, %v3102_v24  ;;  %v1838_v31 = vpop.f32.mrf.mxu0 }
 0x158   : > { %v3105_v32 = vpop.f32.mrf.mxu1 }
 0x159   : > { %v1665_v63 = vadd.f32 %v3104_v23, %v4442_v48  ;;  %v3426_v43 = vpop.f32.mrf.mxu0 }
 0x15a   : > { %v3106_v40 = vpop.f32.mrf.mxu1 }
 0x15b   : > { %v4538_v6 = vadd.f32 %v1825_v55, %v1665_v63  ;;  %v3107_v20 = vadd.f32 %v3106_v40, %v3105_v32  ;;  %v1841_v26 = vpop.f32.mrf.mxu0 }
 0x15c   : > { %v3108_v58 = vpop.f32.mrf.mxu1 }
 0x15d   : > { %v1670_v46 = vadd.f32 %v3107_v20, %v4432_v36  ;;  %v3429_v1 = vpop.f32.mrf.mxu0 }
 0x15e   : > { %v3109_v61 = vpop.f32.mrf.mxu1 }
 0x15f   : > { %v3110_v19 = vadd.f32 %v3109_v61, %v3108_v58  ;;  %v4541_v29 = vadd.f32 %v3421_v47, %v1670_v46  ;;  %v1854_v27 = vpop.f32.mrf.mxu0 }
 0x160   : > { %v3111_v39 = vpop.f32.mrf.mxu1 }
 0x161   : > { %v1673_v45 = vadd.f32 %v3110_v19, %v4438_v5  ;;  %v3430_v48 = vpop.f32.mrf.mxu0 }
 0x162   : > { %v3112_v49 = vpop.f32.mrf.mxu1 }
 0x163   : > { %v3113_v22 = vadd.f32 %v3112_v49, %v3111_v39  ;;  %v4544_v38 = vadd.f32 %v3422_v7, %v1673_v45  ;;  %v1857_v2 = vpop.f32.mrf.mxu0 }
 0x164   : > { %v3114_v62 = vpop.f32.mrf.mxu1 }
 0x165   : > { %v1678_v56 = vadd.f32 %v3113_v22, %v4449_v4  ;;  %v4547_v36 = vpop.f32.mrf.mxu0 }
 0x166   : > { %v3115_v21 = vpop.f32.mrf.mxu1 }
 0x167   : > { %v3116_v24 = vadd.f32 %v3115_v21, %v3114_v62  ;;  %v4549_v55 = vadd.f32 %v1838_v31, %v1678_v56  ;;  %v1870_v14 = vpop.f32.mrf.mxu0 }
 0x168   : > { %v3117_v47 = vpop.f32.mrf.mxu1 }
 0x169   : > { %v1681_v11 = vadd.f32 %v3116_v24, %v4455_v17  ;;  %v4552_v23 = vpop.f32.mrf.mxu0 }
 0x16a   : > { %v3118_v5 = vpop.f32.mrf.mxu1 }
 0x16b   : > { %v3119_v32 = vadd.f32 %v3118_v5, %v3117_v47  ;;  %v4554_v7 = vadd.f32 %v1841_v26, %v1681_v11  ;;  %v1873_v40 = vpop.f32.mrf.mxu0 }
 0x16c   : > { %v3120_v63 = vpop.f32.mrf.mxu1 }
 0x16d   : > { %v1686_v4 = vadd.f32 %v3119_v32, %v4446_v50  ;;  %v4557_v58 = vpop.f32.mrf.mxu0 }
 0x16e   : > { %v3121_v20 = vpop.f32.mrf.mxu1 }
 0x16f   : > { %v3122_v46 = vadd.f32 %v3121_v20, %v3120_v63  ;;  %v4559_v31 = vadd.f32 %v3425_v54, %v1686_v4  ;;  %v4561_v19 = vpop.f32.mrf.mxu0 }
 0x170   : > { %v3123_v61 = vpop.f32.mrf.mxu1 }
 0x171   : > { %v1689_v17 = vadd.f32 %v3122_v46, %v4451_v9  ;;  %v4564_v45 = vpop.f32.mrf.mxu0 }
 0x172   : > { %v3124_v39 = vpop.f32.mrf.mxu1 }
 0x173   : > { %v3125_v26 = vadd.f32 %v3124_v39, %v3123_v61  ;;  %v4566_v49 = vadd.f32 %v3426_v43, %v1689_v17  ;;  %v4568_v62 = vpop.f32.mrf.mxu0 }
 0x174   : > { %v3126_v22 = vpop.f32.mrf.mxu1 }
 0x175   : > { %v1694_v50 = vadd.f32 %v3125_v26, %v4462_v35  ;;  %v4571_v21 = vpop.f32.mrf.mxu0 }
 0x176   : > { %v3127_v56 = vpop.f32.mrf.mxu1 }
 0x177   : > { %v3128_v54 = vadd.f32 %v3127_v56, %v3126_v22  ;;  %v4573_v24 = vadd.f32 %v1854_v27, %v1694_v50  ;;  %v4575_v11 = vpop.f32.mrf.mxu0 }
 0x178   : > { %v3129_v47 = vpop.f32.mrf.mxu1 }
 0x179   : > { %v1697_v9 = vadd.f32 %v3128_v54, %v4467_v57  ;;  %v4578_v32 = vpop.f32.mrf.mxu0 }
 0x17a   : > { %v3130_v5 = vpop.f32.mrf.mxu1 }
 0x17b   : > { %v3131_v43 = vadd.f32 %v3130_v5, %v3129_v47  ;;  %v4580_v63 = vadd.f32 %v1857_v2, %v1697_v9  ;;  %v4582_v20 = vpop.f32.mrf.mxu0 }
 0x17c   : > { %v3132_v4 = vpop.f32.mrf.mxu1 }
 0x17d   : > { %v1702_v35 = vadd.f32 %v3131_v43, %v4459_v0  ;;  %v4585_v61 = vpop.f32.mrf.mxu0 }
 0x17e   : > { %v3133_v46 = vpop.f32.mrf.mxu1 }
 0x17f   : > { %v3134_v27 = vadd.f32 %v3133_v46, %v3132_v4  ;;  %v4587_v17 = vadd.f32 %v3429_v1, %v1702_v35  ;;  %v4589_v26 = vpop.f32.mrf.mxu0 }
 0x180   : > { %v3135_v39 = vpop.f32.mrf.mxu1 }
 0x181   : > { %v1705_v57 = vadd.f32 %v3134_v27, %v4464_v59  ;;  %v4592_v50 = vpop.f32.mrf.mxu0 }
 0x182   : > { %v3136_v22 = vpop.f32.mrf.mxu1 }
 0x183   : > { %v3137_v2 = vadd.f32 %v3136_v22, %v3135_v39  ;;  %v4594_v56 = vadd.f32 %v3430_v48, %v1705_v57  ;;  %v4596_v47 = vpop.f32.mrf.mxu0 }
 0x184   : > { %v3138_v54 = vpop.f32.mrf.mxu1 }
 0x185   : > { %v1710_v0 = vadd.f32 %v3137_v2, %v4474_v60  ;;  %v4599_v5 = vpop.f32.mrf.mxu0 }
 0x186   : > { %v3139_v9 = vpop.f32.mrf.mxu1  ;;  %4967 = vst [vmem:[#allocation4_spill] sm:$0xff] %v4599_v5 }
 0x187   : > { %v3140_v1 = vadd.f32 %v3139_v9, %v3138_v54  ;;  %v4601_v43 = vadd.f32 %v1870_v14, %v1710_v0  ;;  %v4603_v35 = vpop.f32.mrf.mxu0 }
 0x188   : > { %v3141_v4 = vpop.f32.mrf.mxu1 }
 0x189   : > { %v1713_v59 = vadd.f32 %v3140_v1, %v4479_v13  ;;  %v4606_v27 = vpop.f32.mrf.mxu0 }
 0x18a   : > { %v3142_v46 = vpop.f32.mrf.mxu1  ;;  %4968 = vst [vmem:[#allocation5_spill] sm:$0xff] %v4606_v27 }
 0x18b   : > { %v3143_v48 = vadd.f32 %v3142_v46, %v3141_v4  ;;  %v4608_v39 = vadd.f32 %v1873_v40, %v1713_v59  ;;  %v4610_v22 = vpop.f32.mrf.mxu0 }
 0x18c   : > { %v3144_v57 = vpop.f32.mrf.mxu1 }
 0x18d   : > { %v1718_v60 = vadd.f32 %v3143_v48, %v4472_v51  ;;  %v3235_v54 = vpop.f32.mrf.mxu0 }
 0x18e   : > { %v3145_v2 = vpop.f32.mrf.mxu1 }
 0x18f   : > { %v3146_v14 = vadd.f32 %v3145_v2, %v3144_v57  ;;  %v4614_v0 = vadd.f32 %v4547_v36, %v1718_v60  ;;  %v3236_v5 = vpop.f32.mrf.mxu0 }
 0x190   : > { %v3147_v9 = vpop.f32.mrf.mxu1  ;;  %v4617_v1 = vadd.f32 %v3236_v5, %v3235_v54 }
 0x191   : > { %v1721_v13 = vadd.f32 %v3146_v14, %v4477_v25  ;;  %v3238_v40 = vpop.f32.mrf.mxu0 }
 0x192   : > { %v3148_v4 = vpop.f32.mrf.mxu1 }
 0x193   : > { %v3149_v59 = vadd.f32 %v3148_v4, %v3147_v9  ;;  %v4620_v46 = vadd.f32 %v4552_v23, %v1721_v13  ;;  %v3239_v51 = vpop.f32.mrf.mxu0 }
 0x194   : > { %v3150_v27 = vpop.f32.mrf.mxu1  ;;  %v4623_v57 = vadd.f32 %v3239_v51, %v3238_v40 }
 0x195   : > { %v1726_v48 = vadd.f32 %v3149_v59, %v4484_v8  ;;  %v4625_v60 = vpop.f32.mrf.mxu0 }
 0x196   : > { %v3151_v36 = vpop.f32.mrf.mxu1 }
 0x197   : > { %v3152_v2 = vadd.f32 %v3151_v36, %v3150_v27  ;;  %v4628_v25 = vadd.f32 %v4561_v19, %v1726_v48  ;;  %v4630_v54 = vpop.f32.mrf.mxu0 }
 0x198   : > { %v3153_v5 = vpop.f32.mrf.mxu1 }
 0x199   : > { %v1729_v14 = vadd.f32 %v3152_v2, %v4487_v15  ;;  %v4633_v9 = vpop.f32.mrf.mxu0 }
 0x19a   : > { %v3154_v23 = vpop.f32.mrf.mxu1 }
 0x19b   : > { %v3155_v13 = vadd.f32 %v3154_v23, %v3153_v5  ;;  %v4636_v8 = vadd.f32 %v4568_v62, %v1729_v14  ;;  %v4638_v40 = vpop.f32.mrf.mxu0 }
 0x19c   : > { %v3156_v4 = vpop.f32.mrf.mxu1 }
 0x19d   : > { %v1734_v27 = vadd.f32 %v3155_v13, %v4492_v30  ;;  %v4641_v19 = vpop.f32.mrf.mxu0 }
 0x19e   : > { %v3157_v59 = vpop.f32.mrf.mxu1 }
 0x19f   : > { %v3158_v51 = vadd.f32 %v3157_v59, %v3156_v4  ;;  %v4644_v48 = vadd.f32 %v4557_v58, %v1734_v27  ;;  %v4646_v36 = vpop.f32.mrf.mxu0 }
 0x1a0   : > { %v3159_v15 = vpop.f32.mrf.mxu1 }
 0x1a1   : > { %v1737_v2 = vadd.f32 %v3158_v51, %v4495_v18  ;;  %v4649_v62 = vpop.f32.mrf.mxu0 }
 0x1a2   : > { %v3160_v5 = vpop.f32.mrf.mxu1 }
 0x1a3   : > { %v3161_v14 = vadd.f32 %v3160_v5, %v3159_v15  ;;  %v4652_v23 = vadd.f32 %v4564_v45, %v1737_v2  ;;  %v4654_v13 = vpop.f32.mrf.mxu0 }
 0x1a4   : > { %v3162_v30 = vpop.f32.mrf.mxu1 }
 0x1a5   : > { %v1742_v4 = vadd.f32 %v3161_v14, %v4503_v3  ;;  %v4657_v58 = vpop.f32.mrf.mxu0 }
 0x1a6   : > { %v3163_v59 = vpop.f32.mrf.mxu1 }
 0x1a7   : > { %v3164_v27 = vadd.f32 %v3163_v59, %v3162_v30  ;;  %v4660_v41 = vadd.f32 %v4575_v11, %v1742_v4  ;;  %v4662_v51 = vpop.f32.mrf.mxu0 }
 0x1a8   : > { %v3165_v18 = vpop.f32.mrf.mxu1 }
 0x1a9   : > { %4969 = vst [vmem:[#allocation6_spill] sm:$0xff] %v4660_v41  ;;  %v1745_v15 = vadd.f32 %v3164_v27, %v4512_v44  ;;  %v4665_v45 = vpop.f32.mrf.mxu0 }
 0x1aa   : > { %v3166_v5 = vpop.f32.mrf.mxu1 }
 0x1ab   : > { %v3167_v2 = vadd.f32 %v3166_v5, %v3165_v18  ;;  %v4668_v28 = vadd.f32 %v4582_v20, %v1745_v15  ;;  %v4670_v14 = vpop.f32.mrf.mxu0 }
 0x1ac   : > { %v3168_v3 = vpop.f32.mrf.mxu1 }
 0x1ad   : > { %4970 = vst [vmem:[#allocation7_spill] sm:$0xff] %v4668_v28  ;;  %v1750_v30 = vadd.f32 %v3167_v2, %v4521_v37  ;;  %v4673_v11 = vpop.f32.mrf.mxu0 }
 0x1ae   : > { %v3169_v59 = vpop.f32.mrf.mxu1 }
 0x1af   : > { %v3170_v4 = vadd.f32 %v3169_v59, %v3168_v3  ;;  %v4676_v41 = vadd.f32 %v4571_v21, %v1750_v30  ;;  %v4678_v27 = vpop.f32.mrf.mxu0 }
 0x1b0   : > { %v3171_v44 = vpop.f32.mrf.mxu1 }
 0x1b1   : > { %4971 = vst [vmem:[#allocation8_spill] sm:$0xff] %v4676_v41  ;;  %v1753_v18 = vadd.f32 %v3170_v4, %v4529_v33  ;;  %v4681_v20 = vpop.f32.mrf.mxu0 }
 0x1b2   : > { %v3172_v5 = vpop.f32.mrf.mxu1 }
 0x1b3   : > { %v3173_v15 = vadd.f32 %v3172_v5, %v3171_v44  ;;  %v4684_v28 = vadd.f32 %v4578_v32, %v1753_v18  ;;  %v4686_v2 = vpop.f32.mrf.mxu0 }
 0x1b4   : > { %v3174_v37 = vpop.f32.mrf.mxu1 }
 0x1b5   : > { %4972 = vst [vmem:[#allocation9_spill] sm:$0xff] %v4684_v28  ;;  %v1758_v3 = vadd.f32 %v3173_v15, %v4506_v52  ;;  %v4689_v21 = vpop.f32.mrf.mxu0 }
 0x1b6   : > { %v3175_v59 = vpop.f32.mrf.mxu1 }
 0x1b7   : > { %v3176_v30 = vadd.f32 %v3175_v59, %v3174_v37  ;;  %v4692_v41 = vadd.f32 %v4589_v26, %v1758_v3  ;;  %v4694_v4 = vpop.f32.mrf.mxu0 }
 0x1b8   : > { %v3177_v33 = vpop.f32.mrf.mxu1 }
 0x1b9   : > { %4973 = vst [vmem:[#allocation10_spill] sm:$0xff] %v4692_v41  ;;  %v1761_v44 = vadd.f32 %v3176_v30, %v4515_v53  ;;  %v4697_v32 = vpop.f32.mrf.mxu0 }
 0x1ba   : > { %v3178_v5 = vpop.f32.mrf.mxu1 }
 0x1bb   : > { %v3179_v18 = vadd.f32 %v3178_v5, %v3177_v33  ;;  %v4700_v28 = vadd.f32 %v4596_v47, %v1761_v44  ;;  %v4702_v15 = vpop.f32.mrf.mxu0 }
 0x1bc   : > { %v3180_v52 = vpop.f32.mrf.mxu1 }
 0x1bd   : > { %4974 = vst [vmem:[#allocation11_spill] sm:$0xff] %v4700_v28  ;;  %v1766_v37 = vadd.f32 %v3179_v18, %v4500_v42  ;;  %v4705_v26 = vpop.f32.mrf.mxu0 }
 0x1be   : > { %v3181_v59 = vpop.f32.mrf.mxu1 }
 0x1bf   : > { %v3182_v3 = vadd.f32 %v3181_v59, %v3180_v52  ;;  %v4708_v41 = vadd.f32 %v4585_v61, %v1766_v37  ;;  %v4710_v30 = vpop.f32.mrf.mxu0 }
 0x1c0   : > { %v3183_v53 = vpop.f32.mrf.mxu1 }
 0x1c1   : > { %4975 = vst [vmem:[#allocation12_spill] sm:$0xff] %v4708_v41  ;;  %v1769_v33 = vadd.f32 %v3182_v3, %v4509_v16  ;;  %v4713_v47 = vpop.f32.mrf.mxu0 }
 0x1c2   : > { %v3184_v5 = vpop.f32.mrf.mxu1 }
 0x1c3   : > { %v3185_v44 = vadd.f32 %v3184_v5, %v3183_v53  ;;  %v4716_v28 = vadd.f32 %v4592_v50, %v1769_v33  ;;  %v4718_v18 = vpop.f32.mrf.mxu0 }
 0x1c4   : > { %v3186_v42 = vpop.f32.mrf.mxu1 }
 0x1c5   : > { %4976 = vst [vmem:[#allocation13_spill] sm:$0xff] %v4716_v28  ;;  %v1774_v52 = vadd.f32 %v3185_v44, %v4524_v12  ;;  %v4721_v61 = vpop.f32.mrf.mxu0 }
 0x1c6   : > { %v3187_v59 = vpop.f32.mrf.mxu1 }
 0x1c7   : > { %v3188_v37 = vadd.f32 %v3187_v59, %v3186_v42  ;;  %v4724_v41 = vadd.f32 %v4603_v35, %v1774_v52  ;;  %v4728_v3 = vpop.f32.mrf.mxu0  ;;  %v3243_v52 = vadd.f32 %v4630_v54, %v4625_v60 }
 0x1c8   : > { %v4726_v16 = vpop.f32.mrf.mxu1 }
 0x1c9   : > { %4977 = vst [vmem:[#allocation14_spill] sm:$0xff] %v4724_v41  ;;  %4978 = vst [vmem:[#allocation15_spill] sm:$0xff] %v4726_v16  ;;  %v1777_v53 = vadd.f32 %v3188_v37, %v4532_v10  ;;  %v4733_v33 = vpop.f32.mrf.mxu0  ;;  %v3246_v41 = vadd.f32 %v4638_v40, %v4633_v9 }
 0x1ca   : > { %v4731_v50 = vpop.f32.mrf.mxu1 }
 0x1cb   : > { %4979 = vst [vmem:[#allocation16_spill] sm:$0xff] %v4731_v50  ;;  %v4736_v12 = vadd.f32 %v4610_v22, %v1777_v53  ;;  %v4740_v44 = vpop.f32.mrf.mxu0  ;;  %v4753_v22 = vld [vmem:[%s4960_s4] ss:$0 sm:$0xff] }
 0x1cc   : > { %v4738_v5 = vpop.f32.mrf.mxu1 }
 0x1cd   : > { %4980 = vst [vmem:[#allocation17_spill] sm:$0xff] %v4736_v12  ;;  %4981 = vst [vmem:[#allocation18_spill] sm:$0xff] %v4738_v5  ;;  %v4744_v42 = vpop.f32.mrf.mxu0 }
 0x1ce   : > { %v4742_v35 = vpop.f32.mrf.mxu1 }
 0x1cf   : > { %4982 = vst [vmem:[#allocation19_spill] sm:$0xff] %v4742_v35  ;;  %v4748_v59 = vpop.f32.mrf.mxu0 }
 0x1d0   : > { %v3469_v10 = vpop.f32.mrf.mxu1 }
 0x1d1   : > { %v2346_v37 = vadd.f32 %v3469_v10, %v3243_v52  ;;  %v4755_v12 = vpop.f32.mrf.mxu0 }
 0x1d2   : > { %v2337_v53 = vpop.f32.mrf.mxu1 }
 0x1d3   : > { %v2466_v28 = vadd.f32 %v2346_v37, %v4541_v29  ;;  %v2338_v35 = vadd.f32 %v4617_v1, %v2337_v53  ;;  %v4768_v54 = vpop.f32.mrf.mxu0  ;;  %v3255_v1 = vadd.f32 %v4662_v51, %v4657_v58 }
 0x1d4   : > { %v3470_v60 = vpop.f32.mrf.mxu1 }
 0x1d5   : > { %v2505_v52 = vadd.f32 %v4753_v22, %v2466_v28  ;;  %v2464_v10 = vadd.f32 %v2338_v35, %v4535_v34  ;;  %v2349_v9 = vadd.f32 %v3470_v60, %v3246_v41  ;;  %v4772_v29 = vpop.f32.mrf.mxu0  ;;  %v3249_v28 = vadd.f32 %v4646_v36, %v4641_v19 }
 0x1d6   : > { %v2340_v40 = vpop.f32.mrf.mxu1 }
 0x1d7   : > { %2537 = vst [vmem:[%s4766_s14 + $0x10] sm:$0xff] %v2505_v52  ;;  %v2503_v37 = vadd.f32 %v4753_v22, %v2464_v10  ;;  %v2467_v53 = vadd.f32 %v2349_v9, %v4544_v38  ;;  %v2341_v5 = vadd.f32 %v4623_v57, %v2340_v40  ;;  %v4780_v16 = vpop.f32.mrf.mxu0  ;;  %v3258_v10 = vadd.f32 %v4670_v14, %v4665_v45 }
 0x1d8   : > { %v3473_v50 = vpop.f32.mrf.mxu1 }
 0x1d9   : > { %2535 = vst [vmem:[%s4766_s14] sm:$0xff] %v2503_v37  ;;  %v2506_v41 = vadd.f32 %v4753_v22, %v2467_v53  ;;  %v2465_v34 = vadd.f32 %v2341_v5, %v4538_v6  ;;  %v2362_v58 = vadd.f32 %v3473_v50, %v3255_v1  ;;  %v4787_v35 = vpop.f32.mrf.mxu0  ;;  %v2604_v9 = vmul.f32 %v2503_v37, %v2503_v37 }
 0x1da   : > { %v2353_v51 = vpop.f32.mrf.mxu1  ;;  %v3252_v1 = vadd.f32 %v4654_v13, %v4649_v62 }
 0x1db   : > { %2538 = vst [vmem:[%s4766_s14 + $0x18] sm:$0xff] %v2506_v41  ;;  %v2504_v38 = vadd.f32 %v4753_v22, %v2465_v34  ;;  %v2470_v57 = vadd.f32 %v2362_v58, %v4559_v31  ;;  %v2354_v60 = vadd.f32 %v3249_v28, %v2353_v51  ;;  %v4794_v36 = vpop.f32.mrf.mxu0  ;;  %v3267_v31 = vadd.f32 %v4694_v4, %v4689_v21 }
 0x1dc   : > { %v3474_v19 = vpop.f32.mrf.mxu1  ;;  %v2606_v28 = vmul.f32 %v2505_v52, %v2505_v52  ;;  %v2607_v21 = vmul.f32 %v2506_v41, %v2506_v41 }
 0x1dd   : > { %2536 = vst [vmem:[%s4766_s14 + $0x8] sm:$0xff] %v2504_v38  ;;  %v2567_v6 = vadd.f32 %v2504_v38, %v2503_v37  ;;  %v2605_v50 = vmul.f32 %v2504_v38, %v2504_v38  ;;  %v2509_v5 = vadd.f32 %v4753_v22, %v2470_v57  ;;  %v2468_v40 = vadd.f32 %v2354_v60, %v4549_v55  ;;  %v4803_v53 = vpop.f32.mrf.mxu0 }
 0x1de   : > { %v2365_v45 = vadd.f32 %v3474_v19, %v3258_v10  ;;  %v2356_v14 = vpop.f32.mrf.mxu1  ;;  %v3261_v55 = vadd.f32 %v4678_v27, %v4673_v11 }
 0x1df   : > { %v2568_v34 = vadd.f32 %v2567_v6, %v2505_v52  ;;  %v2636_v58 = vadd.f32 %v2605_v50, %v2604_v9  ;;  %2541 = vst [vmem:[%s4766_s14 + $0x30] sm:$0xff] %v2509_v5  ;;  %v2507_v37 = vadd.f32 %v4753_v22, %v2468_v40  ;;  %v2357_v62 = vadd.f32 %v3252_v1, %v2356_v14  ;;  %v4810_v38 = vpop.f32.mrf.mxu0 }
 0x1e0   : > { %v2471_v51 = vadd.f32 %v2365_v45, %v4566_v49  ;;  %v3477_v13 = vpop.f32.mrf.mxu1  ;;  %v3270_v52 = vadd.f32 %v4702_v15, %v4697_v32 }
 0x1e1   : > { %v2637_v4 = vadd.f32 %v2636_v58, %v2606_v28  ;;  %2539 = vst [vmem:[%s4766_s14 + $0x20] sm:$0xff] %v2507_v37  ;;  %v2569_v57 = vadd.f32 %v2568_v34, %v2506_v41  ;;  %v2378_v60 = vadd.f32 %v3477_v13, %v3267_v31  ;;  %v2608_v10 = vmul.f32 %v2507_v37, %v2507_v37  ;;  %v4817_v27 = vpop.f32.mrf.mxu0 }
 0x1e2   : > { %v2510_v9 = vadd.f32 %v4753_v22, %v2471_v51  ;;  %v2469_v11 = vadd.f32 %v2357_v62, %v4554_v7  ;;  %v2369_v49 = vpop.f32.mrf.mxu1  ;;  %v3264_v41 = vadd.f32 %v4686_v2, %v4681_v20  ;;  %v3279_v20 = vadd.f32 %v4728_v3, %v4721_v61 }
 0x1e3   : > { %v2570_v19 = vadd.f32 %v2569_v57, %v2507_v37  ;;  %v2638_v6 = vadd.f32 %v2637_v4, %v2607_v21  ;;  %v2474_v50 = vadd.f32 %v2378_v60, %v4587_v17  ;;  %v2370_v40 = vadd.f32 %v3261_v55, %v2369_v49  ;;  %v4824_v1 = vpop.f32.mrf.mxu0 }
 0x1e4   : > { %2542 = vst [vmem:[%s4766_s14 + $0x38] sm:$0xff] %v2510_v9  ;;  %v2508_v32 = vadd.f32 %v4753_v22, %v2469_v11  ;;  %v3478_v15 = vpop.f32.mrf.mxu1  ;;  %v2610_v51 = vmul.f32 %v2509_v5, %v2509_v5  ;;  %v3273_v4 = vadd.f32 %v4710_v30, %v4705_v26  ;;  %v2611_v60 = vmul.f32 %v2510_v9, %v2510_v9 }
 0x1e5   : > { %v2639_v7 = vadd.f32 %v2638_v6, %v2608_v10  ;;  %v2513_v31 = vadd.f32 %v4753_v22, %v2474_v50  ;;  %v2472_v45 = vadd.f32 %v2370_v40, %v4573_v24  ;;  %v2381_v14 = vadd.f32 %v3478_v15, %v3270_v52  ;;  %v4829_v58 = vpop.f32.mrf.mxu0 }
 0x1e6   : > { %2540 = vst [vmem:[%s4766_s14 + $0x28] sm:$0xff] %v2508_v32  ;;  %v2571_v17 = vadd.f32 %v2570_v19, %v2508_v32  ;;  %v2609_v28 = vmul.f32 %v2508_v32, %v2508_v32  ;;  %v2372_v34 = vpop.f32.mrf.mxu1 }
 0x1e7   : > { %2545 = vst [vmem:[%s4766_s14 + $0x50] sm:$0xff] %v2513_v31  ;;  %v2511_v2 = vadd.f32 %v4753_v22, %v2472_v45  ;;  %v2475_v37 = vadd.f32 %v2381_v14, %v4594_v56  ;;  %v2373_v55 = vadd.f32 %v3264_v41, %v2372_v34  ;;  %v4836_v21 = vpop.f32.mrf.mxu0 }
 0x1e8   : > { %v2572_v24 = vadd.f32 %v2571_v17, %v2509_v5  ;;  %v2640_v62 = vadd.f32 %v2639_v7, %v2609_v28  ;;  %v3481_v13 = vpop.f32.mrf.mxu1  ;;  %v3282_v5 = vadd.f32 %v4740_v44, %v4733_v33  ;;  %v2614_v28 = vmul.f32 %v2513_v31, %v2513_v31 }
 0x1e9   : > { %2543 = vst [vmem:[%s4766_s14 + $0x40] sm:$0xff] %v2511_v2  ;;  %v2514_v57 = vadd.f32 %v4753_v22, %v2475_v37  ;;  %v2473_v61 = vadd.f32 %v2373_v55, %v4580_v63  ;;  %v2394_v3 = vadd.f32 %v3481_v13, %v3279_v20  ;;  %v4843_v11 = vpop.f32.mrf.mxu0  ;;  %v3276_v63 = vadd.f32 %v4718_v18, %v4713_v47 }
 0x1ea   : > { %v2641_v56 = vadd.f32 %v2640_v62, %v2610_v51  ;;  %v2573_v52 = vadd.f32 %v2572_v24, %v2510_v9  ;;  %v2385_v10 = vpop.f32.mrf.mxu1  ;;  %v2612_v6 = vmul.f32 %v2511_v2, %v2511_v2  ;;  %v3291_v47 = vadd.f32 %v4780_v16, %v4772_v29 }
 0x1eb   : > { %2546 = vst [vmem:[%s4766_s14 + $0x58] sm:$0xff] %v2514_v57  ;;  %v2512_v49 = vadd.f32 %v4753_v22, %v2473_v61  ;;  %v2478_v26 = vadd.f32 %v2394_v3, %v4614_v0  ;;  %v2386_v30 = vadd.f32 %v3273_v4, %v2385_v10  ;;  %v4852_v40 = vpop.f32.mrf.mxu0  ;;  %v3285_v37 = vadd.f32 %v4748_v59, %v4744_v42 }
 0x1ec   : > { %v2574_v19 = vadd.f32 %v2573_v52, %v2511_v2  ;;  %v2642_v50 = vadd.f32 %v2641_v56, %v2611_v60  ;;  %v3482_v9 = vpop.f32.mrf.mxu1  ;;  %v2615_v51 = vmul.f32 %v2514_v57, %v2514_v57 }
 0x1ed   : > { %2544 = vst [vmem:[%s4766_s14 + $0x48] sm:$0xff] %v2512_v49  ;;  %v2613_v41 = vmul.f32 %v2512_v49, %v2512_v49  ;;  %v2517_v33 = vadd.f32 %v4753_v22, %v2478_v26  ;;  %v2476_v44 = vadd.f32 %v2386_v30, %v4601_v43  ;;  %v2397_v32 = vadd.f32 %v3482_v9, %v3282_v5  ;;  %v4857_v45 = vpop.f32.mrf.mxu0 }
 0x1ee   : > { %v2643_v0 = vadd.f32 %v2642_v50, %v2612_v6  ;;  %v2575_v15 = vadd.f32 %v2574_v19, %v2512_v49  ;;  %v2388_v7 = vpop.f32.mrf.mxu1 }
 0x1ef   : > { %2549 = vst [vmem:[%s4766_s14 + $0x70] sm:$0xff] %v2517_v33  ;;  %v2515_v18 = vadd.f32 %v4753_v22, %v2476_v44  ;;  %v2479_v14 = vadd.f32 %v2397_v32, %v4620_v46  ;;  %v2389_v17 = vadd.f32 %v3276_v63, %v2388_v7  ;;  %v4864_v2 = vpop.f32.mrf.mxu0  ;;  %v2618_v19 = vmul.f32 %v2517_v33, %v2517_v33 }
 0x1f0   : > { %v2576_v34 = vadd.f32 %v2575_v15, %v2513_v31  ;;  %v2644_v43 = vadd.f32 %v2643_v0, %v2613_v41  ;;  %v3485_v20 = vpop.f32.mrf.mxu1  ;;  %v3294_v31 = vadd.f32 %v4794_v36, %v4787_v35  ;;  %v3297_v41 = vadd.f32 %v4810_v38, %v4803_v53 }
 0x1f1   : > { %2547 = vst [vmem:[%s4766_s14 + $0x60] sm:$0xff] %v2515_v18  ;;  %v2518_v55 = vadd.f32 %v4753_v22, %v2479_v14  ;;  %v2477_v16 = vadd.f32 %v2389_v17, %v4608_v39  ;;  %v2410_v29 = vadd.f32 %v3485_v20, %v3291_v47  ;;  %v4871_v13 = vpop.f32.mrf.mxu0  ;;  %v3288_v39 = vadd.f32 %v4768_v54, %v4755_v12 }
 0x1f2   : > { %v2645_v46 = vadd.f32 %v2644_v43, %v2614_v28  ;;  %v2577_v24 = vadd.f32 %v2576_v34, %v2514_v57  ;;  %v2401_v62 = vpop.f32.mrf.mxu1  ;;  %v2616_v3 = vmul.f32 %v2515_v18, %v2515_v18  ;;  %v3303_v12 = vadd.f32 %v4836_v21, %v4829_v58 }
 0x1f3   : > { %2550 = vst [vmem:[%s4766_s14 + $0x78] sm:$0xff] %v2518_v55  ;;  %v2516_v4 = vadd.f32 %v4753_v22, %v2477_v16  ;;  %v2482_v42 = vadd.f32 %v2410_v29, %v4644_v48  ;;  %v2402_v59 = vadd.f32 %v3285_v37, %v2401_v62  ;;  %v4880_v56 = vpop.f32.mrf.mxu0  ;;  %v2619_v32 = vmul.f32 %v2518_v55, %v2518_v55 }
 0x1f4   : > { %v2578_v61 = vadd.f32 %v2577_v24, %v2515_v18  ;;  %v2646_v60 = vadd.f32 %v2645_v46, %v2615_v51  ;;  %v3486_v57 = vpop.f32.mrf.mxu1  ;;  %v4983_v18 = vld [vmem:[#allocation8_spill] sm:$0xff] }
 0x1f5   : > { %2548 = vst [vmem:[%s4766_s14 + $0x68] sm:$0xff] %v2516_v4  ;;  %v2617_v52 = vmul.f32 %v2516_v4, %v2516_v4  ;;  %v2521_v35 = vadd.f32 %v4753_v22, %v2482_v42  ;;  %v2480_v36 = vadd.f32 %v2402_v59, %v4628_v25  ;;  %v2413_v10 = vadd.f32 %v3486_v57, %v3294_v31  ;;  %v3313_v26 = vpop.f32.mrf.mxu0  ;;  %v4986_v57 = vld [vmem:[#allocation7_spill] sm:$0xff] }
 0x1f6   : > { %v2647_v48 = vadd.f32 %v2646_v60, %v2616_v3  ;;  %v2579_v5 = vadd.f32 %v2578_v61, %v2516_v4  ;;  %v2404_v49 = vpop.f32.mrf.mxu1  ;;  %v3309_v3 = vadd.f32 %v4864_v2, %v4857_v45  ;;  %v4989_v45 = vld [vmem:[#allocation12_spill] sm:$0xff] }
 0x1f7   : > { %2553 = vst [vmem:[%s4766_s14 + $0x90] sm:$0xff] %v2521_v35  ;;  %v2519_v54 = vadd.f32 %v4753_v22, %v2480_v36  ;;  %v2483_v30 = vadd.f32 %v2413_v10, %v4652_v23  ;;  %v2405_v63 = vadd.f32 %v3288_v39, %v2404_v49  ;;  %v3314_v9 = vpop.f32.mrf.mxu0  ;;  %v2622_v4 = vmul.f32 %v2521_v35, %v2521_v35  ;;  %v4987_v10 = vld [vmem:[#allocation15_spill] sm:$0xff] }
 0x1f8   : > { %v2580_v6 = vadd.f32 %v2579_v5, %v2517_v33  ;;  %v2648_v50 = vadd.f32 %v2647_v48, %v2617_v52  ;;  %v3489_v25 = vpop.f32.mrf.mxu1  ;;  %v3306_v33 = vadd.f32 %v4852_v40, %v4843_v11  ;;  %v4984_v11 = vld [vmem:[#allocation6_spill] sm:$0xff]  ;;  %v3315_v24 = vadd.f32 %v3314_v9, %v3313_v26  ;;  %v4988_v48 = vld [vmem:[#allocation16_spill] sm:$0xff] }
 0x1f9   : > { %2551 = vst [vmem:[%s4766_s14 + $0x80] sm:$0xff] %v2519_v54  ;;  %v2522_v44 = vadd.f32 %v4753_v22, %v2483_v30  ;;  %v2481_v58 = vadd.f32 %v2405_v63, %v4636_v8  ;;  %v2426_v21 = vadd.f32 %v3489_v25, %v3303_v12  ;;  %v3316_v7 = vpop.f32.mrf.mxu0  ;;  %v3300_v8 = vadd.f32 %v4824_v1, %v4817_v27  ;;  %v4985_v1 = vld [vmem:[#allocation9_spill] sm:$0xff] }
 0x1fa   : > { %v2649_v0 = vadd.f32 %v2648_v50, %v2618_v19  ;;  %v2581_v23 = vadd.f32 %v2580_v6, %v2518_v55  ;;  %v2417_v15 = vpop.f32.mrf.mxu1  ;;  %v2620_v17 = vmul.f32 %v2519_v54, %v2519_v54  ;;  %v3191_v5 = vadd.f32 %v4988_v48, %v4987_v10 }
 0x1fb   : > { %2554 = vst [vmem:[%s4766_s14 + $0x98] sm:$0xff] %v2522_v44  ;;  %v2520_v47 = vadd.f32 %v4753_v22, %v2481_v58  ;;  %v2486_v53 = vadd.f32 %v2426_v21, %v4983_v18  ;;  %v2418_v38 = vadd.f32 %v3297_v41, %v2417_v15  ;;  %v3317_v43 = vpop.f32.mrf.mxu0  ;;  %v2623_v49 = vmul.f32 %v2522_v44, %v2522_v44  ;;  %v4991_v15 = vld [vmem:[#allocation18_spill] sm:$0xff] }
 0x1fc   : > { %v2582_v14 = vadd.f32 %v2581_v23, %v2519_v54  ;;  %v2650_v28 = vadd.f32 %v2649_v0, %v2619_v32  ;;  %v3490_v34 = vpop.f32.mrf.mxu1  ;;  %v3318_v30 = vadd.f32 %v3317_v43, %v3316_v7  ;;  %v3312_v6 = vadd.f32 %v4880_v56, %v4871_v13  ;;  %v4990_v32 = vld [vmem:[#allocation10_spill] sm:$0xff]  ;;  %v4992_v7 = vld [vmem:[#allocation19_spill] sm:$0xff] }
 0x1fd   : > { %2552 = vst [vmem:[%s4766_s14 + $0x88] sm:$0xff] %v2520_v47  ;;  %v2621_v20 = vmul.f32 %v2520_v47, %v2520_v47  ;;  %v2525_v37 = vadd.f32 %v4753_v22, %v2486_v53  ;;  %v2484_v40 = vadd.f32 %v2418_v38, %v4984_v11  ;;  %v2429_v55 = vadd.f32 %v3490_v34, %v3306_v33  ;;  %v3319_v46 = vpop.f32.mrf.mxu0  ;;  %v4993_v53 = vld [vmem:[#allocation2_spill] sm:$0xff] }
 0x1fe   : > { %v2651_v16 = vadd.f32 %v2650_v28, %v2620_v17  ;;  %v2583_v29 = vadd.f32 %v2582_v14, %v2520_v47  ;;  %v2420_v51 = vpop.f32.mrf.mxu1  ;;  %v3194_v33 = vadd.f32 %v4992_v7, %v4991_v15  ;;  %v1782_v38 = vadd.f32 %v3191_v5, %v4993_v53  ;;  %v4994_v14 = vld [vmem:[#allocation13_spill] sm:$0xff] }
 0x1ff   : > { %2557 = vst [vmem:[%s4766_s14 + $0xb0] sm:$0xff] %v2525_v37  ;;  %v2523_v27 = vadd.f32 %v4753_v22, %v2484_v40  ;;  %v2487_v62 = vadd.f32 %v2429_v55, %v4985_v1  ;;  %v2421_v31 = vadd.f32 %v3300_v8, %v2420_v51  ;;  %v3320_v61 = vpop.f32.mrf.mxu0  ;;  %v2626_v34 = vmul.f32 %v2525_v37, %v2525_v37 }
 0x200   : > { %v2584_v42 = vadd.f32 %v2583_v29, %v2521_v35  ;;  %v2652_v59 = vadd.f32 %v2651_v16, %v2621_v20  ;;  %v3493_v39 = vpop.f32.mrf.mxu1  ;;  %v3321_v55 = vadd.f32 %v3320_v61, %v3319_v46  ;;  %v4995_v29 = vld [vmem:[#allocation11_spill] sm:$0xff] }
 0x201   : > { %2555 = vst [vmem:[%s4766_s14 + $0xa0] sm:$0xff] %v2523_v27  ;;  %v2526_v60 = vadd.f32 %v4753_v22, %v2487_v62  ;;  %v2485_v52 = vadd.f32 %v2421_v31, %v4986_v57  ;;  %v2442_v36 = vadd.f32 %v3493_v39, %v3315_v24  ;;  %v3322_v54 = vpop.f32.mrf.mxu0  ;;  %v2624_v25 = vmul.f32 %v2523_v27, %v2523_v27 }
 0x202   : > { %v2653_v26 = vadd.f32 %v2652_v59, %v2622_v4  ;;  %v2585_v12 = vadd.f32 %v2584_v42, %v2522_v44  ;;  %v2433_v35 = vpop.f32.mrf.mxu1 }
 0x203   : > { %2558 = vst [vmem:[%s4766_s14 + $0xb8] sm:$0xff] %v2526_v60  ;;  %v2524_v63 = vadd.f32 %v4753_v22, %v2485_v52  ;;  %v2490_v2 = vadd.f32 %v2442_v36, %v4989_v45  ;;  %v2434_v19 = vadd.f32 %v3309_v3, %v2433_v35  ;;  %v3323_v58 = vpop.f32.mrf.mxu0  ;;  %v2627_v62 = vmul.f32 %v2526_v60, %v2526_v60 }
 0x204   : > { %v2586_v50 = vadd.f32 %v2585_v12, %v2523_v27  ;;  %v2654_v9 = vadd.f32 %v2653_v26, %v2623_v49  ;;  %v3494_v41 = vpop.f32.mrf.mxu1  ;;  %v4996_v27 = vld [vmem:[#allocation3_spill] sm:$0xff]  ;;  %v3324_v10 = vadd.f32 %v3323_v58, %v3322_v54  ;;  %v4998_v26 = vld [vmem:[#allocation14_spill] sm:$0xff] }
 0x205   : > { %2556 = vst [vmem:[%s4766_s14 + $0xa8] sm:$0xff] %v2524_v63  ;;  %v2625_v44 = vmul.f32 %v2524_v63, %v2524_v63  ;;  %v2529_v21 = vadd.f32 %v4753_v22, %v2490_v2  ;;  %v2488_v0 = vadd.f32 %v2434_v19, %v4990_v32  ;;  %v2445_v23 = vadd.f32 %v3494_v41, %v3318_v30  ;;  %v3325_v56 = vpop.f32.mrf.mxu0  ;;  %v4999_v30 = vld [vmem:[#allocation5_spill] sm:$0xff] }
 0x206   : > { %v2655_v47 = vadd.f32 %v2654_v9, %v2624_v25  ;;  %v2587_v18 = vadd.f32 %v2586_v50, %v2524_v63  ;;  %v2436_v13 = vpop.f32.mrf.mxu1  ;;  %v1785_v1 = vadd.f32 %v3194_v33, %v4996_v27  ;;  %v5000_v32 = vld [vmem:[#allocation17_spill] sm:$0xff] }
 0x207   : > { %2561 = vst [vmem:[%s4766_s14 + $0xd0] sm:$0xff] %v2529_v21  ;;  %v2527_v8 = vadd.f32 %v4753_v22, %v2488_v0  ;;  %v2491_v17 = vadd.f32 %v2445_v23, %v4994_v14  ;;  %v2437_v28 = vadd.f32 %v3312_v6, %v2436_v13  ;;  %v3326_v40 = vpop.f32.mrf.mxu0  ;;  %v2630_v9 = vmul.f32 %v2529_v21, %v2529_v21 }
 0x208   : > { %v2588_v43 = vadd.f32 %v2587_v18, %v2525_v37  ;;  %v2656_v20 = vadd.f32 %v2655_v47, %v2625_v44  ;;  %v3497_v11 = vpop.f32.mrf.mxu1  ;;  %v3327_v24 = vadd.f32 %v3326_v40, %v3325_v56  ;;  %v4997_v37 = vld [vmem:[#allocation4_spill] sm:$0xff]  ;;  %v1946_v63 = vadd.f32 %v4999_v30, %v1785_v1 }
 0x209   : > { %2559 = vst [vmem:[%s4766_s14 + $0xc0] sm:$0xff] %v2527_v8  ;;  %v2530_v16 = vadd.f32 %v4753_v22, %v2491_v17  ;;  %v2489_v51 = vadd.f32 %v2437_v28, %v4995_v29  ;;  %v3328_v59 = vpop.f32.mrf.mxu0  ;;  %v1943_v39 = vadd.f32 %v4997_v37, %v1782_v38  ;;  %v2628_v52 = vmul.f32 %v2527_v8, %v2527_v8 }
 0x20a   : > { %v2657_v31 = vadd.f32 %v2656_v20, %v2626_v34  ;;  %v2589_v4 = vadd.f32 %v2588_v43, %v2526_v60  ;;  %v2449_v42 = vpop.f32.mrf.mxu1  ;;  %v2458_v46 = vadd.f32 %v3497_v11, %v3327_v24 }
 0x20b   : > { %2562 = vst [vmem:[%s4766_s14 + $0xd8] sm:$0xff] %v2530_v16  ;;  %v2528_v3 = vadd.f32 %v4753_v22, %v2489_v51  ;;  %v2450_v61 = vadd.f32 %v3321_v55, %v2449_v42  ;;  %v3329_v5 = vpop.f32.mrf.mxu0  ;;  %v2631_v23 = vmul.f32 %v2530_v16, %v2530_v16 }
 0x20c   : > { %v2590_v57 = vadd.f32 %v2589_v4, %v2527_v8  ;;  %v2658_v36 = vadd.f32 %v2657_v31, %v2627_v62  ;;  %v3498_v48 = vpop.f32.mrf.mxu1  ;;  %v2494_v60 = vadd.f32 %v2458_v46, %v1943_v39  ;;  %v3330_v35 = vadd.f32 %v3329_v5, %v3328_v59 }
 0x20d   : > { %2560 = vst [vmem:[%s4766_s14 + $0xc8] sm:$0xff] %v2528_v3  ;;  %v2629_v49 = vmul.f32 %v2528_v3, %v2528_v3  ;;  %v2492_v12 = vadd.f32 %v2450_v61, %v4998_v26 }
 0x20e   : > { %v2659_v45 = vadd.f32 %v2658_v36, %v2628_v52  ;;  %v2591_v2 = vadd.f32 %v2590_v57, %v2528_v3  ;;  %v2452_v19 = vpop.f32.mrf.mxu1  ;;  %v2533_v6 = vadd.f32 %v4753_v22, %v2494_v60  ;;  %v2461_v54 = vadd.f32 %v3498_v48, %v3330_v35 }
 0x20f   : > { %v2531_v50 = vadd.f32 %v4753_v22, %v2492_v12  ;;  %v2453_v25 = vadd.f32 %v3324_v10, %v2452_v19 }
 0x210   : > { %v2592_v41 = vadd.f32 %v2591_v2, %v2529_v21  ;;  %v2660_v58 = vadd.f32 %v2659_v45, %v2629_v49  ;;  %2565 = vst [vmem:[%s4766_s14 + $0xf0] sm:$0xff] %v2533_v6  ;;  %v2495_v44 = vadd.f32 %v2461_v54, %v1946_v63  ;;  %v2634_v8 = vmul.f32 %v2533_v6, %v2533_v6 }
 0x211   : > { %2563 = vst [vmem:[%s4766_s14 + $0xe0] sm:$0xff] %v2531_v50  ;;  %v2493_v0 = vadd.f32 %v2453_v25, %v5000_v32  ;;  %v2632_v13 = vmul.f32 %v2531_v50, %v2531_v50 }
 0x212   : > { %v2661_v15 = vadd.f32 %v2660_v58, %v2630_v9  ;;  %v2593_v7 = vadd.f32 %v2592_v41, %v2530_v16  ;;  %v2534_v33 = vadd.f32 %v4753_v22, %v2495_v44 }
 0x213   : > { %v2532_v47 = vadd.f32 %v4753_v22, %v2493_v0 }
 0x214   : > { %v2594_v18 = vadd.f32 %v2593_v7, %v2531_v50  ;;  %v2662_v56 = vadd.f32 %v2661_v15, %v2631_v23  ;;  %2566 = vst [vmem:[%s4766_s14 + $0xf8] sm:$0xff] %v2534_v33  ;;  %v2635_v28 = vmul.f32 %v2534_v33, %v2534_v33 }
 0x215   : > { %2564 = vst [vmem:[%s4766_s14 + $0xe8] sm:$0xff] %v2532_v47  ;;  %v2633_v53 = vmul.f32 %v2532_v47, %v2532_v47 }
 0x216   : > { %v2663_v21 = vadd.f32 %v2662_v56, %v2632_v13  ;;  %v2595_v38 = vadd.f32 %v2594_v18, %v2532_v47 }
 0x218   : > { %v2596_v14 = vadd.f32 %v2595_v38, %v2533_v6  ;;  %v2664_v17 = vadd.f32 %v2663_v21, %v2633_v53 }
 0x21a   : > { %v2597_v34 = vadd.f32 %v2596_v14, %v2534_v33  ;;  %v2665_v43 = vadd.f32 %v2664_v17, %v2634_v8 }
 0x21c   : > { %v2598_v20 = vrot.slane %v2597_v34, 4  ;;  %v2666_v11 = vadd.f32 %v2665_v43, %v2635_v28 }
 0x21e   : > { %v2599_v40 = vadd.f32 %v2598_v20, %v2597_v34  ;;  %v2667_v55 = vrot.slane %v2666_v11, 4 }
 0x220   : > { %v2600_v22 = vrot.slane %v2599_v40, 2  ;;  %v2668_v16 = vadd.f32 %v2667_v55, %v2666_v11 }
 0x222   : > { %v2601_v29 = vadd.f32 %v2600_v22, %v2599_v40  ;;  %v2669_v51 = vrot.slane %v2668_v16, 2 }
 0x224   : > { %v2602_v24 = vrot.slane %v2601_v29, 1  ;;  %v2670_v27 = vadd.f32 %v2669_v51, %v2668_v16 }
 0x226   : > { %v2671_v1 = vrot.slane %v2670_v27, 1  ;;  %v2603_v62 = vadd.f32 %v2602_v24, %v2601_v29 }
 0x228   : > { %v2672_v31 = vadd.f32 %v2671_v1, %v2670_v27 }
 0x22a   : > { %v2674_v4 = vsel %vm566_vm0, %v2603_v62, %v2672_v31 }
 0x22b   : > { %2675 = vst [vmem:[%s262_s17] sm:$0x3] %v2674_v4 }
 0x22c PF: > { %s17_s21 = sadd.s32 1, %s3604_s21  }
 0x22d   : > { %p14_p4 = scmp.ge.s32.totalorder %s17_s21, 4  }
 0x22f   :  { %16 = sbr.rel (!%p14_p4) target bundleno = 1 (0x1), region = 84 }

// kernel: up_forward.3
= control target key start
LH: loop header
LB: loop body
LE: loop exit
PB: predicated region body
PF: predicated region fallthrough
CT: control target
= control target key end

     0   :  { %s3725_s21 = smov 0   ;;  %s4959_s0 = inlined_call_operand.vmem [shape: bf16[2,16,16,4], index: 0, kind: input, shape index: {}]   ;;  %s4960_s1 = inlined_call_operand.vmem [shape: bf16[2,16,16,4], index: 1, kind: input, shape index: {}]   ;;  %s4961_s2 = inlined_call_operand.vmem [shape: bf16[3,12,128], index: 2, kind: input, shape index: {}]   ;;  %s4962_s3 = inlined_call_operand.vmem [shape: bf16[3,12,128], index: 3, kind: input, shape index: {}]   ;;  %s4963_s4 = inlined_call_operand.vmem [shape: f32[1,128], index: 4, kind: input, shape index: {}]   ;;  %s4964_s5 = inlined_call_operand.vmem [shape: f32[2,256,128], index: 5, kind: output, shape index: {0}]   ;;  %s4965_s6 = inlined_call_operand.vmem [shape: f32[2,2,128], index: 6, kind: output, shape index: {1}]  }
   0x1 LB: > { %s3158_s22 = sadd.s32 4294967295, %s3685_s21   ;;  %p3162_p0 = scmp.ge.s32.totalorder %s3685_s21, 1  ;;  %s3685_s21 = sphi %s3725_s21, %s17_s21  }
   0x2   : > { %p225_p1 = scmp.lt.s32.totalorder %s3685_s21, 3 }
   0x4   : > { %p226_p2 = pnand %p3162_p0, %p225_p1 }
   0x6   : > { %229 = sbr.rel (%p226_p2) target bundleno = 567 (0x237), region = 40 }
   0xb   : > { %p264_p3 = scmp.lt.s32.totalorder %s3158_s22, 1  ;;  %v3687_v0 = vmov 0   ;;  %vm541_vm0 = vsmask.f32 256  ;;  %s3688_s23 = smov 4   ;;  %vm540_vm1 = vcmask 1040384  }
   0xc   : > { %v3733_v1 = vrot.slane %v3687_v0, 1  ;;  %vm827_vm2 = vcmask 1046528   ;;  %vm3750_vm3 = vmand %vm540_vm1, %vm541_vm0  ;;  %vm575_vm4 = vsmask.f32 7424  ;;  %s3689_s28 = smov 8   ;;  %vm1041_vm5 = vcmask 1045504  }
   0xd   : > { %s4999_s22 = smov (!%p264_p3, %s3158_s22), 1  ;;  %vm907_vm6 = vcmask 31744   ;;  %vm940_vm7 = vcmask 64512   ;;  %vm1008_vm8 = vcmask 97280  }
   0xe   : > { %764 = vrot.lane.b32.xlu1 %v3733_v1, %s3688_s23  ;;  %s3315_s24 = sshll.u32 %s4999_s22, 7  ;;  %s3317_s20 = sshll.u32 %s4999_s22, 8 }
   0xf   : > { %s3745_s27 = scalar_lea.vmem %s4959_s0, %s3315_s24  ;;  %s3831_s7 = scalar_lea.vmem %s4960_s1, %s3315_s24 }
  0x10   : > { %v3641_v2 = vld [vmem:[%s3745_s27 + $0x8] sm:$0xff]   ;;  %v3642_v3 = vld [vmem:[%s3745_s27] sm:$0xff]   ;;  %v3643_v9 = vld [vmem:[%s3745_s27 + $0x18] sm:$0xff]  }
  0x11   : > { %v404_v4 = vshrl.u32 %v3641_v2, 16  ;;  %v407_v5 = vshll.u32 %v3641_v2, 16  ;;  %v397_v7 = vshrl.u32 %v3642_v3, 16  ;;  %v400_v8 = vshll.u32 %v3642_v3, 16  ;;  %v3644_v10 = vld [vmem:[%s3745_s27 + $0x10] sm:$0xff]   ;;  %v3757_v12 = vld [vmem:[%s3745_s27 + $0x28] sm:$0xff]  }
  0x12   : > { %v418_v14 = vshrl.u32 %v3643_v9, 16  ;;  %v421_v15 = vshll.u32 %v3643_v9, 16  ;;  %v411_v16 = vshrl.u32 %v3644_v10, 16  ;;  %v414_v19 = vshll.u32 %v3644_v10, 16  ;;  %v3646_v57 = vld [vmem:[%s3745_s27 + $0x20] sm:$0xff]   ;;  %v3647_v62 = vld [vmem:[%s3745_s27 + $0x38] sm:$0xff]  }
  0x13   : > { %v406_v11 = vrot.slane %v404_v4, 7  ;;  %v399_v13 = vrot.slane %v397_v7, 7  ;;  %v432_v20 = vshrl.u32 %v3757_v12, 16  ;;  %v3648_v9 = vld [vmem:[%s3745_s27 + $0x30] sm:$0xff]  }
  0x14   : > { %v420_v28 = vrot.slane %v418_v14, 7  ;;  %v413_v44 = vrot.slane %v411_v16, 7 }
  0x15   : > { %v409_v17 = vor.u32 %v407_v5, %v406_v11  ;;  %v560_v18 = vsel %vm3750_vm3, %v406_v11, 0  ;;  %v402_v22 = vor.u32 %v400_v8, %v399_v13  ;;  %v559_v23 = vsel %vm3750_vm3, %v399_v13, 0 }
  0x16   : > { %v834_v21 = vrot.slane %v560_v18, 1  ;;  %v604_v24 = vshll.u32 %v560_v18, 16  ;;  %v831_v26 = vrot.slane %v559_v23, 1  ;;  %v592_v27 = vshll.u32 %v559_v23, 16 }
  0x17   : > { %v3766_v25 = vsel %vm3750_vm3, 0, %v409_v17  ;;  %v3771_v30 = vsel %vm3750_vm3, 0, %v402_v22  ;;  %v423_v40 = vor.u32 %v421_v15, %v420_v28  ;;  %v562_v43 = vsel %vm3750_vm3, %v420_v28, 0 }
  0x18   : > { %v833_v29 = vrot.slane %v3766_v25, 1  ;;  %v597_v31 = vshrl.u32 %v3766_v25, 16  ;;  %v599_v32 = vshll.u32 %v3766_v25, 16  ;;  %v830_v33 = vrot.slane %v3771_v30, 1 }
  0x19   : > { %v585_v34 = vshrl.u32 %v3771_v30, 16  ;;  %v587_v35 = vshll.u32 %v3771_v30, 16  ;;  %v594_v36 = vrot.slane %v592_v27, 1  ;;  %v606_v39 = vrot.slane %v604_v24, 1 }
  0x1a   : > { %v835_v37 = vsel %vm827_vm2, %v833_v29, %v834_v21  ;;  %v601_v38 = vrot.slane %v599_v32, 1  ;;  %v832_v41 = vsel %vm827_vm2, %v830_v33, %v831_v26  ;;  %v3786_v46 = vsel %vm3750_vm3, 0, %v423_v40 }
  0x1b   : > { %879 = vrot.lane.b32.xlu0 %v835_v37, %s3689_s28  ;;  %v589_v42 = vrot.slane %v587_v35, 1  ;;  %877 = vrot.lane.b32.xlu1 %v832_v41, %s3689_s28  ;;  %v628_v47 = vshll.u32 %v562_v43, 16  ;;  %v840_v48 = vrot.slane %v562_v43, 1  ;;  %v621_v50 = vshrl.u32 %v3786_v46, 16 }
  0x1c   : > { %v602_v45 = vor.u32 %v601_v38, %v597_v31  ;;  %v623_v51 = vshll.u32 %v3786_v46, 16  ;;  %v416_v52 = vor.u32 %v414_v19, %v413_v44  ;;  %v561_v55 = vsel %vm3750_vm3, %v413_v44, 0 }
  0x1d   : > { %v590_v49 = vor.u32 %v589_v42, %v585_v34  ;;  %v630_v54 = vrot.slane %v628_v47, 1  ;;  %v839_v56 = vrot.slane %v3786_v46, 1  ;;  %v616_v61 = vshll.u32 %v561_v55, 16 }
  0x1e   : > { %v607_v53 = vsel %vm575_vm4, %v602_v45, %v606_v39  ;;  %v625_v59 = vrot.slane %v623_v51, 1  ;;  %v3798_v60 = vsel %vm3750_vm3, 0, %v416_v52  ;;  %v837_v7 = vrot.slane %v561_v55, 1  ;;  %v3649_v52 = vld [vmem:[%s3745_s27 + $0x48] sm:$0xff]  }
  0x1f   : > { %v595_v58 = vsel %vm575_vm4, %v590_v49, %v594_v36  ;;  %875 = vrot.lane.b32.xlu1 %v3733_v1, %s3689_s28  ;;  %v609_v63 = vshrl.u32 %v3798_v60, 16  ;;  %v611_v0 = vshll.u32 %v3798_v60, 16  ;;  %v841_v2 = vsel %vm827_vm2, %v839_v56, %v840_v48 }
  0x20   : > { %766 = vrot.lane.b32.xlu0 %v595_v58, %s3688_s23  ;;  %v836_v3 = vrot.slane %v3798_v60, 1  ;;  %v626_v4 = vor.u32 %v625_v59, %v621_v50  ;;  %v618_v5 = vrot.slane %v616_v61, 1  ;;  %v434_v8 = vrot.slane %v432_v20, 7 }
  0x21   : > { %v613_v10 = vrot.slane %v611_v0, 1  ;;  %v435_v11 = vshll.u32 %v3757_v12, 16  ;;  %v425_v13 = vshrl.u32 %v3646_v57, 16  ;;  %v428_v1 = vshll.u32 %v3646_v57, 16  ;;  %v3650_v57 = vld [vmem:[%s3745_s27 + $0x40] sm:$0xff]  }
  0x22   : > { %v631_v14 = vsel %vm575_vm4, %v626_v4, %v630_v54  ;;  %v838_v15 = vsel %vm827_vm2, %v836_v3, %v837_v7  ;;  %v564_v16 = vsel %vm3750_vm3, %v434_v8, 0  ;;  %v446_v17 = vshrl.u32 %v3647_v62, 16 }
  0x23   : > { %772 = vrot.lane.b32.xlu1 %v631_v14, %s3688_s23  ;;  %v614_v18 = vor.u32 %v613_v10, %v609_v63  ;;  %v437_v19 = vor.u32 %v435_v11, %v434_v8  ;;  %v652_v20 = vshll.u32 %v564_v16, 16  ;;  %v427_v21 = vrot.slane %v425_v13, 7  ;;  %v3651_v63 = vld [vmem:[%s3745_s27 + $0x58] sm:$0xff]  }
  0x24   : > { %768 = vrot.lane.b32.xlu0 %v607_v53, %s3688_s23  ;;  %v846_v12 = vrot.slane %v564_v16, 1  ;;  %v448_v22 = vrot.slane %v446_v17, 7  ;;  %v449_v23 = vshll.u32 %v3647_v62, 16  ;;  %v439_v24 = vshrl.u32 %v3648_v9, 16 }
  0x25   : > { %v619_v26 = vsel %vm575_vm4, %v614_v18, %v618_v5  ;;  %v3819_v27 = vsel %vm3750_vm3, 0, %v437_v19  ;;  %v654_v28 = vrot.slane %v652_v20, 1  ;;  %v430_v29 = vor.u32 %v428_v1, %v427_v21  ;;  %v3862_v5 = vld [vmem:[%s3745_s27 + $0x50] sm:$0xff]  }
  0x26   : > { %v645_v31 = vshrl.u32 %v3819_v27, 16  ;;  %v647_v32 = vshll.u32 %v3819_v27, 16  ;;  %v563_v33 = vsel %vm3750_vm3, %v427_v21, 0  ;;  %v845_v34 = vrot.slane %v3819_v27, 1 }
  0x27   : > { %883 = vrot.lane.b32.xlu1 %v841_v2, %s3689_s28  ;;  %v3837_v35 = vsel %vm3750_vm3, 0, %v430_v29  ;;  %v640_v36 = vshll.u32 %v563_v33, 16  ;;  %v843_v37 = vrot.slane %v563_v33, 1  ;;  %v451_v38 = vor.u32 %v449_v23, %v448_v22 }
  0x28   : > { %770 = vrot.lane.b32.xlu0 %v619_v26, %s3688_s23  ;;  %v649_v39 = vrot.slane %v647_v32, 1  ;;  %v633_v40 = vshrl.u32 %v3837_v35, 16  ;;  %v635_v41 = vshll.u32 %v3837_v35, 16  ;;  %v847_v42 = vsel %vm827_vm2, %v845_v34, %v846_v12 }
  0x29   : > { %v642_v43 = vrot.slane %v640_v36, 1  ;;  %v842_v44 = vrot.slane %v3837_v35, 1  ;;  %v3845_v45 = vsel %vm3750_vm3, 0, %v451_v38  ;;  %v566_v47 = vsel %vm3750_vm3, %v448_v22, 0 }
  0x2a   : > { %v650_v48 = vor.u32 %v649_v39, %v645_v31  ;;  %v637_v49 = vrot.slane %v635_v41, 1  ;;  %v669_v50 = vshrl.u32 %v3845_v45, 16  ;;  %v671_v51 = vshll.u32 %v3845_v45, 16 }
  0x2b   : > { %v844_v53 = vsel %vm827_vm2, %v842_v44, %v843_v37  ;;  %v676_v54 = vshll.u32 %v566_v47, 16  ;;  %v441_v55 = vrot.slane %v439_v24, 7  ;;  %v442_v56 = vshll.u32 %v3648_v9, 16 }
  0x2c   : > { %881 = vrot.lane.b32.xlu0 %v838_v15, %s3689_s28  ;;  %v655_v58 = vsel %vm575_vm4, %v650_v48, %v654_v28  ;;  %v638_v59 = vor.u32 %v637_v49, %v633_v40  ;;  %v673_v61 = vrot.slane %v671_v51, 1  ;;  %v851_v62 = vrot.slane %v3845_v45, 1 }
  0x2d   : > { %776 = vrot.lane.b32.xlu1 %v655_v58, %s3688_s23  ;;  %v678_v0 = vrot.slane %v676_v54, 1  ;;  %v444_v2 = vor.u32 %v442_v56, %v441_v55  ;;  %v565_v3 = vsel %vm3750_vm3, %v441_v55, 0  ;;  %v852_v4 = vrot.slane %v566_v47, 1 }
  0x2e   : > { %v643_v7 = vsel %vm575_vm4, %v638_v59, %v642_v43  ;;  %v674_v8 = vor.u32 %v673_v61, %v669_v50  ;;  %v664_v9 = vshll.u32 %v565_v3, 16  ;;  %v849_v10 = vrot.slane %v565_v3, 1 }
  0x2f   : > { %v3868_v11 = vsel %vm3750_vm3, 0, %v444_v2  ;;  %v853_v13 = vsel %vm827_vm2, %v851_v62, %v852_v4  ;;  %v460_v1 = vshrl.u32 %v3649_v52, 16  ;;  %v463_v14 = vshll.u32 %v3649_v52, 16 }
  0x30   : > { %774 = vrot.lane.b32.xlu0 %v643_v7, %s3688_s23  ;;  %v679_v15 = vsel %vm575_vm4, %v674_v8, %v678_v0  ;;  %v657_v16 = vshrl.u32 %v3868_v11, 16  ;;  %v659_v17 = vshll.u32 %v3868_v11, 16  ;;  %v666_v18 = vrot.slane %v664_v9, 1  ;;  %v3653_v0 = vld [vmem:[%s3745_s27 + $0x68] sm:$0xff]   ;;  %v3654_v8 = vld [vmem:[%s3745_s27 + $0x60] sm:$0xff]  }
  0x31   : > { %887 = vrot.lane.b32.xlu1 %v847_v42, %s3689_s28  ;;  %v848_v19 = vrot.slane %v3868_v11, 1  ;;  %v462_v20 = vrot.slane %v460_v1, 7  ;;  %v453_v21 = vshrl.u32 %v3650_v57, 16  ;;  %v456_v12 = vshll.u32 %v3650_v57, 16 }
  0x32   : > { %v661_v22 = vrot.slane %v659_v17, 1  ;;  %v474_v23 = vshrl.u32 %v3651_v63, 16  ;;  %v477_v24 = vshll.u32 %v3651_v63, 16  ;;  %v467_v26 = vshrl.u32 %v3862_v5, 16 }
  0x33   : > { %v850_v28 = vsel %vm827_vm2, %v848_v19, %v849_v10  ;;  %v465_v29 = vor.u32 %v463_v14, %v462_v20  ;;  %v568_v31 = vsel %vm3750_vm3, %v462_v20, 0  ;;  %v455_v32 = vrot.slane %v453_v21, 7 }
  0x34   : > { %885 = vrot.lane.b32.xlu0 %v844_v53, %s3689_s28  ;;  %v662_v33 = vor.u32 %v661_v22, %v657_v16  ;;  %v700_v34 = vshll.u32 %v568_v31, 16  ;;  %v858_v36 = vrot.slane %v568_v31, 1  ;;  %v476_v37 = vrot.slane %v474_v23, 7 }
  0x35   : > { %780 = vrot.lane.b32.xlu1 %v679_v15, %s3688_s23  ;;  %v3884_v38 = vsel %vm3750_vm3, 0, %v465_v29  ;;  %v458_v39 = vor.u32 %v456_v12, %v455_v32  ;;  %v567_v40 = vsel %vm3750_vm3, %v455_v32, 0  ;;  %v469_v41 = vrot.slane %v467_v26, 7  ;;  %v3925_v12 = vld [vmem:[%s4961_s2] sm:$0x3f]  }
  0x36   : > { %v667_v42 = vsel %vm575_vm4, %v662_v33, %v666_v18  ;;  %v693_v43 = vshrl.u32 %v3884_v38, 16  ;;  %v695_v44 = vshll.u32 %v3884_v38, 16  ;;  %v702_v47 = vrot.slane %v700_v34, 1  ;;  %v3655_v18 = vld [vmem:[%s3745_s27 + $0x70] sm:$0xff]   ;;  %3625 = vmatprep.subr.msk.bf16.mxu1 %vm1041_vm5, %v3925_v12 }
  0x37   : > { %v3894_v48 = vsel %vm3750_vm3, 0, %v458_v39  ;;  %v688_v49 = vshll.u32 %v567_v40, 16  ;;  %v857_v50 = vrot.slane %v3884_v38, 1  ;;  %v855_v51 = vrot.slane %v567_v40, 1 }
  0x38   : > { %778 = vrot.lane.b32.xlu0 %v667_v42, %s3688_s23  ;;  %v697_v52 = vrot.slane %v695_v44, 1  ;;  %v681_v53 = vshrl.u32 %v3894_v48, 16  ;;  %v683_v54 = vshll.u32 %v3894_v48, 16  ;;  %v854_v55 = vrot.slane %v3894_v48, 1  ;;  %v3656_v44 = vld [vmem:[%s3745_s27 + $0x78] sm:$0xff]   ;;  %s4825_s27 = scalar_lea.vmem %s4964_s5, %s3317_s20 }
  0x39   : > { %891 = vrot.lane.b32.xlu1 %v853_v13, %s3689_s28  ;;  %v690_v56 = vrot.slane %v688_v49, 1  ;;  %v479_v57 = vor.u32 %v477_v24, %v476_v37  ;;  %v570_v58 = vsel %vm3750_vm3, %v476_v37, 0  ;;  %v859_v62 = vsel %vm827_vm2, %v857_v50, %v858_v36 }
  0x3a   : > { %v698_v59 = vor.u32 %v697_v52, %v693_v43  ;;  %v685_v61 = vrot.slane %v683_v54, 1  ;;  %v724_v63 = vshll.u32 %v570_v58, 16  ;;  %v856_v2 = vsel %vm827_vm2, %v854_v55, %v855_v51 }
  0x3b   : > { %v3909_v3 = vsel %vm3750_vm3, 0, %v479_v57  ;;  %v470_v4 = vshll.u32 %v3862_v5, 16  ;;  %v569_v7 = vsel %vm3750_vm3, %v469_v41, 0  ;;  %v864_v17 = vrot.slane %v570_v58, 1 }
  0x3c   : > { %889 = vrot.lane.b32.xlu0 %v850_v28, %s3689_s28  ;;  %v703_v9 = vsel %vm575_vm4, %v698_v59, %v702_v47  ;;  %v686_v10 = vor.u32 %v685_v61, %v681_v53  ;;  %v717_v13 = vshrl.u32 %v3909_v3, 16  ;;  %v719_v1 = vshll.u32 %v3909_v3, 16  ;;  %v3935_v28 = vld [vmem:[%s4961_s2 + $0x8] sm:$0x3f]  }
  0x3d   : > { %784 = vrot.lane.b32.xlu1 %v703_v9, %s3688_s23  ;;  %v726_v14 = vrot.slane %v724_v63, 1  ;;  %v472_v15 = vor.u32 %v470_v4, %v469_v41  ;;  %v712_v16 = vshll.u32 %v569_v7, 16  ;;  %v863_v20 = vrot.slane %v3909_v3, 1  ;;  %3624 = vmatprep.subr.msk.bf16.mxu0 %vm1041_vm5, %v3935_v28 }
  0x3e   : > { %v691_v5 = vsel %vm575_vm4, %v686_v10, %v690_v56  ;;  %v721_v19 = vrot.slane %v719_v1, 1  ;;  %v488_v21 = vshrl.u32 %v3653_v0, 16  ;;  %v861_v24 = vrot.slane %v569_v7, 1 }
  0x3f   : > { %v3930_v22 = vsel %vm3750_vm3, 0, %v472_v15  ;;  %v714_v23 = vrot.slane %v712_v16, 1  ;;  %v491_v26 = vshll.u32 %v3653_v0, 16  ;;  %v481_v36 = vshrl.u32 %v3654_v8, 16 }
  0x40   : > { %782 = vrot.lane.b32.xlu0 %v691_v5, %s3688_s23  ;;  %v722_v29 = vor.u32 %v721_v19, %v717_v13  ;;  %v705_v31 = vshrl.u32 %v3930_v22, 16  ;;  %v707_v32 = vshll.u32 %v3930_v22, 16  ;;  %v860_v33 = vrot.slane %v3930_v22, 1 }
  0x41   : > { %895 = vrot.lane.b32.xlu1 %v859_v62, %s3689_s28  ;;  %v490_v34 = vrot.slane %v488_v21, 7  ;;  %v484_v37 = vshll.u32 %v3654_v8, 16  ;;  %v495_v39 = vshrl.u32 %v3655_v18, 16  ;;  %v865_v42 = vsel %vm827_vm2, %v863_v20, %v864_v17 }
  0x42   : > { %v727_v40 = vsel %vm575_vm4, %v722_v29, %v726_v14  ;;  %v709_v41 = vrot.slane %v707_v32, 1  ;;  %v498_v43 = vshll.u32 %v3655_v18, 16  ;;  %v483_v50 = vrot.slane %v481_v36, 7  ;;  %v3657_v18 = vld [vmem:[%s3831_s7 + $0x8] sm:$0xff]   ;;  %v3658_v36 = vld [vmem:[%s3831_s7] sm:$0xff]  }
  0x43   : > { %v493_v47 = vor.u32 %v491_v26, %v490_v34  ;;  %v572_v49 = vsel %vm3750_vm3, %v490_v34, 0  ;;  %v497_v51 = vrot.slane %v495_v39, 7  ;;  %v862_v53 = vsel %vm827_vm2, %v860_v33, %v861_v24 }
  0x44   : > { %893 = vrot.lane.b32.xlu0 %v856_v2, %s3689_s28  ;;  %v710_v52 = vor.u32 %v709_v41, %v705_v31  ;;  %v748_v54 = vshll.u32 %v572_v49, 16  ;;  %v870_v55 = vrot.slane %v572_v49, 1  ;;  %v486_v57 = vor.u32 %v484_v37, %v483_v50 }
  0x45   : > { %788 = vrot.lane.b32.xlu1 %v727_v40, %s3688_s23  ;;  %v3955_v56 = vsel %vm3750_vm3, 0, %v493_v47  ;;  %v571_v58 = vsel %vm3750_vm3, %v483_v50, 0  ;;  %v500_v59 = vor.u32 %v498_v43, %v497_v51  ;;  %v502_v0 = vshrl.u32 %v3656_v44, 16 }
  0x46   : > { %v715_v61 = vsel %vm575_vm4, %v710_v52, %v714_v23  ;;  %v741_v62 = vshrl.u32 %v3955_v56, 16  ;;  %v743_v63 = vshll.u32 %v3955_v56, 16  ;;  %v750_v2 = vrot.slane %v748_v54, 1 }
  0x47   : > { %v3965_v4 = vsel %vm3750_vm3, 0, %v486_v57  ;;  %v736_v7 = vshll.u32 %v571_v58, 16  ;;  %v869_v8 = vrot.slane %v3955_v56, 1  ;;  %v867_v1 = vrot.slane %v571_v58, 1 }
  0x48   : > { %786 = vrot.lane.b32.xlu0 %v715_v61, %s3688_s23  ;;  %v745_v9 = vrot.slane %v743_v63, 1  ;;  %v729_v10 = vshrl.u32 %v3965_v4, 16  ;;  %v731_v13 = vshll.u32 %v3965_v4, 16  ;;  %v866_v15 = vrot.slane %v3965_v4, 1 }
  0x49   : > { %899 = vrot.lane.b32.xlu1 %v865_v42, %s3689_s28  ;;  %v738_v14 = vrot.slane %v736_v7, 1  ;;  %v3974_v16 = vsel %vm3750_vm3, 0, %v500_v59  ;;  %v573_v17 = vsel %vm3750_vm3, %v497_v51, 0  ;;  %v871_v20 = vsel %vm827_vm2, %v869_v8, %v870_v55  ;;  %v3659_v42 = vld [vmem:[%s3831_s7 + $0x18] sm:$0xff]  }
  0x4a   : > { %v746_v5 = vor.u32 %v745_v9, %v741_v62  ;;  %v733_v19 = vrot.slane %v731_v13, 1  ;;  %v872_v21 = vrot.slane %v3974_v16, 1  ;;  %v873_v23 = vrot.slane %v573_v17, 1 }
  0x4b   : > { %v753_v24 = vshrl.u32 %v3974_v16, 16  ;;  %v755_v26 = vshll.u32 %v3974_v16, 16  ;;  %v760_v29 = vshll.u32 %v573_v17, 16  ;;  %v504_v33 = vrot.slane %v502_v0, 7 }
  0x4c   : > { %897 = vrot.lane.b32.xlu0 %v862_v53, %s3689_s28  ;;  %v751_v31 = vsel %vm575_vm4, %v746_v5, %v750_v2  ;;  %v734_v32 = vor.u32 %v733_v19, %v729_v10  ;;  %v505_v34 = vshll.u32 %v3656_v44, 16  ;;  %v868_v37 = vsel %vm827_vm2, %v866_v15, %v867_v1 }
  0x4d   : > { %792 = vrot.lane.b32.xlu1 %v751_v31, %s3688_s23  ;;  %v757_v39 = vrot.slane %v755_v26, 1  ;;  %v762_v40 = vrot.slane %v760_v29, 1  ;;  %v1701_v41 = vshrl.u32 %v3657_v18, 16  ;;  %v574_v49 = vsel %vm3750_vm3, %v504_v33, 0 }
  0x4e   : > { %v739_v43 = vsel %vm575_vm4, %v734_v32, %v738_v14  ;;  %v507_v47 = vor.u32 %v505_v34, %v504_v33  ;;  %v1704_v50 = vshll.u32 %v3657_v18, 16  ;;  %v992_v44 = vrot.slane %v574_v49, 1 }
  0x4f   : > { %v758_v51 = vor.u32 %v757_v39, %v753_v24  ;;  %v983_v52 = vshll.u32 %v574_v49, 16  ;;  %v1703_v53 = vrot.slane %v1701_v41, 7  ;;  %v874_v54 = vsel %vm827_vm2, %v872_v21, %v873_v23  ;;  %v3660_v23 = vld [vmem:[%s3831_s7 + $0x10] sm:$0xff]  }
  0x50   : > { %790 = vrot.lane.b32.xlu0 %v739_v43, %s3688_s23  ;;  %v3996_v55 = vsel %vm3750_vm3, 0, %v507_v47  ;;  %v1694_v57 = vshrl.u32 %v3658_v36, 16  ;;  %v1697_v58 = vshll.u32 %v3658_v36, 16  ;;  %v1715_v63 = vshrl.u32 %v3659_v42, 16  ;;  %v3661_v43 = vld [vmem:[%s3831_s7 + $0x28] sm:$0xff]  }
  0x51   : > { %903 = vrot.lane.b32.xlu1 %v871_v20, %s3689_s28  ;;  %v991_v59 = vrot.slane %v3996_v55, 1  ;;  %v976_v61 = vshrl.u32 %v3996_v55, 16  ;;  %v978_v62 = vshll.u32 %v3996_v55, 16  ;;  %v763_v0 = vsel %vm575_vm4, %v758_v51, %v762_v40 }
  0x52   : > { %v1706_v2 = vor.u32 %v1704_v50, %v1703_v53  ;;  %v1854_v7 = vsel %vm3750_vm3, %v1703_v53, 0  ;;  %v1696_v8 = vrot.slane %v1694_v57, 7  ;;  %v985_v13 = vrot.slane %v983_v52, 1  ;;  %v3662_v57 = vld [vmem:[%s3831_s7 + $0x20] sm:$0xff]  }
  0x53   : > { %v993_v9 = vsel %vm827_vm2, %v991_v59, %v992_v44  ;;  %v980_v10 = vrot.slane %v978_v62, 1  ;;  %v1889_v1 = vshll.u32 %v1854_v7, 16  ;;  %v2113_v18 = vrot.slane %v1854_v7, 1 }
  0x54   : > { %901 = vrot.lane.b32.xlu0 %v868_v37, %s3689_s28  ;;  %v4009_v14 = vsel %vm3750_vm3, 0, %v1706_v2  ;;  %v1699_v15 = vor.u32 %v1697_v58, %v1696_v8  ;;  %v1853_v17 = vsel %vm3750_vm3, %v1696_v8, 0  ;;  %v1717_v21 = vrot.slane %v1715_v63, 7 }
  0x55   : > { %905 = vrot.lane.b32.xlu1 %v874_v54, %s3689_s28  ;;  %v981_v5 = vor.u32 %v980_v10, %v976_v61  ;;  %v1882_v19 = vshrl.u32 %v4009_v14, 16  ;;  %v1884_v20 = vshll.u32 %v4009_v14, 16  ;;  %v1891_v24 = vrot.slane %v1889_v1, 1 }
  0x56   : > { %v4019_v26 = vsel %vm3750_vm3, 0, %v1699_v15  ;;  %v1877_v29 = vshll.u32 %v1853_v17, 16  ;;  %v2112_v31 = vrot.slane %v4009_v14, 1  ;;  %v2110_v36 = vrot.slane %v1853_v17, 1 }
  0x57   : > { %v1886_v32 = vrot.slane %v1884_v20, 1  ;;  %v1870_v33 = vshrl.u32 %v4019_v26, 16  ;;  %v1872_v34 = vshll.u32 %v4019_v26, 16  ;;  %v986_v37 = vsel %vm575_vm4, %v981_v5, %v985_v13 }
  0x58   : > { %794 = vrot.lane.b32.xlu0 %v763_v0, %s3688_s23  ;;  %v1879_v39 = vrot.slane %v1877_v29, 1  ;;  %v2114_v40 = vsel %vm827_vm2, %v2112_v31, %v2113_v18  ;;  %v1718_v41 = vshll.u32 %v3659_v42, 16  ;;  %v1856_v50 = vsel %vm3750_vm3, %v1717_v21, 0 }
  0x59   : > { %994 = vrot.lane.b32.xlu1 %v993_v9, %s3689_s28  ;;  %v1887_v47 = vor.u32 %v1886_v32, %v1882_v19  ;;  %v1874_v49 = vrot.slane %v1872_v34, 1  ;;  %v1708_v51 = vshrl.u32 %v3660_v23, 16  ;;  %v2109_v44 = vrot.slane %v4019_v26, 1 }
  0x5a   : > { %v1720_v52 = vor.u32 %v1718_v41, %v1717_v21  ;;  %v1913_v53 = vshll.u32 %v1856_v50, 16  ;;  %v1711_v54 = vshll.u32 %v3660_v23, 16  ;;  %v2119_v61 = vrot.slane %v1856_v50, 1 }
  0x5b   : > { %v1892_v58 = vsel %vm575_vm4, %v1887_v47, %v1891_v24  ;;  %v1875_v42 = vor.u32 %v1874_v49, %v1870_v33  ;;  %v1710_v59 = vrot.slane %v1708_v51, 7  ;;  %v1729_v0 = vshrl.u32 %v3661_v43, 16 }
  0x5c   : > { %987 = vrot.lane.b32.xlu0 %v986_v37, %s3688_s23  ;;  %v4037_v62 = vsel %vm3750_vm3, 0, %v1720_v52  ;;  %v1915_v63 = vrot.slane %v1913_v53, 1  ;;  %v1732_v2 = vshll.u32 %v3661_v43, 16  ;;  %v1722_v17 = vshrl.u32 %v3662_v57, 16  ;;  %v3663_v37 = vld [vmem:[%s3831_s7 + $0x38] sm:$0xff]  }
  0x5d   : > { %2051 = vrot.lane.b32.xlu1 %v1892_v58, %s3688_s23  ;;  %v1880_v7 = vsel %vm575_vm4, %v1875_v42, %v1879_v39  ;;  %v1906_v8 = vshrl.u32 %v4037_v62, 16  ;;  %v1908_v9 = vshll.u32 %v4037_v62, 16  ;;  %v1713_v10 = vor.u32 %v1711_v54, %v1710_v59 }
  0x5e   : > { %v1855_v13 = vsel %vm3750_vm3, %v1710_v59, 0  ;;  %v2118_v1 = vrot.slane %v4037_v62, 1  ;;  %v1731_v15 = vrot.slane %v1729_v0, 7  ;;  %v2111_v21 = vsel %vm827_vm2, %v2109_v44, %v2110_v36 }
  0x5f   : > { %v1910_v18 = vrot.slane %v1908_v9, 1  ;;  %v4049_v5 = vsel %vm3750_vm3, 0, %v1713_v10  ;;  %v1901_v19 = vshll.u32 %v1855_v13, 16  ;;  %v2116_v20 = vrot.slane %v1855_v13, 1 }
  0x60   : > { %2049 = vrot.lane.b32.xlu0 %v1880_v7, %s3688_s23  ;;  %v1894_v23 = vshrl.u32 %v4049_v5, 16  ;;  %v1896_v24 = vshll.u32 %v4049_v5, 16  ;;  %v2115_v29 = vrot.slane %v4049_v5, 1  ;;  %v2120_v32 = vsel %vm827_vm2, %v2118_v1, %v2119_v61  ;;  %v3664_v61 = vld [vmem:[%s3831_s7 + $0x30] sm:$0xff]  }
  0x61   : > { %2156 = vrot.lane.b32.xlu1 %v2114_v40, %s3689_s28  ;;  %v1911_v31 = vor.u32 %v1910_v18, %v1906_v8  ;;  %v1734_v33 = vor.u32 %v1732_v2, %v1731_v15  ;;  %v1858_v34 = vsel %vm3750_vm3, %v1731_v15, 0  ;;  %v1903_v41 = vrot.slane %v1901_v19, 1 }
  0x62   : > { %v1898_v39 = vrot.slane %v1896_v24, 1  ;;  %v1937_v43 = vshll.u32 %v1858_v34, 16  ;;  %v1724_v36 = vrot.slane %v1722_v17, 7  ;;  %v2117_v49 = vsel %vm827_vm2, %v2115_v29, %v2116_v20 }
  0x63   : > { %v1916_v47 = vsel %vm575_vm4, %v1911_v31, %v1915_v63  ;;  %v4065_v40 = vsel %vm3750_vm3, 0, %v1734_v33  ;;  %v1725_v50 = vshll.u32 %v3662_v57, 16  ;;  %v2125_v53 = vrot.slane %v1858_v34, 1 }
  0x64   : > { %2154 = vrot.lane.b32.xlu0 %v2111_v21, %s3689_s28  ;;  %v1899_v51 = vor.u32 %v1898_v39, %v1894_v23  ;;  %v1930_v44 = vshrl.u32 %v4065_v40, 16  ;;  %v1932_v52 = vshll.u32 %v4065_v40, 16  ;;  %v1939_v54 = vrot.slane %v1937_v43, 1  ;;  %v3665_v23 = vld [vmem:[%s3831_s7 + $0x48] sm:$0xff]  }
  0x65   : > { %2055 = vrot.lane.b32.xlu1 %v1916_v47, %s3688_s23  ;;  %v1727_v58 = vor.u32 %v1725_v50, %v1724_v36  ;;  %v1857_v42 = vsel %vm3750_vm3, %v1724_v36, 0  ;;  %v1743_v59 = vshrl.u32 %v3663_v37, 16  ;;  %v2124_v57 = vrot.slane %v4065_v40, 1 }
  0x66   : > { %v1904_v63 = vsel %vm575_vm4, %v1899_v51, %v1903_v41  ;;  %v1934_v0 = vrot.slane %v1932_v52, 1  ;;  %v1925_v2 = vshll.u32 %v1857_v42, 16  ;;  %v2122_v8 = vrot.slane %v1857_v42, 1  ;;  %v3666_v52 = vld [vmem:[%s3831_s7 + $0x40] sm:$0xff]  }
  0x67   : > { %v4078_v7 = vsel %vm3750_vm3, 0, %v1727_v58  ;;  %v1745_v9 = vrot.slane %v1743_v59, 7  ;;  %v1746_v10 = vshll.u32 %v3663_v37, 16  ;;  %v1736_v21 = vshrl.u32 %v3664_v61, 16 }
  0x68   : > { %2053 = vrot.lane.b32.xlu0 %v1904_v63, %s3688_s23  ;;  %v1935_v13 = vor.u32 %v1934_v0, %v1930_v44  ;;  %v1918_v1 = vshrl.u32 %v4078_v7, 16  ;;  %v1920_v15 = vshll.u32 %v4078_v7, 16  ;;  %v1927_v17 = vrot.slane %v1925_v2, 1 }
  0x69   : > { %2160 = vrot.lane.b32.xlu1 %v2120_v32, %s3689_s28  ;;  %v2121_v18 = vrot.slane %v4078_v7, 1  ;;  %v1748_v19 = vor.u32 %v1746_v10, %v1745_v9  ;;  %v1860_v20 = vsel %vm3750_vm3, %v1745_v9, 0  ;;  %v1739_v33 = vshll.u32 %v3664_v61, 16 }
  0x6a   : > { %v1940_v24 = vsel %vm575_vm4, %v1935_v13, %v1939_v54  ;;  %v1922_v29 = vrot.slane %v1920_v15, 1  ;;  %v1961_v31 = vshll.u32 %v1860_v20, 16  ;;  %v2126_v34 = vsel %vm827_vm2, %v2124_v57, %v2125_v53 }
  0x6b   : > { %v2123_v32 = vsel %vm827_vm2, %v2121_v18, %v2122_v8  ;;  %v4093_v37 = vsel %vm3750_vm3, 0, %v1748_v19  ;;  %v1738_v39 = vrot.slane %v1736_v21, 7  ;;  %v2131_v47 = vrot.slane %v1860_v20, 1 }
  0x6c   : > { %2158 = vrot.lane.b32.xlu0 %v2117_v49, %s3689_s28  ;;  %v1923_v41 = vor.u32 %v1922_v29, %v1918_v1  ;;  %v1954_v43 = vshrl.u32 %v4093_v37, 16  ;;  %v1956_v36 = vshll.u32 %v4093_v37, 16  ;;  %v1963_v50 = vrot.slane %v1961_v31, 1 }
  0x6d   : > { %2059 = vrot.lane.b32.xlu1 %v1940_v24, %s3688_s23  ;;  %v1741_v51 = vor.u32 %v1739_v33, %v1738_v39  ;;  %v1859_v49 = vsel %vm3750_vm3, %v1738_v39, 0  ;;  %v1757_v44 = vshrl.u32 %v3665_v23, 16  ;;  %v2130_v42 = vrot.slane %v4093_v37, 1 }
  0x6e   : > { %v1928_v53 = vsel %vm575_vm4, %v1923_v41, %v1927_v17  ;;  %v1958_v54 = vrot.slane %v1956_v36, 1  ;;  %v1949_v58 = vshll.u32 %v1859_v49, 16  ;;  %v2128_v61 = vrot.slane %v1859_v49, 1  ;;  %v3667_v17 = vld [vmem:[%s3831_s7 + $0x58] sm:$0xff]   ;;  %v3668_v36 = vld [vmem:[%s3831_s7 + $0x50] sm:$0xff]  }
  0x6f   : > { %v4106_v59 = vsel %vm3750_vm3, 0, %v1741_v51  ;;  %v1759_v63 = vrot.slane %v1757_v44, 7  ;;  %v1760_v0 = vshll.u32 %v3665_v23, 16  ;;  %v1750_v15 = vshrl.u32 %v3666_v52, 16 }
  0x70   : > { %2057 = vrot.lane.b32.xlu0 %v1928_v53, %s3688_s23  ;;  %v1959_v2 = vor.u32 %v1958_v54, %v1954_v43  ;;  %v1942_v57 = vshrl.u32 %v4106_v59, 16  ;;  %v1944_v8 = vshll.u32 %v4106_v59, 16  ;;  %v1951_v9 = vrot.slane %v1949_v58, 1 }
  0x71   : > { %2164 = vrot.lane.b32.xlu1 %v2126_v34, %s3689_s28  ;;  %v2127_v10 = vrot.slane %v4106_v59, 1  ;;  %v1762_v13 = vor.u32 %v1760_v0, %v1759_v63  ;;  %v1862_v1 = vsel %vm3750_vm3, %v1759_v63, 0  ;;  %v1753_v21 = vshll.u32 %v3666_v52, 16 }
  0x72   : > { %v1964_v18 = vsel %vm575_vm4, %v1959_v2, %v1963_v50  ;;  %v1946_v19 = vrot.slane %v1944_v8, 1  ;;  %v1985_v20 = vshll.u32 %v1862_v1, 16  ;;  %v1752_v24 = vrot.slane %v1750_v15, 7 }
  0x73   : > { %v4119_v23 = vsel %vm3750_vm3, 0, %v1762_v13  ;;  %v2132_v31 = vsel %vm827_vm2, %v2130_v42, %v2131_v47  ;;  %v2129_v39 = vsel %vm827_vm2, %v2127_v10, %v2128_v61  ;;  %v1771_v43 = vshrl.u32 %v3667_v17, 16 }
  0x74   : > { %2162 = vrot.lane.b32.xlu0 %v2123_v32, %s3689_s28  ;;  %v1947_v29 = vor.u32 %v1946_v19, %v1942_v57  ;;  %v1978_v33 = vshrl.u32 %v4119_v23, 16  ;;  %v1980_v34 = vshll.u32 %v4119_v23, 16  ;;  %v1755_v41 = vor.u32 %v1753_v21, %v1752_v24 }
  0x75   : > { %2063 = vrot.lane.b32.xlu1 %v1964_v18, %s3688_s23  ;;  %v1861_v32 = vsel %vm3750_vm3, %v1752_v24, 0  ;;  %v1987_v49 = vrot.slane %v1985_v20, 1  ;;  %v2137_v52 = vrot.slane %v1862_v1, 1  ;;  %v1773_v53 = vrot.slane %v1771_v43, 7 }
  0x76   : > { %v1952_v50 = vsel %vm575_vm4, %v1947_v29, %v1951_v9  ;;  %v1982_v51 = vrot.slane %v1980_v34, 1  ;;  %v1973_v47 = vshll.u32 %v1861_v32, 16  ;;  %v4133_v44 = vsel %vm3750_vm3, 0, %v1755_v41  ;;  %v3669_v9 = vld [vmem:[%s3831_s7 + $0x68] sm:$0xff]   ;;  %v3670_v41 = vld [vmem:[%s3831_s7 + $0x60] sm:$0xff]  }
  0x77   : > { %v1774_v54 = vshll.u32 %v3667_v17, 16  ;;  %v1966_v42 = vshrl.u32 %v4133_v44, 16  ;;  %v1968_v61 = vshll.u32 %v4133_v44, 16  ;;  %v2136_v63 = vrot.slane %v4119_v23, 1 }
  0x78   : > { %2061 = vrot.lane.b32.xlu0 %v1952_v50, %s3688_s23  ;;  %v1983_v58 = vor.u32 %v1982_v51, %v1978_v33  ;;  %v1975_v0 = vrot.slane %v1973_v47, 1  ;;  %v1864_v57 = vsel %vm3750_vm3, %v1773_v53, 0  ;;  %v1764_v8 = vshrl.u32 %v3668_v36, 16 }
  0x79   : > { %2168 = vrot.lane.b32.xlu1 %v2132_v31, %s3689_s28  ;;  %v1776_v2 = vor.u32 %v1774_v54, %v1773_v53  ;;  %v1970_v13 = vrot.slane %v1968_v61, 1  ;;  %v2009_v1 = vshll.u32 %v1864_v57, 16  ;;  %v1767_v15 = vshll.u32 %v3668_v36, 16 }
  0x7a   : > { %v1988_v10 = vsel %vm575_vm4, %v1983_v58, %v1987_v49  ;;  %v2133_v17 = vrot.slane %v4133_v44, 1  ;;  %v2134_v18 = vrot.slane %v1861_v32, 1  ;;  %v1766_v20 = vrot.slane %v1764_v8, 7 }
  0x7b   : > { %v4147_v19 = vsel %vm3750_vm3, 0, %v1776_v2  ;;  %v1971_v21 = vor.u32 %v1970_v13, %v1966_v42  ;;  %v2138_v31 = vsel %vm827_vm2, %v2136_v63, %v2137_v52  ;;  %v2011_v36 = vrot.slane %v2009_v1, 1 }
  0x7c   : > { %2166 = vrot.lane.b32.xlu0 %v2129_v39, %s3689_s28  ;;  %v2002_v24 = vshrl.u32 %v4147_v19, 16  ;;  %v2004_v29 = vshll.u32 %v4147_v19, 16  ;;  %v1769_v33 = vor.u32 %v1767_v15, %v1766_v20  ;;  %v1863_v34 = vsel %vm3750_vm3, %v1766_v20, 0 }
  0x7d   : > { %2067 = vrot.lane.b32.xlu1 %v1988_v10, %s3688_s23  ;;  %v1785_v39 = vshrl.u32 %v3669_v9, 16  ;;  %v1976_v32 = vsel %vm575_vm4, %v1971_v21, %v1975_v0  ;;  %v1997_v50 = vshll.u32 %v1863_v34, 16  ;;  %v2135_v51 = vsel %vm827_vm2, %v2133_v17, %v2134_v18 }
  0x7e   : > { %v2006_v43 = vrot.slane %v2004_v29, 1  ;;  %v4161_v49 = vsel %vm3750_vm3, 0, %v1769_v33  ;;  %v2143_v47 = vrot.slane %v1864_v57, 1  ;;  %v2142_v42 = vrot.slane %v4147_v19, 1  ;;  %v4174_v57 = vld [vmem:[%s4962_s3 + $0x8] sm:$0x3f]  }
  0x7f   : > { %v1787_v52 = vrot.slane %v1785_v39, 7  ;;  %v1990_v54 = vshrl.u32 %v4161_v49, 16  ;;  %v1992_v58 = vshll.u32 %v4161_v49, 16  ;;  %v2140_v61 = vrot.slane %v1863_v34, 1  ;;  %v3674_v34 = vld [vmem:[%s3831_s7 + $0x70] sm:$0xff]  }
  0x80   : > { %2065 = vrot.lane.b32.xlu0 %v1976_v32, %s3688_s23  ;;  %v2007_v53 = vor.u32 %v2006_v43, %v2002_v24  ;;  %v1788_v63 = vshll.u32 %v3669_v9, 16  ;;  %v1778_v2 = vshrl.u32 %v3670_v41, 16  ;;  %v1999_v13 = vrot.slane %v1997_v50, 1 }
  0x81   : > { %2172 = vrot.lane.b32.xlu1 %v2138_v31, %s3689_s28  ;;  %v4169_v0 = vsel %vm3750_vm3, %v1787_v52, 0  ;;  %v1994_v10 = vrot.slane %v1992_v58, 1  ;;  %v1781_v1 = vshll.u32 %v3670_v41, 16  ;;  %v2139_v9 = vrot.slane %v4161_v49, 1 }
  0x82   : > { %v2012_v8 = vsel %vm575_vm4, %v2007_v53, %v2011_v36  ;;  %v1790_v15 = vor.u32 %v1788_v63, %v1787_v52  ;;  %v1780_v17 = vrot.slane %v1778_v2, 7  ;;  %v1214_v18 = vsel %vm1041_vm5, %v3925_v12, 0  ;;  %v4193_v12 = vld [vmem:[%s4961_s2 + $0x10] sm:$0x3f]   ;;  %v765_v36 = vpop.permute.xlu1 %764  ;;  %v3676_v52 = vld [vmem:[%s3831_s7 + $0x78] sm:$0xff]  }
  0x83   : > { %v1995_v20 = vor.u32 %v1994_v10, %v1990_v54  ;;  %v2033_v21 = vshll.u32 %v4169_v0, 16  ;;  %3455 = vmatpush3.bf16.msra.mxu1 %v1214_v18  ;;  %v2144_v24 = vsel %vm827_vm2, %v2142_v42, %v2143_v47  ;;  %v2141_v50 = vsel %vm827_vm2, %v2139_v9, %v2140_v61 }
  0x84   : > { %2170 = vrot.lane.b32.xlu0 %v2135_v51, %s3689_s28  ;;  %v4186_v29 = vsel %vm3750_vm3, 0, %v1790_v15  ;;  %v1783_v31 = vor.u32 %v1781_v1, %v1780_v17  ;;  %v1865_v33 = vsel %vm3750_vm3, %v1780_v17, 0  ;;  %3627 = vmatprep.subr.msk.bf16.mxu1 %vm1041_vm5, %v4174_v57  ;;  %v1043_v47 = vsel %vm1041_vm5, %v3935_v28, 0 }
  0x85   : > { %2071 = vrot.lane.b32.xlu1 %v2012_v8, %s3688_s23  ;;  %v2000_v39 = vsel %vm575_vm4, %v1995_v20, %v1999_v13  ;;  %v2026_v41 = vshrl.u32 %v4186_v29, 16  ;;  %v2028_v32 = vshll.u32 %v4186_v29, 16  ;;  %v2021_v43 = vshll.u32 %v1865_v33, 16  ;;  %3421 = vmatpush3.bf16.msra.mxu0 %v1043_v47 }
  0x86   : > { %v4205_v51 = vsel %vm3750_vm3, 0, %v1783_v31  ;;  %v2035_v54 = vrot.slane %v2033_v21, 1  ;;  %v909_v63 = vsel %vm907_vm6, 0, %v765_v36  ;;  %v2149_v61 = vrot.slane %v4169_v0, 1  ;;  %3626 = vmatprep.subr.msk.bf16.mxu0 %vm1041_vm5, %v4193_v12 }
  0x87   : > { %v2030_v53 = vrot.slane %v2028_v32, 1  ;;  %v2014_v58 = vshrl.u32 %v4205_v51, 16  ;;  %v2016_v42 = vshll.u32 %v4205_v51, 16  ;;  %v1792_v2 = vshrl.u32 %v3674_v34, 16 }
  0x88   : > { %2069 = vrot.lane.b32.xlu0 %v2000_v39, %s3688_s23  ;;  %v1795_v8 = vshll.u32 %v3674_v34, 16  ;;  %v2023_v13 = vrot.slane %v2021_v43, 1  ;;  %v2148_v1 = vrot.slane %v4186_v29, 1  ;;  %v1799_v15 = vshrl.u32 %v3676_v52, 16 }
  0x89   : > { %2176 = vrot.lane.b32.xlu1 %v2144_v24, %s3689_s28  ;;  %v2031_v28 = vor.u32 %v2030_v53, %v2026_v41  ;;  %v2018_v10 = vrot.slane %v2016_v42, 1  ;;  %v1794_v9 = vrot.slane %v1792_v2, 7  ;;  %v1802_v17 = vshll.u32 %v3676_v52, 16 }
  0x8a   : > { %v2145_v21 = vrot.slane %v4205_v51, 1  ;;  %v2146_v24 = vrot.slane %v1865_v33, 1  ;;  %v1801_v41 = vrot.slane %v1799_v15, 7  ;;  %v2150_v43 = vsel %vm827_vm2, %v2148_v1, %v2149_v61 }
  0x8b   : > { %v2036_v20 = vsel %vm575_vm4, %v2031_v28, %v2035_v54  ;;  %v2019_v0 = vor.u32 %v2018_v10, %v2014_v58  ;;  %v1797_v34 = vor.u32 %v1795_v8, %v1794_v9  ;;  %v1867_v39 = vsel %vm3750_vm3, %v1794_v9, 0 }
  0x8c   : > { %2174 = vrot.lane.b32.xlu0 %v2141_v50, %s3689_s28  ;;  %v2045_v36 = vshll.u32 %v1867_v39, 16  ;;  %v2152_v50 = vrot.slane %v1867_v39, 1  ;;  %v2312_v47 = vsel %vm1041_vm5, %v4174_v57, 0  ;;  %v1804_v52 = vor.u32 %v1802_v17, %v1801_v41 }
  0x8d   : > { %v880_v18 = vpop.permute.xlu0 %879  ;;  %v878_v31 = vpop.permute.xlu1 %877  ;;  %2075 = vrot.lane.b32.xlu1 %v2036_v20, %s3688_s23  ;;  %v2024_v32 = vsel %vm575_vm4, %v2019_v0, %v2023_v13  ;;  %v4229_v33 = vsel %vm3750_vm3, 0, %v1797_v34  ;;  %v1868_v53 = vsel %vm3750_vm3, %v1801_v41, 0  ;;  %v2147_v54 = vsel %vm827_vm2, %v2145_v21, %v2146_v24  ;;  %v4253_v20 = vld [vmem:[%s4962_s3 + $0x10] sm:$0x3f]  }
  0x8e   : > { %v2038_v58 = vshrl.u32 %v4229_v33, 16  ;;  %v2040_v42 = vshll.u32 %v4229_v33, 16  ;;  %v2151_v61 = vrot.slane %v4229_v33, 1  ;;  %v2047_v28 = vrot.slane %v2045_v36, 1 }
  0x8f   : > { %v4242_v57 = vsel %vm3750_vm3, 0, %v1804_v52  ;;  %v2254_v10 = vshll.u32 %v1868_v53, 16  ;;  %v2263_v13 = vrot.slane %v1868_v53, 1 }
  0x90   : > { %2073 = vrot.lane.b32.xlu0 %v2024_v32, %s3688_s23  ;;  %v2042_v15 = vrot.slane %v2040_v42, 1  ;;  %v2153_v17 = vsel %vm827_vm2, %v2151_v61, %v2152_v50  ;;  %v2249_v0 = vshll.u32 %v4242_v57, 16  ;;  %v2262_v21 = vrot.slane %v4242_v57, 1  ;;  %v4274_v50 = vld [vmem:[%s4962_s3] sm:$0x3f]  }
  0x91   : > { %v876_v2 = vpop.permute.xlu1 %875  ;;  %2180 = vrot.lane.b32.xlu1 %v2150_v43, %s3689_s28  ;;  %v2256_v41 = vrot.slane %v2254_v10, 1  ;;  %v1386_v43 = vsel %vm1041_vm5, %v4193_v12, 0 }
  0x92   : > { %v767_v8 = vpop.permute.xlu0 %766  ;;  %v4245_v1 = vsel %vm940_vm7, %v909_v63, %v876_v2  ;;  %v2247_v63 = vshrl.u32 %v4242_v57, 16  ;;  %v2251_v39 = vrot.slane %v2249_v0, 1  ;;  %v2264_v36 = vsel %vm827_vm2, %v2262_v21, %v2263_v13 }
  0x93   : > { %v911_v9 = vsel %vm907_vm6, %v3771_v30, %v767_v8  ;;  %3456 = vmatprep.mubr.msk.bf16.mxu1 %vm1008_vm8, %v4245_v1  ;;  %v2043_v30 = vor.u32 %v2042_v15, %v2038_v58 }
  0x94   : > { %2178 = vrot.lane.b32.xlu0 %v2147_v54, %s3689_s28  ;;  %v944_v6 = vsel %vm940_vm7, %v911_v9, %v878_v31 }
  0x95   : > { %3422 = vmatprep.mubr.msk.bf16.mxu0 %vm1008_vm8, %v944_v6  ;;  %3457 = vmatmul.mubr.msk.bf16.vlgmr.msra.gmra.mxu1 %vm1008_vm8, %v944_v6  ;;  %v773_v34 = vpop.permute.xlu1 %772  ;;  %v2048_v32 = vsel %vm575_vm4, %v2043_v30, %v2047_v28 }
  0x96   : > { %v769_v24 = vpop.permute.xlu0 %768  ;;  %2182 = vrot.lane.b32.xlu1 %v2153_v17, %s3689_s28  ;;  %3523 = vmatpush3.bf16.msra.mxu1 %v2312_v47 }
  0x97   : > { %v913_v31 = vsel %vm907_vm6, %v3766_v25, %v769_v24  ;;  %3629 = vmatprep.subr.msk.bf16.mxu1 %vm1041_vm5, %v4253_v20  ;;  %v2252_v25 = vor.u32 %v2251_v39, %v2247_v63 }
  0x98   : > { %2077 = vrot.lane.b32.xlu0 %v2048_v32, %s3688_s23  ;;  %v4280_v47 = vsel %vm940_vm7, %v913_v31, %v880_v18  ;;  %v917_v18 = vsel %vm907_vm6, %v3786_v46, %v773_v34 }
  0x99   : > { %3423 = vmatmul.mubr.msk.bf16.vlgmr.msra.gmra.mxu0 %vm1008_vm8, %v4280_v47  ;;  %3460 = vmatprep.mubr.msk.bf16.mxu1 %vm1008_vm8, %v4280_v47  ;;  %v884_v52 = vpop.permute.xlu1 %883  ;;  %v2257_v53 = vsel %vm575_vm4, %v2252_v25, %v2256_v41 }
  0x9a   : > { %3489 = vmatpush3.bf16.msra.mxu0 %v1386_v43  ;;  %v771_v12 = vpop.permute.xlu0 %770  ;;  %2265 = vrot.lane.b32.xlu1 %v2264_v36, %s3689_s28  ;;  %v4299_v61 = vsel %vm940_vm7, %v917_v18, %v884_v52  ;;  %s3169_s28 = sshll.u32 %s4999_s22, 1 }
  0x9b   : > { %3628 = vmatprep.subr.msk.bf16.mxu0 %vm1041_vm5, %v4274_v50  ;;  %v915_v54 = vsel %vm907_vm6, %v3798_v60, %v771_v12  ;;  %s282_s7 = scalar_lea.vmem %s4965_s6, %s3169_s28 }
  0x9c   : > { %2258 = vrot.lane.b32.xlu0 %v2257_v53, %s3688_s23 }
  0x9e   : > { %v882_v58 = vpop.permute.xlu0 %881 }
  0x9f   : > { %v4296_v42 = vsel %vm940_vm7, %v915_v54, %v882_v58  ;;  %v777_v2 = vpop.permute.xlu1 %776 }
  0xa0   : > { %3426 = vmatprep.mubr.msk.bf16.mxu0 %vm1008_vm8, %v4296_v42  ;;  %3461 = vmatmul.mubr.msk.bf16.gmra.mxu1 %vm1008_vm8, %v4296_v42  ;;  %v921_v8 = vsel %vm907_vm6, %v3819_v27, %v777_v2 }
  0xa1   : > { %3427 = vmatmul.mubr.msk.bf16.gmra.mxu0 %vm1008_vm8, %v4299_v61  ;;  %3464 = vmatprep.mubr.msk.bf16.mxu1 %vm1008_vm8, %v4299_v61 }
  0xa2   : > { %v775_v46 = vpop.permute.xlu0 %774 }
  0xa3   : > { %v888_v60 = vpop.permute.xlu1 %887  ;;  %v919_v28 = vsel %vm907_vm6, %v3837_v35, %v775_v46 }
  0xa4   : > { %v4317_v9 = vsel %vm940_vm7, %v921_v8, %v888_v60 }
  0xa6   : > { %v886_v10 = vpop.permute.xlu0 %885 }
  0xa7   : > { %v4314_v13 = vsel %vm940_vm7, %v919_v28, %v886_v10  ;;  %v781_v15 = vpop.permute.xlu1 %780 }
  0xa8   : > { %3430 = vmatprep.mubr.msk.bf16.mxu0 %vm1008_vm8, %v4314_v13  ;;  %3465 = vmatmul.mubr.msk.bf16.gmra.mxu1 %vm1008_vm8, %v4314_v13  ;;  %v925_v17 = vsel %vm907_vm6, %v3845_v45, %v781_v15 }
  0xa9   : > { %3431 = vmatmul.mubr.msk.bf16.gmra.mxu0 %vm1008_vm8, %v4317_v9  ;;  %3468 = vmatprep.mubr.msk.bf16.mxu1 %vm1008_vm8, %v4317_v9 }
  0xaa   : > { %v779_v27 = vpop.permute.xlu0 %778 }
  0xab   : > { %v892_v35 = vpop.permute.xlu1 %891  ;;  %v923_v6 = vsel %vm907_vm6, %v3868_v11, %v779_v27 }
  0xac   : > { %v4335_v30 = vsel %vm940_vm7, %v925_v17, %v892_v35 }
  0xae   : > { %v890_v63 = vpop.permute.xlu0 %889 }
  0xaf   : > { %v4332_v0 = vsel %vm940_vm7, %v923_v6, %v890_v63  ;;  %v785_v21 = vpop.permute.xlu1 %784 }
  0xb0   : > { %3434 = vmatprep.mubr.msk.bf16.mxu0 %vm1008_vm8, %v4332_v0  ;;  %3469 = vmatmul.mubr.msk.bf16.gmra.mxu1 %vm1008_vm8, %v4332_v0  ;;  %v929_v24 = vsel %vm907_vm6, %v3884_v38, %v785_v21 }
  0xb1   : > { %3435 = vmatmul.mubr.msk.bf16.gmra.mxu0 %vm1008_vm8, %v4335_v30  ;;  %3472 = vmatprep.mubr.msk.bf16.mxu1 %vm1008_vm8, %v4335_v30 }
  0xb2   : > { %v783_v45 = vpop.permute.xlu0 %782 }
  0xb3   : > { %v896_v11 = vpop.permute.xlu1 %895  ;;  %v927_v34 = vsel %vm907_vm6, %v3894_v48, %v783_v45 }
  0xb4   : > { %v4353_v31 = vsel %vm940_vm7, %v929_v24, %v896_v11  ;;  %v2481_v11 = vsel %vm1041_vm5, %v4274_v50, 0 }
  0xb6   : > { %v894_v39 = vpop.permute.xlu0 %893 }
  0xb7   : > { %v4350_v41 = vsel %vm940_vm7, %v927_v34, %v894_v39  ;;  %v789_v32 = vpop.permute.xlu1 %788 }
  0xb8   : > { %3438 = vmatprep.mubr.msk.bf16.mxu0 %vm1008_vm8, %v4350_v41  ;;  %3473 = vmatmul.mubr.msk.bf16.gmra.mxu1 %vm1008_vm8, %v4350_v41  ;;  %v933_v43 = vsel %vm907_vm6, %v3909_v3, %v789_v32 }
  0xb9   : > { %3439 = vmatmul.mubr.msk.bf16.gmra.mxu0 %vm1008_vm8, %v4353_v31  ;;  %3476 = vmatprep.mubr.msk.bf16.mxu1 %vm1008_vm8, %v4353_v31 }
  0xba   : > { %v787_v38 = vpop.permute.xlu0 %786 }
  0xbb   : > { %v900_v48 = vpop.permute.xlu1 %899  ;;  %v931_v36 = vsel %vm907_vm6, %v3930_v22, %v787_v38 }
  0xbc   : > { %v4371_v52 = vsel %vm940_vm7, %v933_v43, %v900_v48 }
  0xbe   : > { %v898_v25 = vpop.permute.xlu0 %897 }
  0xbf   : > { %v4368_v12 = vsel %vm940_vm7, %v931_v36, %v898_v25  ;;  %v793_v53 = vpop.permute.xlu1 %792 }
  0xc0   : > { %3442 = vmatprep.mubr.msk.bf16.mxu0 %vm1008_vm8, %v4368_v12  ;;  %3477 = vmatmul.mubr.msk.bf16.gmra.mxu1 %vm1008_vm8, %v4368_v12  ;;  %v937_v18 = vsel %vm907_vm6, %v3955_v56, %v793_v53 }
  0xc1   : > { %3443 = vmatmul.mubr.msk.bf16.gmra.mxu0 %vm1008_vm8, %v4371_v52  ;;  %3480 = vmatprep.mubr.msk.bf16.mxu1 %vm1008_vm8, %v4371_v52 }
  0xc2   : > { %v791_v3 = vpop.permute.xlu0 %790 }
  0xc3   : > { %v904_v22 = vpop.permute.xlu1 %903  ;;  %v935_v54 = vsel %vm907_vm6, %v3965_v4, %v791_v3 }
  0xc4   : > { %v4389_v46 = vsel %vm940_vm7, %v937_v18, %v904_v22 }
  0xc6   : > { %v902_v58 = vpop.permute.xlu0 %901 }
  0xc7   : > { %v4386_v2 = vsel %vm940_vm7, %v935_v54, %v902_v58  ;;  %v906_v60 = vpop.permute.xlu1 %905 }
  0xc8   : > { %3446 = vmatprep.mubr.msk.bf16.mxu0 %vm1008_vm8, %v4386_v2  ;;  %3481 = vmatmul.mubr.msk.bf16.gmra.mxu1 %vm1008_vm8, %v4386_v2 }
  0xc9   : > { %3447 = vmatmul.mubr.msk.bf16.gmra.mxu0 %vm1008_vm8, %v4389_v46  ;;  %3484 = vmatprep.mubr.msk.bf16.mxu1 %vm1008_vm8, %v4389_v46 }
  0xca   : > { %v795_v56 = vpop.permute.xlu0 %794 }
  0xcb   : > { %v939_v4 = vsel %vm907_vm6, %v3974_v16, %v795_v56  ;;  %v995_v28 = vpop.permute.xlu1 %994 }
  0xcc   : > { %v4402_v8 = vsel %vm940_vm7, %v939_v4, %v906_v60 }
  0xcd   : > { %3450 = vmatprep.mubr.msk.bf16.mxu0 %vm1008_vm8, %v4402_v8 }
  0xce   : > { %v988_v10 = vpop.permute.xlu0 %987 }
  0xcf   : > { %v997_v15 = vsel %vm907_vm6, %v3996_v55, %v988_v10  ;;  %v2052_v35 = vpop.permute.xlu1 %2051 }
  0xd0   : > { %3485 = vmatmul.mubr.msk.bf16.gmra.mxu1 %vm1008_vm8, %v4402_v8  ;;  %v4411_v27 = vsel %vm940_vm7, %v997_v15, %v995_v28  ;;  %v2187_v17 = vsel %vm907_vm6, %v4009_v14, %v2052_v35  ;;  %v2653_v14 = vsel %vm1041_vm5, %v4253_v20, 0 }
  0xd1   : > { %3451 = vmatmul.mubr.msk.bf16.gmra.mxu0 %vm1008_vm8, %v4411_v27 }
  0xd2   : > { %3490 = vmatprep.mubr.msk.bf16.mxu0 %vm1008_vm8, %v4280_v47  ;;  %v2050_v16 = vpop.permute.xlu0 %2049 }
  0xd3   : > { %v2185_v55 = vsel %vm907_vm6, %v4019_v26, %v2050_v16  ;;  %v2157_v6 = vpop.permute.xlu1 %2156 }
  0xd4   : > { %v4422_v63 = vsel %vm940_vm7, %v2187_v17, %v2157_v6 }
  0xd6   : > { %v2155_v21 = vpop.permute.xlu0 %2154 }
  0xd7   : > { %v4425_v45 = vsel %vm940_vm7, %v2185_v55, %v2155_v21  ;;  %v2056_v47 = vpop.permute.xlu1 %2055 }
  0xd8   : > { %3524 = vmatprep.mubr.msk.bf16.mxu1 %vm1008_vm8, %v4425_v45  ;;  %v2191_v50 = vsel %vm907_vm6, %v4037_v62, %v2056_v47 }
  0xd9   : > { %3491 = vmatmul.mubr.msk.bf16.vlgmr.msra.gmra.mxu0 %vm1008_vm8, %v4296_v42  ;;  %3525 = vmatmul.mubr.msk.bf16.vlgmr.msra.gmra.mxu1 %vm1008_vm8, %v4422_v63 }
  0xda   : > { %3557 = vmatpush3.bf16.msra.mxu0 %v2481_v11  ;;  %3494 = vmatprep.mubr.msk.bf16.mxu0 %vm1008_vm8, %v4299_v61  ;;  %v2054_v26 = vpop.permute.xlu0 %2053 }
  0xdb   : > { %3591 = vmatpush3.bf16.msra.mxu1 %v2653_v14  ;;  %v2189_v24 = vsel %vm907_vm6, %v4049_v5, %v2054_v26  ;;  %v2161_v34 = vpop.permute.xlu1 %2160 }
  0xdc   : > { %v4444_v20 = vsel %vm940_vm7, %v2191_v50, %v2161_v34 }
  0xde   : > { %v2159_v42 = vpop.permute.xlu0 %2158 }
  0xdf   : > { %v4447_v39 = vsel %vm940_vm7, %v2189_v24, %v2159_v42  ;;  %v2060_v61 = vpop.permute.xlu1 %2059 }
  0xe0   : > { %3528 = vmatprep.mubr.msk.bf16.mxu1 %vm1008_vm8, %v4447_v39  ;;  %v2195_v5 = vsel %vm907_vm6, %v4065_v40, %v2060_v61 }
  0xe1   : > { %3495 = vmatmul.mubr.msk.bf16.gmra.mxu0 %vm1008_vm8, %v4314_v13  ;;  %3529 = vmatmul.mubr.msk.bf16.gmra.mxu1 %vm1008_vm8, %v4444_v20 }
  0xe2   : > { %3498 = vmatprep.mubr.msk.bf16.mxu0 %vm1008_vm8, %v4317_v9  ;;  %v2058_v62 = vpop.permute.xlu0 %2057 }
  0xe3   : > { %v2193_v32 = vsel %vm907_vm6, %v4078_v7, %v2058_v62  ;;  %v2165_v38 = vpop.permute.xlu1 %2164 }
  0xe4   : > { %v4462_v48 = vsel %vm940_vm7, %v2195_v5, %v2165_v38 }
  0xe6   : > { %v2163_v43 = vpop.permute.xlu0 %2162 }
  0xe7   : > { %v4465_v13 = vsel %vm940_vm7, %v2193_v32, %v2163_v43  ;;  %v2064_v36 = vpop.permute.xlu1 %2063 }
  0xe8   : > { %3532 = vmatprep.mubr.msk.bf16.mxu1 %vm1008_vm8, %v4465_v13  ;;  %v2199_v7 = vsel %vm907_vm6, %v4093_v37, %v2064_v36 }
  0xe9   : > { %3499 = vmatmul.mubr.msk.bf16.gmra.mxu0 %vm1008_vm8, %v4332_v0  ;;  %3533 = vmatmul.mubr.msk.bf16.gmra.mxu1 %vm1008_vm8, %v4462_v48 }
  0xea   : > { %3502 = vmatprep.mubr.msk.bf16.mxu0 %vm1008_vm8, %v4335_v30  ;;  %v2062_v40 = vpop.permute.xlu0 %2061 }
  0xeb   : > { %v2197_v9 = vsel %vm907_vm6, %v4106_v59, %v2062_v40  ;;  %v2169_v25 = vpop.permute.xlu1 %2168 }
  0xec   : > { %v4480_v53 = vsel %vm940_vm7, %v2199_v7, %v2169_v25 }
  0xee   : > { %v2167_v3 = vpop.permute.xlu0 %2166 }
  0xef   : > { %v4483_v0 = vsel %vm940_vm7, %v2197_v9, %v2167_v3  ;;  %v2068_v22 = vpop.permute.xlu1 %2067 }
  0xf0   : > { %3536 = vmatprep.mubr.msk.bf16.mxu1 %vm1008_vm8, %v4483_v0  ;;  %v2203_v59 = vsel %vm907_vm6, %v4119_v23, %v2068_v22 }
  0xf1   : > { %3503 = vmatmul.mubr.msk.bf16.gmra.mxu0 %vm1008_vm8, %v4350_v41  ;;  %3537 = vmatmul.mubr.msk.bf16.gmra.mxu1 %vm1008_vm8, %v4480_v53 }
  0xf2   : > { %3506 = vmatprep.mubr.msk.bf16.mxu0 %vm1008_vm8, %v4353_v31  ;;  %v2066_v37 = vpop.permute.xlu0 %2065 }
  0xf3   : > { %v2201_v30 = vsel %vm907_vm6, %v4133_v44, %v2066_v37  ;;  %v2173_v18 = vpop.permute.xlu1 %2172 }
  0xf4   : > { %v2233_v54 = vsel %vm940_vm7, %v2203_v59, %v2173_v18 }
  0xf6   : > { %v2171_v58 = vpop.permute.xlu0 %2170 }
  0xf7   : > { %v2231_v60 = vsel %vm940_vm7, %v2201_v30, %v2171_v58  ;;  %v2072_v41 = vpop.permute.xlu1 %2071 }
  0xf8   : > { %3540 = vmatprep.mubr.msk.bf16.mxu1 %vm1008_vm8, %v2231_v60  ;;  %v2207_v44 = vsel %vm907_vm6, %v4147_v19, %v2072_v41 }
  0xf9   : > { %3507 = vmatmul.mubr.msk.bf16.gmra.mxu0 %vm1008_vm8, %v4368_v12  ;;  %3541 = vmatmul.mubr.msk.bf16.gmra.mxu1 %vm1008_vm8, %v2233_v54 }
  0xfa   : > { %3510 = vmatprep.mubr.msk.bf16.mxu0 %vm1008_vm8, %v4371_v52  ;;  %v2070_v23 = vpop.permute.xlu0 %2069 }
  0xfb   : > { %v2205_v31 = vsel %vm907_vm6, %v4161_v49, %v2070_v23  ;;  %v2177_v56 = vpop.permute.xlu1 %2176 }
  0xfc   : > { %v2237_v4 = vsel %vm940_vm7, %v2207_v44, %v2177_v56 }
  0xfe   : > { %v2175_v28 = vpop.permute.xlu0 %2174 }
  0xff   : > { %v2235_v10 = vsel %vm940_vm7, %v2205_v31, %v2175_v28  ;;  %v2076_v12 = vpop.permute.xlu1 %2075 }
 0x100   : > { %3544 = vmatprep.mubr.msk.bf16.mxu1 %vm1008_vm8, %v2235_v10  ;;  %v2211_v49 = vsel %vm907_vm6, %v4186_v29, %v2076_v12 }
 0x101   : > { %3511 = vmatmul.mubr.msk.bf16.gmra.mxu0 %vm1008_vm8, %v4386_v2  ;;  %3545 = vmatmul.mubr.msk.bf16.gmra.mxu1 %vm1008_vm8, %v2237_v4 }
 0x102   : > { %3514 = vmatprep.mubr.msk.bf16.mxu0 %vm1008_vm8, %v4389_v46  ;;  %v2074_v19 = vpop.permute.xlu0 %2073 }
 0x103   : > { %v2209_v52 = vsel %vm907_vm6, %v4205_v51, %v2074_v19  ;;  %v2181_v15 = vpop.permute.xlu1 %2180 }
 0x104   : > { %v2241_v35 = vsel %vm940_vm7, %v2211_v49, %v2181_v15 }
 0x106   : > { %v2179_v16 = vpop.permute.xlu0 %2178 }
 0x107   : > { %v2239_v17 = vsel %vm940_vm7, %v2209_v52, %v2179_v16 }
 0x108   : > { %3548 = vmatprep.mubr.msk.bf16.mxu1 %vm1008_vm8, %v2239_v17  ;;  %v2183_v2 = vpop.permute.xlu1 %2182 }
 0x109   : > { %3515 = vmatmul.mubr.msk.bf16.gmra.mxu0 %vm1008_vm8, %v4402_v8  ;;  %3549 = vmatmul.mubr.msk.bf16.gmra.mxu1 %vm1008_vm8, %v2241_v35 }
 0x10a   : > { %3518 = vmatprep.mubr.msk.bf16.mxu0 %vm1008_vm8, %v4411_v27  ;;  %v2078_v29 = vpop.permute.xlu0 %2077 }
 0x10b   : > { %v2213_v51 = vsel %vm907_vm6, %v4229_v33, %v2078_v29 }
 0x10c   : > { %v2243_v46 = vsel %vm940_vm7, %v2213_v51, %v2183_v2  ;;  %v2266_v55 = vpop.permute.xlu1 %2265 }
 0x10d   : > { %3552 = vmatprep.mubr.msk.bf16.mxu1 %vm1008_vm8, %v2243_v46 }
 0x10e   : > { %v2259_v6 = vpop.permute.xlu0 %2258 }
 0x10f   : > { %v2268_v21 = vsel %vm907_vm6, %v4242_v57, %v2259_v6 }
 0x110   : > { %v2270_v8 = vsel %vm940_vm7, %v2268_v21, %v2266_v55 }
 0x111   : > { %3519 = vmatmul.mubr.msk.bf16.gmra.mxu0 %vm1008_vm8, %v4245_v1  ;;  %3553 = vmatmul.mubr.msk.bf16.gmra.mxu1 %vm1008_vm8, %v2270_v8 }
 0x112   : > { %3558 = vmatprep.mubr.msk.bf16.mxu0 %vm1008_vm8, %v4245_v1  ;;  %3592 = vmatprep.mubr.msk.bf16.mxu1 %vm1008_vm8, %v4422_v63 }
 0x119   : > { %3559 = vmatmul.mubr.msk.bf16.vlgmr.msra.gmra.mxu0 %vm1008_vm8, %v4425_v45  ;;  %3593 = vmatmul.mubr.msk.bf16.vlgmr.msra.gmra.mxu1 %vm1008_vm8, %v4447_v39 }
 0x11a   : > { %3562 = vmatprep.mubr.msk.bf16.mxu0 %vm1008_vm8, %v4422_v63  ;;  %3596 = vmatprep.mubr.msk.bf16.mxu1 %vm1008_vm8, %v4444_v20 }
 0x121   : > { %3563 = vmatmul.mubr.msk.bf16.gmra.mxu0 %vm1008_vm8, %v4447_v39  ;;  %3597 = vmatmul.mubr.msk.bf16.gmra.mxu1 %vm1008_vm8, %v4465_v13 }
 0x122   : > { %3566 = vmatprep.mubr.msk.bf16.mxu0 %vm1008_vm8, %v4444_v20  ;;  %3600 = vmatprep.mubr.msk.bf16.mxu1 %vm1008_vm8, %v4462_v48 }
 0x129   : > { %3567 = vmatmul.mubr.msk.bf16.gmra.mxu0 %vm1008_vm8, %v4465_v13  ;;  %3601 = vmatmul.mubr.msk.bf16.gmra.mxu1 %vm1008_vm8, %v4483_v0 }
 0x12a   : > { %3570 = vmatprep.mubr.msk.bf16.mxu0 %vm1008_vm8, %v4462_v48  ;;  %3604 = vmatprep.mubr.msk.bf16.mxu1 %vm1008_vm8, %v4480_v53 }
 0x131   : > { %3571 = vmatmul.mubr.msk.bf16.gmra.mxu0 %vm1008_vm8, %v4483_v0  ;;  %3605 = vmatmul.mubr.msk.bf16.gmra.mxu1 %vm1008_vm8, %v2231_v60 }
 0x132   : > { %3574 = vmatprep.mubr.msk.bf16.mxu0 %vm1008_vm8, %v4480_v53  ;;  %3608 = vmatprep.mubr.msk.bf16.mxu1 %vm1008_vm8, %v2233_v54 }
 0x139   : > { %3575 = vmatmul.mubr.msk.bf16.gmra.mxu0 %vm1008_vm8, %v2231_v60  ;;  %3609 = vmatmul.mubr.msk.bf16.gmra.mxu1 %vm1008_vm8, %v2235_v10 }
 0x13a   : > { %3578 = vmatprep.mubr.msk.bf16.mxu0 %vm1008_vm8, %v2233_v54  ;;  %3612 = vmatprep.mubr.msk.bf16.mxu1 %vm1008_vm8, %v2237_v4 }
 0x141   : > { %3579 = vmatmul.mubr.msk.bf16.gmra.mxu0 %vm1008_vm8, %v2235_v10  ;;  %3613 = vmatmul.mubr.msk.bf16.gmra.mxu1 %vm1008_vm8, %v2239_v17 }
 0x142   : > { %3582 = vmatprep.mubr.msk.bf16.mxu0 %vm1008_vm8, %v2237_v4  ;;  %3616 = vmatprep.mubr.msk.bf16.mxu1 %vm1008_vm8, %v2241_v35 }
 0x149   : > { %3583 = vmatmul.mubr.msk.bf16.gmra.mxu0 %vm1008_vm8, %v2239_v17  ;;  %3617 = vmatmul.mubr.msk.bf16.gmra.mxu1 %vm1008_vm8, %v2243_v46 }
 0x14a   : > { %3586 = vmatprep.mubr.msk.bf16.mxu0 %vm1008_vm8, %v2241_v35  ;;  %3620 = vmatprep.mubr.msk.bf16.mxu1 %vm1008_vm8, %v2270_v8 }
 0x151   : > { %3587 = vmatmul.mubr.msk.bf16.gmra.mxu0 %vm1008_vm8, %v2243_v46  ;;  %3621 = vmatmul.mubr.msk.bf16.gmra.mxu1 %vm1008_vm8, %v4245_v1 }
 0x155   : > { %v3458_v33 = vpop.f32.mrf.mxu1 }
 0x157   : > { %v1250_v57 = vpop.f32.mrf.mxu1 }
 0x159   : > { %v3424_v27 = vpop.f32.mrf.mxu0  ;;  %v3459_v45 = vpop.f32.mrf.mxu1 }
 0x15a   : > { %v4588_v63 = vadd.f32 %v3458_v33, %v3424_v27 }
 0x15b   : > { %v1079_v11 = vpop.f32.mrf.mxu0  ;;  %v1253_v26 = vpop.f32.mrf.mxu1 }
 0x15c   : > { %v4590_v47 = vadd.f32 %v1250_v57, %v1079_v11 }
 0x15d   : > { %v3425_v14 = vpop.f32.mrf.mxu0 }
 0x15e   : > { %v4592_v50 = vadd.f32 %v3459_v45, %v3425_v14 }
 0x15f   : > { %v1082_v24 = vpop.f32.mrf.mxu0 }
 0x160   : > { %v4594_v34 = vadd.f32 %v1253_v26, %v1082_v24  ;;  %v3462_v20 = vpop.f32.mrf.mxu1 }
 0x161   : > { %v3428_v42 = vpop.f32.mrf.mxu0 }
 0x162   : > { %v4596_v39 = vadd.f32 %v3462_v20, %v3428_v42  ;;  %v1266_v1 = vpop.f32.mrf.mxu1 }
 0x163   : > { %v1095_v61 = vpop.f32.mrf.mxu0 }
 0x164   : > { %v4598_v62 = vadd.f32 %v1266_v1, %v1095_v61  ;;  %v3463_v5 = vpop.f32.mrf.mxu1 }
 0x165   : > { %v3429_v32 = vpop.f32.mrf.mxu0 }
 0x166   : > { %v4600_v38 = vadd.f32 %v3463_v5, %v3429_v32  ;;  %v1269_v48 = vpop.f32.mrf.mxu1 }
 0x167   : > { %v1098_v43 = vpop.f32.mrf.mxu0 }
 0x168   : > { %v4602_v13 = vadd.f32 %v1269_v48, %v1098_v43  ;;  %v3466_v36 = vpop.f32.mrf.mxu1 }
 0x169   : > { %v3432_v40 = vpop.f32.mrf.mxu0 }
 0x16a   : > { %v4604_v7 = vadd.f32 %v3466_v36, %v3432_v40  ;;  %v1282_v9 = vpop.f32.mrf.mxu1 }
 0x16b   : > { %v1111_v25 = vpop.f32.mrf.mxu0 }
 0x16c   : > { %v4606_v53 = vadd.f32 %v1282_v9, %v1111_v25  ;;  %v3467_v3 = vpop.f32.mrf.mxu1 }
 0x16d   : > { %v3433_v0 = vpop.f32.mrf.mxu0 }
 0x16e   : > { %v4608_v22 = vadd.f32 %v3467_v3, %v3433_v0  ;;  %v1285_v37 = vpop.f32.mrf.mxu1 }
 0x16f   : > { %v1114_v59 = vpop.f32.mrf.mxu0 }
 0x170   : > { %v4610_v30 = vadd.f32 %v1285_v37, %v1114_v59  ;;  %v3470_v18 = vpop.f32.mrf.mxu1 }
 0x171   : > { %v3436_v54 = vpop.f32.mrf.mxu0 }
 0x172   : > { %v4612_v58 = vadd.f32 %v3470_v18, %v3436_v54  ;;  %v1298_v60 = vpop.f32.mrf.mxu1 }
 0x173   : > { %v1127_v41 = vpop.f32.mrf.mxu0 }
 0x174   : > { %v4614_v23 = vadd.f32 %v1298_v60, %v1127_v41  ;;  %v3471_v44 = vpop.f32.mrf.mxu1 }
 0x175   : > { %v3437_v31 = vpop.f32.mrf.mxu0 }
 0x176   : > { %v4616_v56 = vadd.f32 %v3471_v44, %v3437_v31  ;;  %v1301_v4 = vpop.f32.mrf.mxu1 }
 0x177   : > { %v1130_v28 = vpop.f32.mrf.mxu0 }
 0x178   : > { %v4618_v10 = vadd.f32 %v1301_v4, %v1130_v28  ;;  %v3474_v12 = vpop.f32.mrf.mxu1 }
 0x179   : > { %v3440_v19 = vpop.f32.mrf.mxu0 }
 0x17a   : > { %v4620_v49 = vadd.f32 %v3474_v12, %v3440_v19  ;;  %v1314_v52 = vpop.f32.mrf.mxu1 }
 0x17b   : > { %v1143_v15 = vpop.f32.mrf.mxu0 }
 0x17c   : > { %v4622_v35 = vadd.f32 %v1314_v52, %v1143_v15  ;;  %v3475_v16 = vpop.f32.mrf.mxu1 }
 0x17d   : > { %v3441_v17 = vpop.f32.mrf.mxu0 }
 0x17e   : > { %v4624_v2 = vadd.f32 %v3475_v16, %v3441_v17  ;;  %v1317_v29 = vpop.f32.mrf.mxu1 }
 0x17f   : > { %v1146_v51 = vpop.f32.mrf.mxu0 }
 0x180   : > { %v4626_v46 = vadd.f32 %v1317_v29, %v1146_v51  ;;  %v3478_v55 = vpop.f32.mrf.mxu1 }
 0x181   : > { %v3444_v6 = vpop.f32.mrf.mxu0 }
 0x182   : > { %v4628_v21 = vadd.f32 %v3478_v55, %v3444_v6  ;;  %v1330_v8 = vpop.f32.mrf.mxu1 }
 0x183   : > { %v1159_v33 = vpop.f32.mrf.mxu0 }
 0x184   : > { %v4630_v57 = vadd.f32 %v1330_v8, %v1159_v33  ;;  %v3479_v27 = vpop.f32.mrf.mxu1 }
 0x185   : > { %v3445_v45 = vpop.f32.mrf.mxu0 }
 0x186   : > { %v4632_v11 = vadd.f32 %v3479_v27, %v3445_v45  ;;  %v1333_v14 = vpop.f32.mrf.mxu1 }
 0x187   : > { %v1162_v26 = vpop.f32.mrf.mxu0 }
 0x188   : > { %v4634_v24 = vadd.f32 %v1333_v14, %v1162_v26  ;;  %v3482_v20 = vpop.f32.mrf.mxu1 }
 0x189   : > { %v3448_v42 = vpop.f32.mrf.mxu0 }
 0x18a   : > { %v4636_v1 = vadd.f32 %v3482_v20, %v3448_v42  ;;  %v1346_v61 = vpop.f32.mrf.mxu1 }
 0x18b   : > { %v1175_v5 = vpop.f32.mrf.mxu0 }
 0x18c   : > { %v4638_v32 = vadd.f32 %v1346_v61, %v1175_v5  ;;  %v3483_v48 = vpop.f32.mrf.mxu1 }
 0x18d   : > { %v3449_v43 = vpop.f32.mrf.mxu0 }
 0x18e   : > { %v4640_v36 = vadd.f32 %v3483_v48, %v3449_v43  ;;  %v1349_v40 = vpop.f32.mrf.mxu1 }
 0x18f   : > { %v1178_v9 = vpop.f32.mrf.mxu0 }
 0x190   : > { %v4642_v25 = vadd.f32 %v1349_v40, %v1178_v9  ;;  %v3486_v3 = vpop.f32.mrf.mxu1 }
 0x191   : > { %v3452_v0 = vpop.f32.mrf.mxu0 }
 0x192   : > { %v4644_v37 = vadd.f32 %v3486_v3, %v3452_v0  ;;  %v1362_v59 = vpop.f32.mrf.mxu1 }
 0x193   : > { %v1191_v18 = vpop.f32.mrf.mxu0 }
 0x194   : > { %v4646_v54 = vadd.f32 %v1362_v59, %v1191_v18  ;;  %v3487_v60 = vpop.f32.mrf.mxu1 }
 0x195   : > { %v3453_v41 = vpop.f32.mrf.mxu0 }
 0x196   : > { %v4648_v44 = vadd.f32 %v3487_v60, %v3453_v41  ;;  %v1365_v31 = vpop.f32.mrf.mxu1 }
 0x197   : > { %v1194_v4 = vpop.f32.mrf.mxu0 }
 0x198   : > { %v4650_v28 = vadd.f32 %v1365_v31, %v1194_v4 }
 0x199   : > { %v3492_v12 = vpop.f32.mrf.mxu0  ;;  %v4652_v19 = vpop.f32.mrf.mxu1 }
 0x19a   : > { %v4655_v52 = vadd.f32 %v3492_v12, %v4588_v63 }
 0x19b   : > { %v1422_v15 = vpop.f32.mrf.mxu0  ;;  %v4657_v16 = vpop.f32.mrf.mxu1 }
 0x19c   : > { %v4660_v17 = vadd.f32 %v1422_v15, %v4590_v47 }
 0x19d   : > { %v3493_v29 = vpop.f32.mrf.mxu0  ;;  %v4662_v51 = vpop.f32.mrf.mxu1 }
 0x19e   : > { %v4665_v55 = vadd.f32 %v3493_v29, %v4592_v50 }
 0x19f   : > { %v1425_v6 = vpop.f32.mrf.mxu0  ;;  %v4667_v8 = vpop.f32.mrf.mxu1 }
 0x1a0   : > { %v4670_v33 = vadd.f32 %v1425_v6, %v4594_v34 }
 0x1a1   : > { %v3496_v63 = vpop.f32.mrf.mxu0  ;;  %v4672_v27 = vpop.f32.mrf.mxu1 }
 0x1a2   : > { %v4675_v45 = vadd.f32 %v3496_v63, %v4596_v39 }
 0x1a3   : > { %v1438_v47 = vpop.f32.mrf.mxu0  ;;  %v4677_v14 = vpop.f32.mrf.mxu1 }
 0x1a4   : > { %v4680_v26 = vadd.f32 %v1438_v47, %v4598_v62 }
 0x1a5   : > { %v3497_v50 = vpop.f32.mrf.mxu0  ;;  %v4682_v20 = vpop.f32.mrf.mxu1 }
 0x1a6   : > { %v4685_v42 = vadd.f32 %v3497_v50, %v4600_v38 }
 0x1a7   : > { %v1441_v34 = vpop.f32.mrf.mxu0  ;;  %v4687_v61 = vpop.f32.mrf.mxu1 }
 0x1a8   : > { %v4690_v5 = vadd.f32 %v1441_v34, %v4602_v13 }
 0x1a9   : > { %v3500_v39 = vpop.f32.mrf.mxu0  ;;  %v4692_v48 = vpop.f32.mrf.mxu1 }
 0x1aa   : > { %v4695_v43 = vadd.f32 %v3500_v39, %v4604_v7 }
 0x1ab   : > { %v1454_v62 = vpop.f32.mrf.mxu0  ;;  %v4697_v40 = vpop.f32.mrf.mxu1 }
 0x1ac   : > { %v4700_v9 = vadd.f32 %v1454_v62, %v4606_v53 }
 0x1ad   : > { %v3501_v38 = vpop.f32.mrf.mxu0  ;;  %v4702_v3 = vpop.f32.mrf.mxu1 }
 0x1ae   : > { %v4705_v0 = vadd.f32 %v3501_v38, %v4608_v22 }
 0x1af   : > { %v1457_v13 = vpop.f32.mrf.mxu0  ;;  %v4707_v59 = vpop.f32.mrf.mxu1 }
 0x1b0   : > { %v4710_v18 = vadd.f32 %v1457_v13, %v4610_v30 }
 0x1b1   : > { %v3504_v7 = vpop.f32.mrf.mxu0  ;;  %v4712_v60 = vpop.f32.mrf.mxu1 }
 0x1b2   : > { %v4715_v41 = vadd.f32 %v3504_v7, %v4612_v58 }
 0x1b3   : > { %v1470_v53 = vpop.f32.mrf.mxu0  ;;  %v4717_v31 = vpop.f32.mrf.mxu1 }
 0x1b4   : > { %v4720_v4 = vadd.f32 %v1470_v53, %v4614_v23 }
 0x1b5   : > { %v3505_v22 = vpop.f32.mrf.mxu0  ;;  %v4722_v12 = vpop.f32.mrf.mxu1 }
 0x1b6   : > { %v4725_v15 = vadd.f32 %v3505_v22, %v4616_v56 }
 0x1b7   : > { %v1473_v30 = vpop.f32.mrf.mxu0  ;;  %v4727_v29 = vpop.f32.mrf.mxu1 }
 0x1b8   : > { %v4730_v6 = vadd.f32 %v1473_v30, %v4618_v10 }
 0x1b9   : > { %v3508_v58 = vpop.f32.mrf.mxu0  ;;  %v4732_v63 = vpop.f32.mrf.mxu1 }
 0x1ba   : > { %v4735_v47 = vadd.f32 %v3508_v58, %v4620_v49 }
 0x1bb   : > { %v1486_v23 = vpop.f32.mrf.mxu0  ;;  %v4737_v50 = vpop.f32.mrf.mxu1 }
 0x1bc   : > { %v4740_v34 = vadd.f32 %v1486_v23, %v4622_v35 }
 0x1bd   : > { %v3509_v56 = vpop.f32.mrf.mxu0  ;;  %v4742_v39 = vpop.f32.mrf.mxu1 }
 0x1be   : > { %v4745_v62 = vadd.f32 %v3509_v56, %v4624_v2 }
 0x1bf   : > { %v1489_v10 = vpop.f32.mrf.mxu0  ;;  %v4747_v38 = vpop.f32.mrf.mxu1 }
 0x1c0   : > { %v4750_v13 = vadd.f32 %v1489_v10, %v4626_v46 }
 0x1c1   : > { %v3512_v49 = vpop.f32.mrf.mxu0  ;;  %v4752_v7 = vpop.f32.mrf.mxu1 }
 0x1c2   : > { %v4755_v53 = vadd.f32 %v3512_v49, %v4628_v21 }
 0x1c3   : > { %v1502_v35 = vpop.f32.mrf.mxu0  ;;  %v4757_v22 = vpop.f32.mrf.mxu1 }
 0x1c4   : > { %4968 = vst [vmem:[#allocation2_spill] sm:$0xff] %v4755_v53  ;;  %v4760_v30 = vadd.f32 %v1502_v35, %v4630_v57 }
 0x1c5   : > { %v3513_v2 = vpop.f32.mrf.mxu0  ;;  %v4762_v58 = vpop.f32.mrf.mxu1 }
 0x1c6   : > { %4969 = vst [vmem:[#allocation3_spill] sm:$0xff] %v4760_v30  ;;  %v4765_v23 = vadd.f32 %v3513_v2, %v4632_v11 }
 0x1c7   : > { %v1505_v46 = vpop.f32.mrf.mxu0  ;;  %v4767_v56 = vpop.f32.mrf.mxu1 }
 0x1c8   : > { %4970 = vst [vmem:[#allocation4_spill] sm:$0xff] %v4765_v23  ;;  %v4770_v10 = vadd.f32 %v1505_v46, %v4634_v24 }
 0x1c9   : > { %v3516_v21 = vpop.f32.mrf.mxu0  ;;  %v4772_v49 = vpop.f32.mrf.mxu1 }
 0x1ca   : > { %4971 = vst [vmem:[#allocation5_spill] sm:$0xff] %v4770_v10  ;;  %v4775_v53 = vadd.f32 %v3516_v21, %v4636_v1 }
 0x1cb   : > { %v1518_v57 = vpop.f32.mrf.mxu0  ;;  %v4777_v35 = vpop.f32.mrf.mxu1 }
 0x1cc   : > { %4972 = vst [vmem:[#allocation6_spill] sm:$0xff] %v4775_v53  ;;  %v4780_v30 = vadd.f32 %v1518_v57, %v4638_v32 }
 0x1cd   : > { %v3517_v11 = vpop.f32.mrf.mxu0  ;;  %v4782_v2 = vpop.f32.mrf.mxu1 }
 0x1ce   : > { %4973 = vst [vmem:[#allocation7_spill] sm:$0xff] %v4780_v30  ;;  %v4785_v23 = vadd.f32 %v3517_v11, %v4640_v36 }
 0x1cf   : > { %v1521_v24 = vpop.f32.mrf.mxu0  ;;  %v4787_v46 = vpop.f32.mrf.mxu1 }
 0x1d0   : > { %4974 = vst [vmem:[#allocation8_spill] sm:$0xff] %v4785_v23  ;;  %v4790_v10 = vadd.f32 %v1521_v24, %v4642_v25 }
 0x1d1   : > { %v3520_v1 = vpop.f32.mrf.mxu0  ;;  %v4792_v21 = vpop.f32.mrf.mxu1 }
 0x1d2   : > { %4975 = vst [vmem:[#allocation9_spill] sm:$0xff] %v4790_v10  ;;  %4976 = vst [vmem:[#allocation10_spill] sm:$0xff] %v4792_v21  ;;  %v4795_v53 = vadd.f32 %v3520_v1, %v4644_v37 }
 0x1d3   : > { %v1534_v32 = vpop.f32.mrf.mxu0  ;;  %v4797_v57 = vpop.f32.mrf.mxu1 }
 0x1d4   : > { %4977 = vst [vmem:[#allocation11_spill] sm:$0xff] %v4795_v53  ;;  %4978 = vst [vmem:[#allocation12_spill] sm:$0xff] %v4797_v57  ;;  %v4800_v30 = vadd.f32 %v1534_v32, %v4646_v54 }
 0x1d5   : > { %v3521_v36 = vpop.f32.mrf.mxu0  ;;  %v4802_v11 = vpop.f32.mrf.mxu1 }
 0x1d6   : > { %4979 = vst [vmem:[#allocation13_spill] sm:$0xff] %v4800_v30  ;;  %v4805_v23 = vadd.f32 %v3521_v36, %v4648_v44  ;;  %v4818_v44 = vld [vmem:[%s4963_s4] ss:$0 sm:$0xff] }
 0x1d7   : > { %v1537_v25 = vpop.f32.mrf.mxu0  ;;  %v4807_v24 = vpop.f32.mrf.mxu1 }
 0x1d8   : > { %4980 = vst [vmem:[#allocation14_spill] sm:$0xff] %v4805_v23  ;;  %4981 = vst [vmem:[#allocation15_spill] sm:$0xff] %v4807_v24  ;;  %v4810_v10 = vadd.f32 %v1537_v25, %v4650_v28 }
 0x1d9   : > { %v3560_v37 = vpop.f32.mrf.mxu0  ;;  %v3594_v1 = vpop.f32.mrf.mxu1 }
 0x1da   : > { %4982 = vst [vmem:[#allocation16_spill] sm:$0xff] %v4810_v10  ;;  %v2526_v53 = vadd.f32 %v3560_v37, %v4652_v19 }
 0x1db   : > { %v2517_v57 = vpop.f32.mrf.mxu0  ;;  %v2689_v21 = vpop.f32.mrf.mxu1 }
 0x1dc   : > { %v2818_v54 = vadd.f32 %v3594_v1, %v2526_v53  ;;  %v2518_v32 = vadd.f32 %v2517_v57, %v4657_v16 }
 0x1dd   : > { %v3561_v36 = vpop.f32.mrf.mxu0  ;;  %v3595_v23 = vpop.f32.mrf.mxu1 }
 0x1de   : > { %v2850_v28 = vadd.f32 %v2818_v54, %v4655_v52  ;;  %v2816_v25 = vadd.f32 %v2689_v21, %v2518_v32  ;;  %v2529_v10 = vadd.f32 %v3561_v36, %v4662_v51 }
 0x1df   : > { %v2520_v19 = vpop.f32.mrf.mxu0  ;;  %v2692_v16 = vpop.f32.mrf.mxu1 }
 0x1e0   : > { %v2889_v53 = vadd.f32 %v4818_v44, %v2850_v28  ;;  %v2848_v57 = vadd.f32 %v2816_v25, %v4660_v17  ;;  %v2819_v37 = vadd.f32 %v3595_v23, %v2529_v10  ;;  %v2521_v1 = vadd.f32 %v2520_v19, %v4667_v8 }
 0x1e1   : > { %v3564_v52 = vpop.f32.mrf.mxu0  ;;  %v3598_v21 = vpop.f32.mrf.mxu1 }
 0x1e2   : > { %2921 = vst [vmem:[%s4825_s27 + $0x10] sm:$0xff] %v2889_v53  ;;  %v2887_v51 = vadd.f32 %v4818_v44, %v2848_v57  ;;  %v2851_v54 = vadd.f32 %v2819_v37, %v4665_v55  ;;  %v2817_v32 = vadd.f32 %v2692_v16, %v2521_v1  ;;  %v2542_v36 = vadd.f32 %v3564_v52, %v4672_v27 }
 0x1e3   : > { %v2533_v30 = vpop.f32.mrf.mxu0  ;;  %v2705_v24 = vpop.f32.mrf.mxu1 }
 0x1e4   : > { %2919 = vst [vmem:[%s4825_s27] sm:$0xff] %v2887_v51  ;;  %v2890_v17 = vadd.f32 %v4818_v44, %v2851_v54  ;;  %v2849_v23 = vadd.f32 %v2817_v32, %v4670_v33  ;;  %v2534_v8 = vadd.f32 %v2533_v30, %v4677_v14  ;;  %v2822_v10 = vadd.f32 %v3598_v21, %v2542_v36 }
 0x1e5   : > { %v3565_v28 = vpop.f32.mrf.mxu0  ;;  %v3599_v25 = vpop.f32.mrf.mxu1  ;;  %v2988_v27 = vmul.f32 %v2887_v51, %v2887_v51  ;;  %v2990_v21 = vmul.f32 %v2889_v53, %v2889_v53 }
 0x1e6   : > { %2922 = vst [vmem:[%s4825_s27 + $0x18] sm:$0xff] %v2890_v17  ;;  %v2888_v19 = vadd.f32 %v4818_v44, %v2849_v23  ;;  %v2820_v55 = vadd.f32 %v2705_v24, %v2534_v8  ;;  %v2545_v16 = vadd.f32 %v3565_v28, %v4682_v20  ;;  %v2854_v57 = vadd.f32 %v2822_v10, %v4675_v45 }
 0x1e7   : > { %v2536_v37 = vpop.f32.mrf.mxu0  ;;  %v2708_v1 = vpop.f32.mrf.mxu1 }
 0x1e8   : > { %2920 = vst [vmem:[%s4825_s27 + $0x8] sm:$0xff] %v2888_v19  ;;  %v2951_v52 = vadd.f32 %v2888_v19, %v2887_v51  ;;  %v2989_v33 = vmul.f32 %v2888_v19, %v2888_v19  ;;  %v2852_v14 = vadd.f32 %v2820_v55, %v4680_v26  ;;  %v2823_v30 = vadd.f32 %v3599_v25, %v2545_v16 }
 0x1e9   : > { %v2893_v54 = vadd.f32 %v4818_v44, %v2854_v57  ;;  %v2537_v24 = vadd.f32 %v2536_v37, %v4687_v61  ;;  %v3568_v32 = vpop.f32.mrf.mxu0  ;;  %v3602_v20 = vpop.f32.mrf.mxu1  ;;  %v2991_v25 = vmul.f32 %v2890_v17, %v2890_v17 }
 0x1ea   : > { %v2952_v36 = vadd.f32 %v2951_v52, %v2889_v53  ;;  %v3020_v23 = vadd.f32 %v2989_v33, %v2988_v27  ;;  %v2891_v45 = vadd.f32 %v4818_v44, %v2852_v14  ;;  %v2855_v8 = vadd.f32 %v2823_v30, %v4685_v42 }
 0x1eb   : > { %2925 = vst [vmem:[%s4825_s27 + $0x30] sm:$0xff] %v2893_v54  ;;  %v2821_v51 = vadd.f32 %v2708_v1, %v2537_v24  ;;  %v2558_v10 = vadd.f32 %v3568_v32, %v4692_v48  ;;  %v2549_v26 = vpop.f32.mrf.mxu0  ;;  %v2721_v28 = vpop.f32.mrf.mxu1 }
 0x1ec   : > { %v3021_v19 = vadd.f32 %v3020_v23, %v2990_v21  ;;  %2923 = vst [vmem:[%s4825_s27 + $0x20] sm:$0xff] %v2891_v45  ;;  %v2953_v55 = vadd.f32 %v2952_v36, %v2890_v17  ;;  %v2894_v61 = vadd.f32 %v4818_v44, %v2855_v8  ;;  %v2550_v27 = vadd.f32 %v2549_v26, %v4697_v40 }
 0x1ed   : > { %v2853_v53 = vadd.f32 %v2821_v51, %v4690_v5  ;;  %v2826_v16 = vadd.f32 %v3602_v20, %v2558_v10  ;;  %v3569_v42 = vpop.f32.mrf.mxu0  ;;  %v3603_v57 = vpop.f32.mrf.mxu1  ;;  %v2992_v1 = vmul.f32 %v2891_v45, %v2891_v45  ;;  %v2994_v10 = vmul.f32 %v2893_v54, %v2893_v54 }
 0x1ee   : > { %v2954_v37 = vadd.f32 %v2953_v55, %v2891_v45  ;;  %v3022_v48 = vadd.f32 %v3021_v19, %v2991_v25  ;;  %2926 = vst [vmem:[%s4825_s27 + $0x38] sm:$0xff] %v2894_v61  ;;  %v2561_v52 = vadd.f32 %v3569_v42, %v4702_v3  ;;  %v2824_v14 = vadd.f32 %v2721_v28, %v2550_v27 }
 0x1ef   : > { %v2892_v33 = vadd.f32 %v4818_v44, %v2853_v53  ;;  %v2858_v17 = vadd.f32 %v2826_v16, %v4695_v43  ;;  %v2552_v30 = vpop.f32.mrf.mxu0  ;;  %v2724_v21 = vpop.f32.mrf.mxu1  ;;  %v2995_v16 = vmul.f32 %v2894_v61, %v2894_v61 }
 0x1f0   : > { %v3023_v5 = vadd.f32 %v3022_v48, %v2992_v1  ;;  %v2827_v24 = vadd.f32 %v3603_v57, %v2561_v52  ;;  %v2553_v40 = vadd.f32 %v2552_v30, %v4707_v59  ;;  %v2856_v23 = vadd.f32 %v2824_v14, %v4700_v9 }
 0x1f1   : > { %2924 = vst [vmem:[%s4825_s27 + $0x28] sm:$0xff] %v2892_v33  ;;  %v2955_v32 = vadd.f32 %v2954_v37, %v2892_v33  ;;  %v2993_v20 = vmul.f32 %v2892_v33, %v2892_v33  ;;  %v2897_v36 = vadd.f32 %v4818_v44, %v2858_v17  ;;  %v3572_v3 = vpop.f32.mrf.mxu0  ;;  %v3606_v45 = vpop.f32.mrf.mxu1 }
 0x1f2   : > { %v2859_v8 = vadd.f32 %v2827_v24, %v4705_v0  ;;  %v2825_v43 = vadd.f32 %v2724_v21, %v2553_v40  ;;  %v2574_v51 = vadd.f32 %v3572_v3, %v4712_v60  ;;  %v2895_v59 = vadd.f32 %v4818_v44, %v2856_v23 }
 0x1f3   : > { %v2956_v26 = vadd.f32 %v2955_v32, %v2893_v54  ;;  %v3024_v28 = vadd.f32 %v3023_v5, %v2993_v20  ;;  %2929 = vst [vmem:[%s4825_s27 + $0x50] sm:$0xff] %v2897_v36  ;;  %v2565_v25 = vpop.f32.mrf.mxu0  ;;  %v2737_v19 = vpop.f32.mrf.mxu1  ;;  %v2998_v3 = vmul.f32 %v2897_v36, %v2897_v36 }
 0x1f4   : > { %v2898_v55 = vadd.f32 %v4818_v44, %v2859_v8  ;;  %v2857_v9 = vadd.f32 %v2825_v43, %v4710_v18  ;;  %v2830_v53 = vadd.f32 %v3606_v45, %v2574_v51  ;;  %v2566_v0 = vadd.f32 %v2565_v25, %v4717_v31  ;;  %2927 = vst [vmem:[%s4825_s27 + $0x40] sm:$0xff] %v2895_v59 }
 0x1f5   : > { %v3025_v27 = vadd.f32 %v3024_v28, %v2994_v10  ;;  %v2957_v60 = vadd.f32 %v2956_v26, %v2894_v61  ;;  %v3573_v54 = vpop.f32.mrf.mxu0  ;;  %v3607_v42 = vpop.f32.mrf.mxu1  ;;  %v2996_v52 = vmul.f32 %v2895_v59, %v2895_v59 }
 0x1f6   : > { %2930 = vst [vmem:[%s4825_s27 + $0x58] sm:$0xff] %v2898_v55  ;;  %v2896_v57 = vadd.f32 %v4818_v44, %v2857_v9  ;;  %v2862_v37 = vadd.f32 %v2830_v53, %v4715_v41  ;;  %v2828_v1 = vadd.f32 %v2737_v19, %v2566_v0  ;;  %v2577_v33 = vadd.f32 %v3573_v54, %v4722_v12 }
 0x1f7   : > { %v2958_v48 = vadd.f32 %v2957_v60, %v2895_v59  ;;  %v3026_v18 = vadd.f32 %v3025_v27, %v2995_v16  ;;  %v2568_v31 = vpop.f32.mrf.mxu0  ;;  %v2740_v17 = vpop.f32.mrf.mxu1  ;;  %v2999_v28 = vmul.f32 %v2898_v55, %v2898_v55 }
 0x1f8   : > { %2928 = vst [vmem:[%s4825_s27 + $0x48] sm:$0xff] %v2896_v57  ;;  %v2997_v14 = vmul.f32 %v2896_v57, %v2896_v57  ;;  %v2901_v61 = vadd.f32 %v4818_v44, %v2862_v37  ;;  %v2860_v30 = vadd.f32 %v2828_v1, %v4720_v4  ;;  %v2569_v21 = vadd.f32 %v2568_v31, %v4727_v29 }
 0x1f9   : > { %v3027_v5 = vadd.f32 %v3026_v18, %v2996_v52  ;;  %v2959_v41 = vadd.f32 %v2958_v48, %v2896_v57  ;;  %v2831_v24 = vadd.f32 %v3607_v42, %v2577_v33  ;;  %v3576_v40 = vpop.f32.mrf.mxu0  ;;  %v3610_v32 = vpop.f32.mrf.mxu1 }
 0x1fa   : > { %2933 = vst [vmem:[%s4825_s27 + $0x70] sm:$0xff] %v2901_v61  ;;  %v2899_v20 = vadd.f32 %v4818_v44, %v2860_v30  ;;  %v2829_v12 = vadd.f32 %v2740_v17, %v2569_v21  ;;  %v2590_v23 = vadd.f32 %v3576_v40, %v4732_v63  ;;  %v3002_v31 = vmul.f32 %v2901_v61, %v2901_v61 }
 0x1fb   : > { %v2960_v45 = vadd.f32 %v2959_v41, %v2897_v36  ;;  %v3028_v8 = vadd.f32 %v3027_v5, %v2997_v14  ;;  %v2863_v43 = vadd.f32 %v2831_v24, %v4725_v15  ;;  %v2581_v4 = vpop.f32.mrf.mxu0  ;;  %v2753_v51 = vpop.f32.mrf.mxu1 }
 0x1fc   : > { %2931 = vst [vmem:[%s4825_s27 + $0x60] sm:$0xff] %v2899_v20  ;;  %v2861_v29 = vadd.f32 %v2829_v12, %v4730_v6  ;;  %v2834_v10 = vadd.f32 %v3610_v32, %v2590_v23  ;;  %v2582_v26 = vadd.f32 %v2581_v4, %v4737_v50  ;;  %v3000_v16 = vmul.f32 %v2899_v20, %v2899_v20 }
 0x1fd   : > { %v3029_v59 = vadd.f32 %v3028_v8, %v2998_v3  ;;  %v2961_v25 = vadd.f32 %v2960_v45, %v2898_v55  ;;  %v2902_v63 = vadd.f32 %v4818_v44, %v2863_v43  ;;  %v3577_v19 = vpop.f32.mrf.mxu0  ;;  %v3611_v36 = vpop.f32.mrf.mxu1 }
 0x1fe   : > { %v2900_v9 = vadd.f32 %v4818_v44, %v2861_v29  ;;  %v2866_v15 = vadd.f32 %v2834_v10, %v4735_v47  ;;  %v2832_v53 = vadd.f32 %v2753_v51, %v2582_v26  ;;  %v2593_v0 = vadd.f32 %v3577_v19, %v4742_v39 }
 0x1ff   : > { %v2962_v6 = vadd.f32 %v2961_v25, %v2899_v20  ;;  %v3030_v27 = vadd.f32 %v3029_v59, %v2999_v28  ;;  %2934 = vst [vmem:[%s4825_s27 + $0x78] sm:$0xff] %v2902_v63  ;;  %v2584_v50 = vpop.f32.mrf.mxu0  ;;  %v2756_v60 = vpop.f32.mrf.mxu1  ;;  %v3003_v24 = vmul.f32 %v2902_v63, %v2902_v63 }
 0x200   : > { %2932 = vst [vmem:[%s4825_s27 + $0x68] sm:$0xff] %v2900_v9  ;;  %v3001_v55 = vmul.f32 %v2900_v9, %v2900_v9  ;;  %v2905_v54 = vadd.f32 %v4818_v44, %v2866_v15  ;;  %v2864_v42 = vadd.f32 %v2832_v53, %v4740_v34  ;;  %v2835_v57 = vadd.f32 %v3611_v36, %v2593_v0 }
 0x201   : > { %v3031_v37 = vadd.f32 %v3030_v27, %v3000_v16  ;;  %v2963_v47 = vadd.f32 %v2962_v6, %v2900_v9  ;;  %v2585_v1 = vadd.f32 %v2584_v50, %v4747_v38  ;;  %v3580_v39 = vpop.f32.mrf.mxu0  ;;  %v3614_v48 = vpop.f32.mrf.mxu1  ;;  %v4985_v9 = vld [vmem:[#allocation4_spill] sm:$0xff] }
 0x202   : > { %2937 = vst [vmem:[%s4825_s27 + $0x90] sm:$0xff] %v2905_v54  ;;  %v2903_v52 = vadd.f32 %v4818_v44, %v2864_v42  ;;  %v2867_v18 = vadd.f32 %v2835_v57, %v4745_v62  ;;  %v2606_v33 = vadd.f32 %v3580_v39, %v4752_v7  ;;  %v3006_v0 = vmul.f32 %v2905_v54, %v2905_v54 }
 0x203   : > { %v2964_v17 = vadd.f32 %v2963_v47, %v2901_v61  ;;  %v3032_v14 = vadd.f32 %v3031_v37, %v3001_v55  ;;  %v2833_v34 = vadd.f32 %v2756_v60, %v2585_v1  ;;  %v2597_v30 = vpop.f32.mrf.mxu0  ;;  %v2769_v21 = vpop.f32.mrf.mxu1  ;;  %v4983_v61 = vld [vmem:[#allocation2_spill] sm:$0xff]  ;;  %v4986_v55 = vld [vmem:[#allocation5_spill] sm:$0xff] }
 0x204   : > { %2935 = vst [vmem:[%s4825_s27 + $0x80] sm:$0xff] %v2903_v52  ;;  %v2906_v5 = vadd.f32 %v4818_v44, %v2867_v18  ;;  %v2838_v38 = vadd.f32 %v3614_v48, %v2606_v33  ;;  %v2598_v41 = vadd.f32 %v2597_v30, %v4757_v22  ;;  %v3004_v8 = vmul.f32 %v2903_v52, %v2903_v52 }
 0x205   : > { %v3033_v40 = vadd.f32 %v3032_v14, %v3002_v31  ;;  %v2965_v32 = vadd.f32 %v2964_v17, %v2902_v63  ;;  %v2865_v62 = vadd.f32 %v2833_v34, %v4750_v13  ;;  %v3581_v20 = vpop.f32.mrf.mxu0  ;;  %v3615_v7 = vpop.f32.mrf.mxu1  ;;  %v4984_v13 = vld [vmem:[#allocation3_spill] sm:$0xff]  ;;  %v4987_v14 = vld [vmem:[#allocation6_spill] sm:$0xff] }
 0x206   : > { %2938 = vst [vmem:[%s4825_s27 + $0x98] sm:$0xff] %v2906_v5  ;;  %v2870_v12 = vadd.f32 %v2838_v38, %v4983_v61  ;;  %v2836_v23 = vadd.f32 %v2769_v21, %v2598_v41  ;;  %v2609_v3 = vadd.f32 %v3581_v20, %v4762_v58  ;;  %v3007_v37 = vmul.f32 %v2906_v5, %v2906_v5  ;;  %v4988_v38 = vld [vmem:[#allocation7_spill] sm:$0xff]  ;;  %v4989_v61 = vld [vmem:[#allocation8_spill] sm:$0xff] }
 0x207   : > { %v2966_v45 = vadd.f32 %v2965_v32, %v2903_v52  ;;  %v3034_v43 = vadd.f32 %v3033_v40, %v3003_v24  ;;  %v2904_v22 = vadd.f32 %v4818_v44, %v2865_v62  ;;  %v2600_v4 = vpop.f32.mrf.mxu0  ;;  %v2772_v51 = vpop.f32.mrf.mxu1 }
 0x208   : > { %v2909_v29 = vadd.f32 %v4818_v44, %v2870_v12  ;;  %v2868_v10 = vadd.f32 %v2836_v23, %v4984_v13  ;;  %v2839_v26 = vadd.f32 %v3615_v7, %v2609_v3  ;;  %v2601_v28 = vadd.f32 %v2600_v4, %v4767_v56  ;;  %v4990_v3 = vld [vmem:[#allocation10_spill] sm:$0xff]  ;;  %v4991_v13 = vld [vmem:[#allocation9_spill] sm:$0xff] }
 0x209   : > { %v3035_v59 = vadd.f32 %v3034_v43, %v3004_v8  ;;  %2936 = vst [vmem:[%s4825_s27 + $0x88] sm:$0xff] %v2904_v22  ;;  %v2967_v25 = vadd.f32 %v2966_v45, %v2904_v22  ;;  %v3005_v58 = vmul.f32 %v2904_v22, %v2904_v22  ;;  %v3584_v63 = vpop.f32.mrf.mxu0  ;;  %v3618_v19 = vpop.f32.mrf.mxu1 }
 0x20a   : > { %2941 = vst [vmem:[%s4825_s27 + $0xb0] sm:$0xff] %v2909_v29  ;;  %v2907_v36 = vadd.f32 %v4818_v44, %v2868_v10  ;;  %v2871_v15 = vadd.f32 %v2839_v26, %v4985_v9  ;;  %v2837_v53 = vadd.f32 %v2772_v51, %v2601_v28  ;;  %v2622_v27 = vadd.f32 %v3584_v63, %v4772_v49  ;;  %v4993_v9 = vld [vmem:[#allocation11_spill] sm:$0xff] }
 0x20b   : > { %v2968_v6 = vadd.f32 %v2967_v25, %v2905_v54  ;;  %v3036_v16 = vadd.f32 %v3035_v59, %v3005_v58  ;;  %v2613_v56 = vpop.f32.mrf.mxu0  ;;  %v2785_v50 = vpop.f32.mrf.mxu1  ;;  %v3010_v8 = vmul.f32 %v2909_v29, %v2909_v29  ;;  %v4992_v58 = vld [vmem:[#allocation12_spill] sm:$0xff] }
 0x20c   : > { %2939 = vst [vmem:[%s4825_s27 + $0xa0] sm:$0xff] %v2907_v36  ;;  %v2910_v60 = vadd.f32 %v4818_v44, %v2871_v15  ;;  %v2869_v42 = vadd.f32 %v2837_v53, %v4986_v55  ;;  %v2614_v57 = vadd.f32 %v2613_v56, %v4777_v35  ;;  %v2842_v39 = vadd.f32 %v3618_v19, %v2622_v27 }
 0x20d   : > { %v3037_v47 = vadd.f32 %v3036_v16, %v3006_v0  ;;  %v2969_v1 = vadd.f32 %v2968_v6, %v2906_v5  ;;  %v3585_v48 = vpop.f32.mrf.mxu0  ;;  %v3619_v52 = vpop.f32.mrf.mxu1  ;;  %v3008_v31 = vmul.f32 %v2907_v36, %v2907_v36 }
 0x20e   : > { %2942 = vst [vmem:[%s4825_s27 + $0xb8] sm:$0xff] %v2910_v60  ;;  %v2908_v54 = vadd.f32 %v4818_v44, %v2869_v42  ;;  %v2840_v49 = vadd.f32 %v2785_v50, %v2614_v57  ;;  %v2625_v18 = vadd.f32 %v3585_v48, %v4782_v2  ;;  %v2874_v34 = vadd.f32 %v2842_v39, %v4987_v14  ;;  %v4994_v42 = vld [vmem:[#allocation15_spill] sm:$0xff]  ;;  %v4997_v14 = vld [vmem:[#allocation16_spill] sm:$0xff] }
 0x20f   : > { %v2970_v33 = vadd.f32 %v2969_v1, %v2907_v36  ;;  %v3038_v17 = vadd.f32 %v3037_v47, %v3007_v37  ;;  %v2616_v30 = vpop.f32.mrf.mxu0  ;;  %v2788_v35 = vpop.f32.mrf.mxu1  ;;  %v3011_v28 = vmul.f32 %v2910_v60, %v2910_v60  ;;  %v4995_v1 = vld [vmem:[#allocation13_spill] sm:$0xff] }
 0x210   : > { %2940 = vst [vmem:[%s4825_s27 + $0xa8] sm:$0xff] %v2908_v54  ;;  %v3009_v21 = vmul.f32 %v2908_v54, %v2908_v54  ;;  %v2872_v5 = vadd.f32 %v2840_v49, %v4988_v38  ;;  %v2843_v41 = vadd.f32 %v3619_v52, %v2625_v18  ;;  %v2617_v24 = vadd.f32 %v2616_v30, %v4787_v46 }
 0x211   : > { %v3039_v40 = vadd.f32 %v3038_v17, %v3008_v31  ;;  %v2971_v32 = vadd.f32 %v2970_v33, %v2908_v54  ;;  %v2913_v2 = vadd.f32 %v4818_v44, %v2874_v34  ;;  %v3588_v62 = vpop.f32.mrf.mxu0  ;;  %v3622_v20 = vpop.f32.mrf.mxu1 }
 0x212   : > { %v2911_v7 = vadd.f32 %v4818_v44, %v2872_v5  ;;  %v2875_v12 = vadd.f32 %v2843_v41, %v4989_v61  ;;  %v2841_v23 = vadd.f32 %v2788_v35, %v2617_v24  ;;  %v2638_v45 = vadd.f32 %v3588_v62, %v4990_v3 }
 0x213   : > { %v2972_v43 = vadd.f32 %v2971_v32, %v2909_v29  ;;  %v3040_v22 = vadd.f32 %v3039_v40, %v3009_v21  ;;  %2945 = vst [vmem:[%s4825_s27 + $0xd0] sm:$0xff] %v2913_v2  ;;  %v2629_v46 = vpop.f32.mrf.mxu0  ;;  %v2801_v4 = vpop.f32.mrf.mxu1  ;;  %v3014_v49 = vmul.f32 %v2913_v2, %v2913_v2 }
 0x214   : > { %2943 = vst [vmem:[%s4825_s27 + $0xc0] sm:$0xff] %v2911_v7  ;;  %v2914_v51 = vadd.f32 %v4818_v44, %v2875_v12  ;;  %v2873_v10 = vadd.f32 %v2841_v23, %v4991_v13  ;;  %v2846_v26 = vadd.f32 %v3622_v20, %v2638_v45  ;;  %v2630_v63 = vadd.f32 %v2629_v46, %v4992_v58 }
 0x215   : > { %v3041_v59 = vadd.f32 %v3040_v22, %v3010_v8  ;;  %v2973_v25 = vadd.f32 %v2972_v43, %v2910_v60  ;;  %v3589_v19 = vpop.f32.mrf.mxu0  ;;  %v3623_v36 = vpop.f32.mrf.mxu1  ;;  %v3012_v6 = vmul.f32 %v2911_v7, %v2911_v7 }
 0x216   : > { %2946 = vst [vmem:[%s4825_s27 + $0xd8] sm:$0xff] %v2914_v51  ;;  %v2912_v29 = vadd.f32 %v4818_v44, %v2873_v10  ;;  %v2878_v15 = vadd.f32 %v2846_v26, %v4993_v9  ;;  %v2641_v53 = vadd.f32 %v3589_v19, %v4802_v11  ;;  %v2844_v27 = vadd.f32 %v2801_v4, %v2630_v63  ;;  %v4996_v11 = vld [vmem:[#allocation14_spill] sm:$0xff] }
 0x217   : > { %v2974_v0 = vadd.f32 %v2973_v25, %v2911_v7  ;;  %v3042_v16 = vadd.f32 %v3041_v59, %v3011_v28  ;;  %v2632_v56 = vpop.f32.mrf.mxu0  ;;  %v2804_v48 = vpop.f32.mrf.mxu1  ;;  %v3015_v30 = vmul.f32 %v2914_v51, %v2914_v51 }
 0x218   : > { %2944 = vst [vmem:[%s4825_s27 + $0xc8] sm:$0xff] %v2912_v29  ;;  %v3013_v50 = vmul.f32 %v2912_v29, %v2912_v29  ;;  %v2917_v60 = vadd.f32 %v4818_v44, %v2878_v15  ;;  %v2847_v55 = vadd.f32 %v3623_v36, %v2641_v53  ;;  %v2633_v57 = vadd.f32 %v2632_v56, %v4994_v42 }
 0x219   : > { %v3043_v37 = vadd.f32 %v3042_v16, %v3012_v6  ;;  %v2975_v47 = vadd.f32 %v2974_v0, %v2912_v29  ;;  %v2876_v39 = vadd.f32 %v2844_v27, %v4995_v1 }
 0x21a   : > { %2949 = vst [vmem:[%s4825_s27 + $0xf0] sm:$0xff] %v2917_v60  ;;  %v2879_v52 = vadd.f32 %v2847_v55, %v4996_v11  ;;  %v2845_v54 = vadd.f32 %v2804_v48, %v2633_v57  ;;  %v3018_v62 = vmul.f32 %v2917_v60, %v2917_v60 }
 0x21b   : > { %v2976_v18 = vadd.f32 %v2975_v47, %v2913_v2  ;;  %v3044_v33 = vadd.f32 %v3043_v37, %v3013_v50  ;;  %v2915_v31 = vadd.f32 %v4818_v44, %v2876_v39 }
 0x21c   : > { %v2918_v17 = vadd.f32 %v4818_v44, %v2879_v52  ;;  %v2877_v34 = vadd.f32 %v2845_v54, %v4997_v14 }
 0x21d   : > { %v3045_v35 = vadd.f32 %v3044_v33, %v3014_v49  ;;  %2947 = vst [vmem:[%s4825_s27 + $0xe0] sm:$0xff] %v2915_v31  ;;  %v2977_v21 = vadd.f32 %v2976_v18, %v2914_v51  ;;  %v3016_v41 = vmul.f32 %v2915_v31, %v2915_v31 }
 0x21e   : > { %2950 = vst [vmem:[%s4825_s27 + $0xf8] sm:$0xff] %v2918_v17  ;;  %v2916_v38 = vadd.f32 %v4818_v44, %v2877_v34  ;;  %v3019_v61 = vmul.f32 %v2918_v17, %v2918_v17 }
 0x21f   : > { %v2978_v5 = vadd.f32 %v2977_v21, %v2915_v31  ;;  %v3046_v24 = vadd.f32 %v3045_v35, %v3015_v30 }
 0x220   : > { %2948 = vst [vmem:[%s4825_s27 + $0xe8] sm:$0xff] %v2916_v38  ;;  %v3017_v40 = vmul.f32 %v2916_v38, %v2916_v38 }
 0x221   : > { %v3047_v32 = vadd.f32 %v3046_v24, %v3016_v41  ;;  %v2979_v2 = vadd.f32 %v2978_v5, %v2916_v38 }
 0x223   : > { %v2980_v20 = vadd.f32 %v2979_v2, %v2917_v60  ;;  %v3048_v7 = vadd.f32 %v3047_v32, %v3017_v40 }
 0x225   : > { %v2981_v12 = vadd.f32 %v2980_v20, %v2918_v17  ;;  %v3049_v23 = vadd.f32 %v3048_v7, %v3018_v62 }
 0x227   : > { %v2982_v3 = vrot.slane %v2981_v12, 4  ;;  %v3050_v45 = vadd.f32 %v3049_v23, %v3019_v61 }
 0x229   : > { %v2983_v8 = vadd.f32 %v2982_v3, %v2981_v12  ;;  %v3051_v43 = vrot.slane %v3050_v45, 4 }
 0x22b   : > { %v2984_v22 = vrot.slane %v2983_v8, 2  ;;  %v3052_v44 = vadd.f32 %v3051_v43, %v3050_v45 }
 0x22d   : > { %v2985_v46 = vadd.f32 %v2984_v22, %v2983_v8  ;;  %v3053_v4 = vrot.slane %v3052_v44, 2 }
 0x22f   : > { %v2986_v51 = vrot.slane %v2985_v46, 1  ;;  %v3054_v13 = vadd.f32 %v3053_v4, %v3052_v44 }
 0x231   : > { %v3055_v10 = vrot.slane %v3054_v13, 1  ;;  %v2987_v26 = vadd.f32 %v2986_v51, %v2985_v46 }
 0x233   : > { %v3056_v28 = vadd.f32 %v3055_v10, %v3054_v13 }
 0x235   : > { %v3058_v59 = vsel %vm540_vm1, %v2987_v26, %v3056_v28 }
 0x236   : > { %3059 = vst [vmem:[%s282_s7] sm:$0x3] %v3058_v59 }
 0x237 PF: > { %s17_s21 = sadd.s32 1, %s3685_s21  }
 0x238   : > { %p14_p4 = scmp.ge.s32.totalorder %s17_s21, 4  }
 0x23a   :  { %16 = sbr.rel (!%p14_p4) target bundleno = 1 (0x1), region = 89 }

</bundles_post_ra>
